<compile_context>
chip_gen: v7x
topology: tpu7x:2x2x1
jax: 0.10.0
libtpu: 0.0.40
codegen_flags: <defaults>
</compile_context>

<pallas_src>
import jax
import jax.numpy as jnp
import numpy as np
from jax.experimental import pallas as pl
from jax.experimental.pallas import tpu as pltpu


# ----------------------------- wrapper + fused kernel ------------------------

def upsampler_forward(params, left_nchw, x_nchw):
    N, Cl, H2, W2 = left_nchw.shape
    H, W = H2 // 2, W2 // 2
    HW = H * W
    NHW = N * HW
    Ci = x_nchw.shape[1]
    Cs = params['up_w'].shape[1]
    Ccat = Cl + Cs
    C = params['c2_w'].shape[0]
    f32 = jnp.float32
    eps = 1e-5

    # ---------------- kernel (closure over the static sizes) ----------------
    def kernel(x_ref, left_ref, wt_ref, bup_ref,
               w2_ref, b2_ref, g2_ref, be2_ref,
               w1_ref, b1_ref, g1_ref, be1_ref,
               mask_ref, out_ref):

        def mask_for(si, sj):
            # 0/1 border mask for reading (i+si, j+sj) inside each HxW block.
            if si == 0 and sj == 0:
                return None
            return mask_ref[(si + 1) * 3 + (sj + 1)]        # (1, NHW)

        def shift_lanes(v, s):
            # out[:, l] = v[:, l + s]; source lanes falling outside the array
            # are zero-filled (those outputs are masked anyway).
            if s == 0:
                return v
            z = jnp.zeros((v.shape[0], abs(s)), f32)
            if s > 0:
                return jnp.concatenate([v[:, s:], z], axis=1)
            return jnp.concatenate([z, v[:, :s]], axis=1)

        def conv3x3(src, w_ref, b_ref):
            # src: 4 polyphase components, each (cin, N*H*W), lane-dense.
            cache = {}

            def tap_src(a, b):
                # Full-res offset (a, b) relative to the output pixel reads
                # component (a%2, b%2) shifted by (a//2, b//2) on the HxW grid.
                if (a, b) in cache:
                    return cache[(a, b)]
                rr, si = a % 2, a // 2
                rc, sj = b % 2, b // 2
                v = shift_lanes(src[rr * 2 + rc], si * W + sj)
                m = mask_for(si, sj)
                if m is not None:
                    v = v * m
                cache[(a, b)] = v
                return v

            bias = b_ref[...]                                # (C, 1)
            outs = []
            for p in range(2):                               # output row parity
                for q in range(2):                           # output col parity
                    acc = jnp.zeros((C, NHW), f32)
                    for dh in range(3):
                        for dw in range(3):
                            acc = acc + jnp.dot(
                                w_ref[dh * 3 + dw],
                                tap_src(p + dh - 1, q + dw - 1),
                                preferred_element_type=f32)
                    outs.append(acc + bias)
            return outs

        def bn_relu(vals, g_ref, be_ref):
            # Training-mode BatchNorm (batch statistics, biased variance) + ReLU.
            cnt = float(len(vals) * NHW)                     # = N * 2H * 2W
            total = jnp.zeros((C, 1), f32)
            for v in vals:
                total = total + jnp.sum(v, axis=1, keepdims=True)
            mean = total * (1.0 / cnt)
            ssq = jnp.zeros((C, 1), f32)
            for v in vals:                                   # two-pass var (f32)
                d = v - mean
                ssq = ssq + jnp.sum(d * d, axis=1, keepdims=True)
            scale = g_ref[...] * jax.lax.rsqrt(ssq * (1.0 / cnt) + eps)
            offs = be_ref[...] - mean * scale
            return [jnp.maximum(v * scale + offs, 0.0) for v in vals]

        # ---- Stage 1: ConvTranspose2d(2x2, s2) + channel concat (polyphase).
        # left_ref carries zeros in the "up" channel rows and wt_ref carries
        # zeros in the "left" channel rows, so the concat is a single add.
        x = x_ref[...]                                       # (Ci, NHW)
        bup = bup_ref[...]                                   # (Ccat, 1)
        cat = []
        for comp in range(4):                                # comp = di*2 + dj
            up = jnp.dot(wt_ref[comp], x, preferred_element_type=f32) + bup
            cat.append(left_ref[comp] + up)                  # (Ccat, NHW)

        # ---- Stage 2 & 3: Conv3x3 + BatchNorm + ReLU, twice.
        h2 = bn_relu(conv3x3(cat, w2_ref, b2_ref), g2_ref, be2_ref)
        h1 = bn_relu(conv3x3(h2, w1_ref, b1_ref), g1_ref, be1_ref)
        for comp in range(4):
            out_ref[comp, :, :] = h1[comp]

    # ---------------- tiny, layout-only input prep in XLA ----------------
    # x: NCHW -> (Ci, N*H*W); channels on sublanes, flattened spatial on lanes.
    x2 = jnp.transpose(x_nchw, (1, 0, 2, 3)).reshape(Ci, NHW).astype(f32)

    # left: NCHW -> polyphase components (4, Cl, N*H*W), zero-extended to Ccat
    # channels so the in-kernel concat is a single add.
    lt = left_nchw.reshape(N, Cl, H, 2, W, 2)
    lt = jnp.transpose(lt, (3, 5, 1, 0, 2, 4)).reshape(4, Cl, NHW)
    left_poly = jnp.pad(lt, ((0, 0), (0, Cs), (0, 0))).astype(f32)

    # ConvTranspose2d weights per output-pixel parity, (Cout rows) embedded in
    # the Ccat channel rows (left rows are zero).
    wt = jnp.transpose(params['up_w'], (2, 3, 1, 0)).reshape(4, Cs, Ci)
    wt_ext = jnp.pad(wt, ((0, 0), (Cl, 0), (0, 0))).astype(f32)
    bup = jnp.pad(params['up_b'], (Cl, 0)).reshape(Ccat, 1).astype(f32)

    # 3x3 conv weights as 9 per-tap (Cout, Cin) matrices (tap = dh*3 + dw).
    w2_9 = jnp.transpose(params['c2_w'], (2, 3, 0, 1)).reshape(9, C, Ccat).astype(f32)
    w1_9 = jnp.transpose(params['c1_w'], (2, 3, 0, 1)).reshape(9, C, C).astype(f32)

    # Border masks for the 9 (si, sj) shifts, computed once in XLA (18 KB).
    ii = jnp.arange(NHW, dtype=jnp.int32)
    i_idx = (ii % HW) // W
    j_idx = ii % W
    masks = []
    for si in (-1, 0, 1):
        for sj in (-1, 0, 1):
            m = ((i_idx + si >= 0) & (i_idx + si <= H - 1) &
                 (j_idx + sj >= 0) & (j_idx + sj <= W - 1))
            masks.append(m.astype(f32))
    masks_arr = jnp.stack(masks).reshape(9, 1, NHW)

    def col(v):
        return v.reshape(-1, 1).astype(f32)

    args = (x2, left_poly, wt_ext, bup,
            w2_9, col(params['c2_b']), col(params['c2_gamma']), col(params['c2_beta']),
            w1_9, col(params['c1_b']), col(params['c1_gamma']), col(params['c1_beta']),
            masks_arr)

    def make_imap(rank):
        return lambda i: (0,) * rank

    out_poly = pl.pallas_call(
        kernel,
        out_shape=jax.ShapeDtypeStruct((4, C, NHW), jnp.float32),
        grid=(1,),
        in_specs=[pl.BlockSpec(a.shape, make_imap(a.ndim)) for a in args],
        out_specs=pl.BlockSpec((4, C, NHW), make_imap(3)),
        compiler_params=pltpu.CompilerParams(
            dimension_semantics=("arbitrary",)),
    )(*args)

    # Reassemble the 4 polyphase components into NCHW (one 32 KB transpose).
    out = out_poly.reshape(2, 2, C, N, H, W)
    out = jnp.transpose(out, (3, 2, 4, 0, 5, 1)).reshape(N, C, 2 * H, 2 * W)
    return out


# ----------------------------- pure-JAX reference ----------------------------

def ref_forward(params, left_nchw, x_nchw, eps=1e-5):
    left = jnp.transpose(left_nchw, (0, 2, 3, 1))
    x = jnp.transpose(x_nchw, (0, 2, 3, 1))
    N, H, W, _ = x.shape
    Co = params['up_w'].shape[1]
    up = jnp.zeros((N, 2 * H, 2 * W, Co), jnp.float32)
    for di in range(2):
        for dj in range(2):
            up = up.at[:, di::2, dj::2, :].set(
                jnp.einsum('nhwc,co->nhwo', x, params['up_w'][:, :, di, dj]))
    up = up + params['up_b']
    cat = jnp.concatenate([left, up], axis=-1)

    def block(z, w, b, gamma, beta):
        zp = jnp.pad(z, ((0, 0), (1, 1), (1, 1), (0, 0)))
        Hh, Ww = z.shape[1], z.shape[2]
        out = jnp.zeros(z.shape[:3] + (w.shape[0],), jnp.float32)
        for dh in range(3):
            for dw in range(3):
                out = out + jnp.einsum('nhwc,oc->nhwo',
                                       zp[:, dh:dh + Hh, dw:dw + Ww, :],
                                       w[:, :, dh, dw])
        out = out + b
        mean = jnp.mean(out, axis=(0, 1, 2))
        var = jnp.mean((out - mean) ** 2, axis=(0, 1, 2))
        out = (out - mean) / jnp.sqrt(var + eps) * gamma + beta
        return jnp.maximum(out, 0.0)

    h = block(cat, params['c2_w'], params['c2_b'], params['c2_gamma'], params['c2_beta'])
    h = block(h, params['c1_w'], params['c1_b'], params['c1_gamma'], params['c1_beta'])
    return jnp.transpose(h, (0, 3, 1, 2))


# --------------------------------- main ---------------------------------------

if __name__ == "__main__":
    key = jax.random.PRNGKey(0)
    inlen, size = 8, 4
    N, H, W = 2, 16, 16       # x: (N, inlen, H, W);  left: (N, size, 2H, 2W)
    ks = jax.random.split(key, 8)

    params = {
        # ConvTranspose2d(inlen, size, 2, stride=2): weight (Cin, Cout, 2, 2)
        'up_w': 0.1 * jax.random.normal(ks[0], (inlen, size, 2, 2), jnp.float32),
        'up_b': 0.1 * jax.random.normal(ks[1], (size,), jnp.float32),
        # Block conv2: Conv2d(2*size, size, 3, padding=1): weight (Cout, Cin, 3, 3)
        'c2_w': 0.1 * jax.random.normal(ks[2], (size, 2 * size, 3, 3), jnp.float32),
        'c2_b': 0.1 * jax.random.normal(ks[3], (size,), jnp.float32),
        'c2_gamma': jnp.ones((size,), jnp.float32),   # BatchNorm2d default init
        'c2_beta': jnp.zeros((size,), jnp.float32),
        # Block conv1: Conv2d(size, size, 3, padding=1)
        'c1_w': 0.1 * jax.random.normal(ks[4], (size, size, 3, 3), jnp.float32),
        'c1_b': 0.1 * jax.random.normal(ks[5], (size,), jnp.float32),
        'c1_gamma': jnp.ones((size,), jnp.float32),
        'c1_beta': jnp.zeros((size,), jnp.float32),
    }

    left = jax.random.normal(ks[6], (N, size, 2 * H, 2 * W), jnp.float32)
    x = jax.random.normal(ks[7], (N, inlen, H, W), jnp.float32)

    fwd = jax.jit(upsampler_forward)
    out = jax.block_until_ready(fwd(params, left, x))
    assert out.shape == (N, size, 2 * H, 2 * W)

    ref = ref_forward(params, left, x)
    np.testing.assert_allclose(np.asarray(out), np.asarray(ref), atol=1e-4, rtol=1e-4)

    print("KERNEL_OK")
</pallas_src>

<mosaic_0001>
module attributes {stable_mosaic.version = 11 : i64} {
  func.func @kernel(%arg0: i32, %arg1: memref<8x512xf32, #tpu.memory_space<vmem>>, %arg2: memref<4x8x512xf32, #tpu.memory_space<vmem>>, %arg3: memref<4x8x8xf32, #tpu.memory_space<vmem>>, %arg4: memref<8x1xf32, #tpu.memory_space<vmem>>, %arg5: memref<9x4x8xf32, #tpu.memory_space<vmem>>, %arg6: memref<4x1xf32, #tpu.memory_space<vmem>>, %arg7: memref<4x1xf32, #tpu.memory_space<vmem>>, %arg8: memref<4x1xf32, #tpu.memory_space<vmem>>, %arg9: memref<9x4x4xf32, #tpu.memory_space<vmem>>, %arg10: memref<4x1xf32, #tpu.memory_space<vmem>>, %arg11: memref<4x1xf32, #tpu.memory_space<vmem>>, %arg12: memref<4x1xf32, #tpu.memory_space<vmem>>, %arg13: memref<9x1x512xf32, #tpu.memory_space<vmem>>, %arg14: memref<4x4x512xf32, #tpu.memory_space<vmem>>) attributes {dimension_semantics = [#tpu.dimension_semantics<arbitrary>], iteration_bounds = array<i64: 1>, scalar_prefetch = 0 : i64, scratch_operands = 0 : i64, tpu.core_type = #tpu.core_type<tc>, window_params = [{pipeline_mode = #tpu.pipeline_mode<synchronous>, transform_indices = @transform_0, window_bounds = array<i64: 8, 512>}, {pipeline_mode = #tpu.pipeline_mode<synchronous>, transform_indices = @transform_1, window_bounds = array<i64: 4, 8, 512>}, {pipeline_mode = #tpu.pipeline_mode<synchronous>, transform_indices = @transform_2, window_bounds = array<i64: 4, 8, 8>}, {pipeline_mode = #tpu.pipeline_mode<synchronous>, transform_indices = @transform_3, window_bounds = array<i64: 8, 1>}, {pipeline_mode = #tpu.pipeline_mode<synchronous>, transform_indices = @transform_4, window_bounds = array<i64: 9, 4, 8>}, {pipeline_mode = #tpu.pipeline_mode<synchronous>, transform_indices = @transform_5, window_bounds = array<i64: 4, 1>}, {pipeline_mode = #tpu.pipeline_mode<synchronous>, transform_indices = @transform_6, window_bounds = array<i64: 4, 1>}, {pipeline_mode = #tpu.pipeline_mode<synchronous>, transform_indices = @transform_7, window_bounds = array<i64: 4, 1>}, {pipeline_mode = #tpu.pipeline_mode<synchronous>, transform_indices = @transform_8, window_bounds = array<i64: 9, 4, 4>}, {pipeline_mode = #tpu.pipeline_mode<synchronous>, transform_indices = @transform_9, window_bounds = array<i64: 4, 1>}, {pipeline_mode = #tpu.pipeline_mode<synchronous>, transform_indices = @transform_10, window_bounds = array<i64: 4, 1>}, {pipeline_mode = #tpu.pipeline_mode<synchronous>, transform_indices = @transform_11, window_bounds = array<i64: 4, 1>}, {pipeline_mode = #tpu.pipeline_mode<synchronous>, transform_indices = @transform_12, window_bounds = array<i64: 9, 1, 512>}, {pipeline_mode = #tpu.pipeline_mode<synchronous>, transform_indices = @transform_13, window_bounds = array<i64: 4, 4, 512>}]} {
    %c0 = arith.constant 0 : index
    %c0_0 = arith.constant 0 : index
    %0 = vector.load %arg1[%c0, %c0_0] : memref<8x512xf32, #tpu.memory_space<vmem>>, vector<8x512xf32>
    %c0_1 = arith.constant 0 : index
    %c0_2 = arith.constant 0 : index
    %1 = vector.load %arg4[%c0_1, %c0_2] : memref<8x1xf32, #tpu.memory_space<vmem>>, vector<8x1xf32>
    %c0_3 = arith.constant 0 : index
    %c0_4 = arith.constant 0 : index
    %c0_5 = arith.constant 0 : index
    %2 = vector.load %arg3[%c0_3, %c0_4, %c0_5] : memref<4x8x8xf32, #tpu.memory_space<vmem>>, vector<1x8x8xf32>
    %3 = vector.shape_cast %2 : vector<1x8x8xf32> to vector<8x8xf32>
    %cst = arith.constant dense<0.000000e+00> : vector<8x512xf32>
    %4 = tpu.matmul %3, %0, %cst {dimension_numbers = #tpu.dot_dimension_numbers<[1], [0], [0], [1], [0, 0, 1, 1], [], []>} : vector<8x8xf32>, vector<8x512xf32>, vector<8x512xf32> -> vector<8x512xf32>
    %5 = vector.broadcast %1 : vector<8x1xf32> to vector<8x512xf32>
    %6 = arith.addf %4, %5 : vector<8x512xf32>
    %c0_6 = arith.constant 0 : index
    %c0_7 = arith.constant 0 : index
    %c0_8 = arith.constant 0 : index
    %7 = vector.load %arg2[%c0_6, %c0_7, %c0_8] : memref<4x8x512xf32, #tpu.memory_space<vmem>>, vector<1x8x512xf32>
    %8 = vector.shape_cast %7 : vector<1x8x512xf32> to vector<8x512xf32>
    %9 = arith.addf %8, %6 : vector<8x512xf32>
    %c1 = arith.constant 1 : index
    %c0_9 = arith.constant 0 : index
    %c0_10 = arith.constant 0 : index
    %10 = vector.load %arg3[%c1, %c0_9, %c0_10] : memref<4x8x8xf32, #tpu.memory_space<vmem>>, vector<1x8x8xf32>
    %11 = vector.shape_cast %10 : vector<1x8x8xf32> to vector<8x8xf32>
    %cst_11 = arith.constant dense<0.000000e+00> : vector<8x512xf32>
    %12 = tpu.matmul %11, %0, %cst_11 {dimension_numbers = #tpu.dot_dimension_numbers<[1], [0], [0], [1], [0, 0, 1, 1], [], []>} : vector<8x8xf32>, vector<8x512xf32>, vector<8x512xf32> -> vector<8x512xf32>
    %13 = vector.broadcast %1 : vector<8x1xf32> to vector<8x512xf32>
    %14 = arith.addf %12, %13 : vector<8x512xf32>
    %c1_12 = arith.constant 1 : index
    %c0_13 = arith.constant 0 : index
    %c0_14 = arith.constant 0 : index
    %15 = vector.load %arg2[%c1_12, %c0_13, %c0_14] : memref<4x8x512xf32, #tpu.memory_space<vmem>>, vector<1x8x512xf32>
    %16 = vector.shape_cast %15 : vector<1x8x512xf32> to vector<8x512xf32>
    %17 = arith.addf %16, %14 : vector<8x512xf32>
    %c2 = arith.constant 2 : index
    %c0_15 = arith.constant 0 : index
    %c0_16 = arith.constant 0 : index
    %18 = vector.load %arg3[%c2, %c0_15, %c0_16] : memref<4x8x8xf32, #tpu.memory_space<vmem>>, vector<1x8x8xf32>
    %19 = vector.shape_cast %18 : vector<1x8x8xf32> to vector<8x8xf32>
    %cst_17 = arith.constant dense<0.000000e+00> : vector<8x512xf32>
    %20 = tpu.matmul %19, %0, %cst_17 {dimension_numbers = #tpu.dot_dimension_numbers<[1], [0], [0], [1], [0, 0, 1, 1], [], []>} : vector<8x8xf32>, vector<8x512xf32>, vector<8x512xf32> -> vector<8x512xf32>
    %21 = vector.broadcast %1 : vector<8x1xf32> to vector<8x512xf32>
    %22 = arith.addf %20, %21 : vector<8x512xf32>
    %c2_18 = arith.constant 2 : index
    %c0_19 = arith.constant 0 : index
    %c0_20 = arith.constant 0 : index
    %23 = vector.load %arg2[%c2_18, %c0_19, %c0_20] : memref<4x8x512xf32, #tpu.memory_space<vmem>>, vector<1x8x512xf32>
    %24 = vector.shape_cast %23 : vector<1x8x512xf32> to vector<8x512xf32>
    %25 = arith.addf %24, %22 : vector<8x512xf32>
    %c3 = arith.constant 3 : index
    %c0_21 = arith.constant 0 : index
    %c0_22 = arith.constant 0 : index
    %26 = vector.load %arg3[%c3, %c0_21, %c0_22] : memref<4x8x8xf32, #tpu.memory_space<vmem>>, vector<1x8x8xf32>
    %27 = vector.shape_cast %26 : vector<1x8x8xf32> to vector<8x8xf32>
    %cst_23 = arith.constant dense<0.000000e+00> : vector<8x512xf32>
    %28 = tpu.matmul %27, %0, %cst_23 {dimension_numbers = #tpu.dot_dimension_numbers<[1], [0], [0], [1], [0, 0, 1, 1], [], []>} : vector<8x8xf32>, vector<8x512xf32>, vector<8x512xf32> -> vector<8x512xf32>
    %29 = vector.broadcast %1 : vector<8x1xf32> to vector<8x512xf32>
    %30 = arith.addf %28, %29 : vector<8x512xf32>
    %c3_24 = arith.constant 3 : index
    %c0_25 = arith.constant 0 : index
    %c0_26 = arith.constant 0 : index
    %31 = vector.load %arg2[%c3_24, %c0_25, %c0_26] : memref<4x8x512xf32, #tpu.memory_space<vmem>>, vector<1x8x512xf32>
    %32 = vector.shape_cast %31 : vector<1x8x512xf32> to vector<8x512xf32>
    %33 = arith.addf %32, %30 : vector<8x512xf32>
    %c0_27 = arith.constant 0 : index
    %c0_28 = arith.constant 0 : index
    %34 = vector.load %arg6[%c0_27, %c0_28] : memref<4x1xf32, #tpu.memory_space<vmem>>, vector<4x1xf32>
    %cst_29 = arith.constant 0.000000e+00 : f32
    %35 = vector.broadcast %cst_29 : f32 to vector<4x512xf32>
    %c0_30 = arith.constant 0 : index
    %c0_31 = arith.constant 0 : index
    %c0_32 = arith.constant 0 : index
    %36 = vector.load %arg5[%c0_30, %c0_31, %c0_32] : memref<9x4x8xf32, #tpu.memory_space<vmem>>, vector<1x4x8xf32>
    %37 = vector.shape_cast %36 : vector<1x4x8xf32> to vector<4x8xf32>
    %cst_33 = arith.constant 0.000000e+00 : f32
    %38 = vector.broadcast %cst_33 : f32 to vector<8x17xf32>
    %39 = vector.extract_strided_slice %33 {offsets = [0, 0], sizes = [8, 495], strides = [1, 1]} : vector<8x512xf32> to vector<8x495xf32>
    %40 = tpu.concatenate %38, %39 in 1 : vector<8x17xf32>, vector<8x495xf32> -> vector<8x512xf32>
    %c0_34 = arith.constant 0 : index
    %c0_35 = arith.constant 0 : index
    %c0_36 = arith.constant 0 : index
    %41 = vector.load %arg13[%c0_34, %c0_35, %c0_36] : memref<9x1x512xf32, #tpu.memory_space<vmem>>, vector<1x1x512xf32>
    %42 = vector.shape_cast %41 : vector<1x1x512xf32> to vector<1x512xf32>
    %43 = vector.broadcast %42 : vector<1x512xf32> to vector<8x512xf32>
    %44 = arith.mulf %40, %43 : vector<8x512xf32>
    %cst_37 = arith.constant dense<0.000000e+00> : vector<4x512xf32>
    %45 = tpu.matmul %37, %44, %cst_37 {dimension_numbers = #tpu.dot_dimension_numbers<[1], [0], [0], [1], [0, 0, 1, 1], [], []>} : vector<4x8xf32>, vector<8x512xf32>, vector<4x512xf32> -> vector<4x512xf32>
    %46 = arith.addf %35, %45 : vector<4x512xf32>
    %c1_38 = arith.constant 1 : index
    %c0_39 = arith.constant 0 : index
    %c0_40 = arith.constant 0 : index
    %47 = vector.load %arg5[%c1_38, %c0_39, %c0_40] : memref<9x4x8xf32, #tpu.memory_space<vmem>>, vector<1x4x8xf32>
    %48 = vector.shape_cast %47 : vector<1x4x8xf32> to vector<4x8xf32>
    %cst_41 = arith.constant 0.000000e+00 : f32
    %49 = vector.broadcast %cst_41 : f32 to vector<8x16xf32>
    %50 = vector.extract_strided_slice %25 {offsets = [0, 0], sizes = [8, 496], strides = [1, 1]} : vector<8x512xf32> to vector<8x496xf32>
    %51 = tpu.concatenate %49, %50 in 1 : vector<8x16xf32>, vector<8x496xf32> -> vector<8x512xf32>
    %c1_42 = arith.constant 1 : index
    %c0_43 = arith.constant 0 : index
    %c0_44 = arith.constant 0 : index
    %52 = vector.load %arg13[%c1_42, %c0_43, %c0_44] : memref<9x1x512xf32, #tpu.memory_space<vmem>>, vector<1x1x512xf32>
    %53 = vector.shape_cast %52 : vector<1x1x512xf32> to vector<1x512xf32>
    %54 = vector.broadcast %53 : vector<1x512xf32> to vector<8x512xf32>
    %55 = arith.mulf %51, %54 : vector<8x512xf32>
    %cst_45 = arith.constant dense<0.000000e+00> : vector<4x512xf32>
    %56 = tpu.matmul %48, %55, %cst_45 {dimension_numbers = #tpu.dot_dimension_numbers<[1], [0], [0], [1], [0, 0, 1, 1], [], []>} : vector<4x8xf32>, vector<8x512xf32>, vector<4x512xf32> -> vector<4x512xf32>
    %57 = arith.addf %46, %56 : vector<4x512xf32>
    %c2_46 = arith.constant 2 : index
    %c0_47 = arith.constant 0 : index
    %c0_48 = arith.constant 0 : index
    %58 = vector.load %arg5[%c2_46, %c0_47, %c0_48] : memref<9x4x8xf32, #tpu.memory_space<vmem>>, vector<1x4x8xf32>
    %59 = vector.shape_cast %58 : vector<1x4x8xf32> to vector<4x8xf32>
    %cst_49 = arith.constant 0.000000e+00 : f32
    %60 = vector.broadcast %cst_49 : f32 to vector<8x16xf32>
    %61 = vector.extract_strided_slice %33 {offsets = [0, 0], sizes = [8, 496], strides = [1, 1]} : vector<8x512xf32> to vector<8x496xf32>
    %62 = tpu.concatenate %60, %61 in 1 : vector<8x16xf32>, vector<8x496xf32> -> vector<8x512xf32>
    %c1_50 = arith.constant 1 : index
    %c0_51 = arith.constant 0 : index
    %c0_52 = arith.constant 0 : index
    %63 = vector.load %arg13[%c1_50, %c0_51, %c0_52] : memref<9x1x512xf32, #tpu.memory_space<vmem>>, vector<1x1x512xf32>
    %64 = vector.shape_cast %63 : vector<1x1x512xf32> to vector<1x512xf32>
    %65 = vector.broadcast %64 : vector<1x512xf32> to vector<8x512xf32>
    %66 = arith.mulf %62, %65 : vector<8x512xf32>
    %cst_53 = arith.constant dense<0.000000e+00> : vector<4x512xf32>
    %67 = tpu.matmul %59, %66, %cst_53 {dimension_numbers = #tpu.dot_dimension_numbers<[1], [0], [0], [1], [0, 0, 1, 1], [], []>} : vector<4x8xf32>, vector<8x512xf32>, vector<4x512xf32> -> vector<4x512xf32>
    %68 = arith.addf %57, %67 : vector<4x512xf32>
    %c3_54 = arith.constant 3 : index
    %c0_55 = arith.constant 0 : index
    %c0_56 = arith.constant 0 : index
    %69 = vector.load %arg5[%c3_54, %c0_55, %c0_56] : memref<9x4x8xf32, #tpu.memory_space<vmem>>, vector<1x4x8xf32>
    %70 = vector.shape_cast %69 : vector<1x4x8xf32> to vector<4x8xf32>
    %cst_57 = arith.constant 0.000000e+00 : f32
    %71 = vector.broadcast %cst_57 : f32 to vector<8x1xf32>
    %72 = vector.extract_strided_slice %17 {offsets = [0, 0], sizes = [8, 511], strides = [1, 1]} : vector<8x512xf32> to vector<8x511xf32>
    %73 = tpu.concatenate %71, %72 in 1 : vector<8x1xf32>, vector<8x511xf32> -> vector<8x512xf32>
    %c3_58 = arith.constant 3 : index
    %c0_59 = arith.constant 0 : index
    %c0_60 = arith.constant 0 : index
    %74 = vector.load %arg13[%c3_58, %c0_59, %c0_60] : memref<9x1x512xf32, #tpu.memory_space<vmem>>, vector<1x1x512xf32>
    %75 = vector.shape_cast %74 : vector<1x1x512xf32> to vector<1x512xf32>
    %76 = vector.broadcast %75 : vector<1x512xf32> to vector<8x512xf32>
    %77 = arith.mulf %73, %76 : vector<8x512xf32>
    %cst_61 = arith.constant dense<0.000000e+00> : vector<4x512xf32>
    %78 = tpu.matmul %70, %77, %cst_61 {dimension_numbers = #tpu.dot_dimension_numbers<[1], [0], [0], [1], [0, 0, 1, 1], [], []>} : vector<4x8xf32>, vector<8x512xf32>, vector<4x512xf32> -> vector<4x512xf32>
    %79 = arith.addf %68, %78 : vector<4x512xf32>
    %c4 = arith.constant 4 : index
    %c0_62 = arith.constant 0 : index
    %c0_63 = arith.constant 0 : index
    %80 = vector.load %arg5[%c4, %c0_62, %c0_63] : memref<9x4x8xf32, #tpu.memory_space<vmem>>, vector<1x4x8xf32>
    %81 = vector.shape_cast %80 : vector<1x4x8xf32> to vector<4x8xf32>
    %cst_64 = arith.constant dense<0.000000e+00> : vector<4x512xf32>
    %82 = tpu.matmul %81, %9, %cst_64 {dimension_numbers = #tpu.dot_dimension_numbers<[1], [0], [0], [1], [0, 0, 1, 1], [], []>} : vector<4x8xf32>, vector<8x512xf32>, vector<4x512xf32> -> vector<4x512xf32>
    %83 = arith.addf %79, %82 : vector<4x512xf32>
    %c5 = arith.constant 5 : index
    %c0_65 = arith.constant 0 : index
    %c0_66 = arith.constant 0 : index
    %84 = vector.load %arg5[%c5, %c0_65, %c0_66] : memref<9x4x8xf32, #tpu.memory_space<vmem>>, vector<1x4x8xf32>
    %85 = vector.shape_cast %84 : vector<1x4x8xf32> to vector<4x8xf32>
    %cst_67 = arith.constant dense<0.000000e+00> : vector<4x512xf32>
    %86 = tpu.matmul %85, %17, %cst_67 {dimension_numbers = #tpu.dot_dimension_numbers<[1], [0], [0], [1], [0, 0, 1, 1], [], []>} : vector<4x8xf32>, vector<8x512xf32>, vector<4x512xf32> -> vector<4x512xf32>
    %87 = arith.addf %83, %86 : vector<4x512xf32>
    %c6 = arith.constant 6 : index
    %c0_68 = arith.constant 0 : index
    %c0_69 = arith.constant 0 : index
    %88 = vector.load %arg5[%c6, %c0_68, %c0_69] : memref<9x4x8xf32, #tpu.memory_space<vmem>>, vector<1x4x8xf32>
    %89 = vector.shape_cast %88 : vector<1x4x8xf32> to vector<4x8xf32>
    %cst_70 = arith.constant 0.000000e+00 : f32
    %90 = vector.broadcast %cst_70 : f32 to vector<8x1xf32>
    %91 = vector.extract_strided_slice %33 {offsets = [0, 0], sizes = [8, 511], strides = [1, 1]} : vector<8x512xf32> to vector<8x511xf32>
    %92 = tpu.concatenate %90, %91 in 1 : vector<8x1xf32>, vector<8x511xf32> -> vector<8x512xf32>
    %c3_71 = arith.constant 3 : index
    %c0_72 = arith.constant 0 : index
    %c0_73 = arith.constant 0 : index
    %93 = vector.load %arg13[%c3_71, %c0_72, %c0_73] : memref<9x1x512xf32, #tpu.memory_space<vmem>>, vector<1x1x512xf32>
    %94 = vector.shape_cast %93 : vector<1x1x512xf32> to vector<1x512xf32>
    %95 = vector.broadcast %94 : vector<1x512xf32> to vector<8x512xf32>
    %96 = arith.mulf %92, %95 : vector<8x512xf32>
    %cst_74 = arith.constant dense<0.000000e+00> : vector<4x512xf32>
    %97 = tpu.matmul %89, %96, %cst_74 {dimension_numbers = #tpu.dot_dimension_numbers<[1], [0], [0], [1], [0, 0, 1, 1], [], []>} : vector<4x8xf32>, vector<8x512xf32>, vector<4x512xf32> -> vector<4x512xf32>
    %98 = arith.addf %87, %97 : vector<4x512xf32>
    %c7 = arith.constant 7 : index
    %c0_75 = arith.constant 0 : index
    %c0_76 = arith.constant 0 : index
    %99 = vector.load %arg5[%c7, %c0_75, %c0_76] : memref<9x4x8xf32, #tpu.memory_space<vmem>>, vector<1x4x8xf32>
    %100 = vector.shape_cast %99 : vector<1x4x8xf32> to vector<4x8xf32>
    %cst_77 = arith.constant dense<0.000000e+00> : vector<4x512xf32>
    %101 = tpu.matmul %100, %25, %cst_77 {dimension_numbers = #tpu.dot_dimension_numbers<[1], [0], [0], [1], [0, 0, 1, 1], [], []>} : vector<4x8xf32>, vector<8x512xf32>, vector<4x512xf32> -> vector<4x512xf32>
    %102 = arith.addf %98, %101 : vector<4x512xf32>
    %c8 = arith.constant 8 : index
    %c0_78 = arith.constant 0 : index
    %c0_79 = arith.constant 0 : index
    %103 = vector.load %arg5[%c8, %c0_78, %c0_79] : memref<9x4x8xf32, #tpu.memory_space<vmem>>, vector<1x4x8xf32>
    %104 = vector.shape_cast %103 : vector<1x4x8xf32> to vector<4x8xf32>
    %cst_80 = arith.constant dense<0.000000e+00> : vector<4x512xf32>
    %105 = tpu.matmul %104, %33, %cst_80 {dimension_numbers = #tpu.dot_dimension_numbers<[1], [0], [0], [1], [0, 0, 1, 1], [], []>} : vector<4x8xf32>, vector<8x512xf32>, vector<4x512xf32> -> vector<4x512xf32>
    %106 = arith.addf %102, %105 : vector<4x512xf32>
    %107 = vector.broadcast %34 : vector<4x1xf32> to vector<4x512xf32>
    %108 = arith.addf %106, %107 : vector<4x512xf32>
    %cst_81 = arith.constant 0.000000e+00 : f32
    %109 = vector.broadcast %cst_81 : f32 to vector<4x512xf32>
    %c0_82 = arith.constant 0 : index
    %c0_83 = arith.constant 0 : index
    %c0_84 = arith.constant 0 : index
    %110 = vector.load %arg5[%c0_82, %c0_83, %c0_84] : memref<9x4x8xf32, #tpu.memory_space<vmem>>, vector<1x4x8xf32>
    %111 = vector.shape_cast %110 : vector<1x4x8xf32> to vector<4x8xf32>
    %cst_85 = arith.constant dense<0.000000e+00> : vector<4x512xf32>
    %112 = tpu.matmul %111, %55, %cst_85 {dimension_numbers = #tpu.dot_dimension_numbers<[1], [0], [0], [1], [0, 0, 1, 1], [], []>} : vector<4x8xf32>, vector<8x512xf32>, vector<4x512xf32> -> vector<4x512xf32>
    %113 = arith.addf %109, %112 : vector<4x512xf32>
    %c1_86 = arith.constant 1 : index
    %c0_87 = arith.constant 0 : index
    %c0_88 = arith.constant 0 : index
    %114 = vector.load %arg5[%c1_86, %c0_87, %c0_88] : memref<9x4x8xf32, #tpu.memory_space<vmem>>, vector<1x4x8xf32>
    %115 = vector.shape_cast %114 : vector<1x4x8xf32> to vector<4x8xf32>
    %cst_89 = arith.constant dense<0.000000e+00> : vector<4x512xf32>
    %116 = tpu.matmul %115, %66, %cst_89 {dimension_numbers = #tpu.dot_dimension_numbers<[1], [0], [0], [1], [0, 0, 1, 1], [], []>} : vector<4x8xf32>, vector<8x512xf32>, vector<4x512xf32> -> vector<4x512xf32>
    %117 = arith.addf %113, %116 : vector<4x512xf32>
    %c2_90 = arith.constant 2 : index
    %c0_91 = arith.constant 0 : index
    %c0_92 = arith.constant 0 : index
    %118 = vector.load %arg5[%c2_90, %c0_91, %c0_92] : memref<9x4x8xf32, #tpu.memory_space<vmem>>, vector<1x4x8xf32>
    %119 = vector.shape_cast %118 : vector<1x4x8xf32> to vector<4x8xf32>
    %cst_93 = arith.constant 0.000000e+00 : f32
    %120 = vector.broadcast %cst_93 : f32 to vector<8x15xf32>
    %121 = vector.extract_strided_slice %25 {offsets = [0, 0], sizes = [8, 497], strides = [1, 1]} : vector<8x512xf32> to vector<8x497xf32>
    %122 = tpu.concatenate %120, %121 in 1 : vector<8x15xf32>, vector<8x497xf32> -> vector<8x512xf32>
    %c2_94 = arith.constant 2 : index
    %c0_95 = arith.constant 0 : index
    %c0_96 = arith.constant 0 : index
    %123 = vector.load %arg13[%c2_94, %c0_95, %c0_96] : memref<9x1x512xf32, #tpu.memory_space<vmem>>, vector<1x1x512xf32>
    %124 = vector.shape_cast %123 : vector<1x1x512xf32> to vector<1x512xf32>
    %125 = vector.broadcast %124 : vector<1x512xf32> to vector<8x512xf32>
    %126 = arith.mulf %122, %125 : vector<8x512xf32>
    %cst_97 = arith.constant dense<0.000000e+00> : vector<4x512xf32>
    %127 = tpu.matmul %119, %126, %cst_97 {dimension_numbers = #tpu.dot_dimension_numbers<[1], [0], [0], [1], [0, 0, 1, 1], [], []>} : vector<4x8xf32>, vector<8x512xf32>, vector<4x512xf32> -> vector<4x512xf32>
    %128 = arith.addf %117, %127 : vector<4x512xf32>
    %c3_98 = arith.constant 3 : index
    %c0_99 = arith.constant 0 : index
    %c0_100 = arith.constant 0 : index
    %129 = vector.load %arg5[%c3_98, %c0_99, %c0_100] : memref<9x4x8xf32, #tpu.memory_space<vmem>>, vector<1x4x8xf32>
    %130 = vector.shape_cast %129 : vector<1x4x8xf32> to vector<4x8xf32>
    %cst_101 = arith.constant dense<0.000000e+00> : vector<4x512xf32>
    %131 = tpu.matmul %130, %9, %cst_101 {dimension_numbers = #tpu.dot_dimension_numbers<[1], [0], [0], [1], [0, 0, 1, 1], [], []>} : vector<4x8xf32>, vector<8x512xf32>, vector<4x512xf32> -> vector<4x512xf32>
    %132 = arith.addf %128, %131 : vector<4x512xf32>
    %c4_102 = arith.constant 4 : index
    %c0_103 = arith.constant 0 : index
    %c0_104 = arith.constant 0 : index
    %133 = vector.load %arg5[%c4_102, %c0_103, %c0_104] : memref<9x4x8xf32, #tpu.memory_space<vmem>>, vector<1x4x8xf32>
    %134 = vector.shape_cast %133 : vector<1x4x8xf32> to vector<4x8xf32>
    %cst_105 = arith.constant dense<0.000000e+00> : vector<4x512xf32>
    %135 = tpu.matmul %134, %17, %cst_105 {dimension_numbers = #tpu.dot_dimension_numbers<[1], [0], [0], [1], [0, 0, 1, 1], [], []>} : vector<4x8xf32>, vector<8x512xf32>, vector<4x512xf32> -> vector<4x512xf32>
    %136 = arith.addf %132, %135 : vector<4x512xf32>
    %c5_106 = arith.constant 5 : index
    %c0_107 = arith.constant 0 : index
    %c0_108 = arith.constant 0 : index
    %137 = vector.load %arg5[%c5_106, %c0_107, %c0_108] : memref<9x4x8xf32, #tpu.memory_space<vmem>>, vector<1x4x8xf32>
    %138 = vector.shape_cast %137 : vector<1x4x8xf32> to vector<4x8xf32>
    %cst_109 = arith.constant 0.000000e+00 : f32
    %139 = vector.broadcast %cst_109 : f32 to vector<8x1xf32>
    %140 = vector.extract_strided_slice %9 {offsets = [0, 1], sizes = [8, 511], strides = [1, 1]} : vector<8x512xf32> to vector<8x511xf32>
    %141 = tpu.concatenate %140, %139 in 1 : vector<8x511xf32>, vector<8x1xf32> -> vector<8x512xf32>
    %c5_110 = arith.constant 5 : index
    %c0_111 = arith.constant 0 : index
    %c0_112 = arith.constant 0 : index
    %142 = vector.load %arg13[%c5_110, %c0_111, %c0_112] : memref<9x1x512xf32, #tpu.memory_space<vmem>>, vector<1x1x512xf32>
    %143 = vector.shape_cast %142 : vector<1x1x512xf32> to vector<1x512xf32>
    %144 = vector.broadcast %143 : vector<1x512xf32> to vector<8x512xf32>
    %145 = arith.mulf %141, %144 : vector<8x512xf32>
    %cst_113 = arith.constant dense<0.000000e+00> : vector<4x512xf32>
    %146 = tpu.matmul %138, %145, %cst_113 {dimension_numbers = #tpu.dot_dimension_numbers<[1], [0], [0], [1], [0, 0, 1, 1], [], []>} : vector<4x8xf32>, vector<8x512xf32>, vector<4x512xf32> -> vector<4x512xf32>
    %147 = arith.addf %136, %146 : vector<4x512xf32>
    %c6_114 = arith.constant 6 : index
    %c0_115 = arith.constant 0 : index
    %c0_116 = arith.constant 0 : index
    %148 = vector.load %arg5[%c6_114, %c0_115, %c0_116] : memref<9x4x8xf32, #tpu.memory_space<vmem>>, vector<1x4x8xf32>
    %149 = vector.shape_cast %148 : vector<1x4x8xf32> to vector<4x8xf32>
    %cst_117 = arith.constant dense<0.000000e+00> : vector<4x512xf32>
    %150 = tpu.matmul %149, %25, %cst_117 {dimension_numbers = #tpu.dot_dimension_numbers<[1], [0], [0], [1], [0, 0, 1, 1], [], []>} : vector<4x8xf32>, vector<8x512xf32>, vector<4x512xf32> -> vector<4x512xf32>
    %151 = arith.addf %147, %150 : vector<4x512xf32>
    %c7_118 = arith.constant 7 : index
    %c0_119 = arith.constant 0 : index
    %c0_120 = arith.constant 0 : index
    %152 = vector.load %arg5[%c7_118, %c0_119, %c0_120] : memref<9x4x8xf32, #tpu.memory_space<vmem>>, vector<1x4x8xf32>
    %153 = vector.shape_cast %152 : vector<1x4x8xf32> to vector<4x8xf32>
    %cst_121 = arith.constant dense<0.000000e+00> : vector<4x512xf32>
    %154 = tpu.matmul %153, %33, %cst_121 {dimension_numbers = #tpu.dot_dimension_numbers<[1], [0], [0], [1], [0, 0, 1, 1], [], []>} : vector<4x8xf32>, vector<8x512xf32>, vector<4x512xf32> -> vector<4x512xf32>
    %155 = arith.addf %151, %154 : vector<4x512xf32>
    %c8_122 = arith.constant 8 : index
    %c0_123 = arith.constant 0 : index
    %c0_124 = arith.constant 0 : index
    %156 = vector.load %arg5[%c8_122, %c0_123, %c0_124] : memref<9x4x8xf32, #tpu.memory_space<vmem>>, vector<1x4x8xf32>
    %157 = vector.shape_cast %156 : vector<1x4x8xf32> to vector<4x8xf32>
    %cst_125 = arith.constant 0.000000e+00 : f32
    %158 = vector.broadcast %cst_125 : f32 to vector<8x1xf32>
    %159 = vector.extract_strided_slice %25 {offsets = [0, 1], sizes = [8, 511], strides = [1, 1]} : vector<8x512xf32> to vector<8x511xf32>
    %160 = tpu.concatenate %159, %158 in 1 : vector<8x511xf32>, vector<8x1xf32> -> vector<8x512xf32>
    %c5_126 = arith.constant 5 : index
    %c0_127 = arith.constant 0 : index
    %c0_128 = arith.constant 0 : index
    %161 = vector.load %arg13[%c5_126, %c0_127, %c0_128] : memref<9x1x512xf32, #tpu.memory_space<vmem>>, vector<1x1x512xf32>
    %162 = vector.shape_cast %161 : vector<1x1x512xf32> to vector<1x512xf32>
    %163 = vector.broadcast %162 : vector<1x512xf32> to vector<8x512xf32>
    %164 = arith.mulf %160, %163 : vector<8x512xf32>
    %cst_129 = arith.constant dense<0.000000e+00> : vector<4x512xf32>
    %165 = tpu.matmul %157, %164, %cst_129 {dimension_numbers = #tpu.dot_dimension_numbers<[1], [0], [0], [1], [0, 0, 1, 1], [], []>} : vector<4x8xf32>, vector<8x512xf32>, vector<4x512xf32> -> vector<4x512xf32>
    %166 = arith.addf %155, %165 : vector<4x512xf32>
    %167 = vector.broadcast %34 : vector<4x1xf32> to vector<4x512xf32>
    %168 = arith.addf %166, %167 : vector<4x512xf32>
    %cst_130 = arith.constant 0.000000e+00 : f32
    %169 = vector.broadcast %cst_130 : f32 to vector<4x512xf32>
    %c0_131 = arith.constant 0 : index
    %c0_132 = arith.constant 0 : index
    %c0_133 = arith.constant 0 : index
    %170 = vector.load %arg5[%c0_131, %c0_132, %c0_133] : memref<9x4x8xf32, #tpu.memory_space<vmem>>, vector<1x4x8xf32>
    %171 = vector.shape_cast %170 : vector<1x4x8xf32> to vector<4x8xf32>
    %cst_134 = arith.constant dense<0.000000e+00> : vector<4x512xf32>
    %172 = tpu.matmul %171, %77, %cst_134 {dimension_numbers = #tpu.dot_dimension_numbers<[1], [0], [0], [1], [0, 0, 1, 1], [], []>} : vector<4x8xf32>, vector<8x512xf32>, vector<4x512xf32> -> vector<4x512xf32>
    %173 = arith.addf %169, %172 : vector<4x512xf32>
    %c1_135 = arith.constant 1 : index
    %c0_136 = arith.constant 0 : index
    %c0_137 = arith.constant 0 : index
    %174 = vector.load %arg5[%c1_135, %c0_136, %c0_137] : memref<9x4x8xf32, #tpu.memory_space<vmem>>, vector<1x4x8xf32>
    %175 = vector.shape_cast %174 : vector<1x4x8xf32> to vector<4x8xf32>
    %cst_138 = arith.constant dense<0.000000e+00> : vector<4x512xf32>
    %176 = tpu.matmul %175, %9, %cst_138 {dimension_numbers = #tpu.dot_dimension_numbers<[1], [0], [0], [1], [0, 0, 1, 1], [], []>} : vector<4x8xf32>, vector<8x512xf32>, vector<4x512xf32> -> vector<4x512xf32>
    %177 = arith.addf %173, %176 : vector<4x512xf32>
    %c2_139 = arith.constant 2 : index
    %c0_140 = arith.constant 0 : index
    %c0_141 = arith.constant 0 : index
    %178 = vector.load %arg5[%c2_139, %c0_140, %c0_141] : memref<9x4x8xf32, #tpu.memory_space<vmem>>, vector<1x4x8xf32>
    %179 = vector.shape_cast %178 : vector<1x4x8xf32> to vector<4x8xf32>
    %cst_142 = arith.constant dense<0.000000e+00> : vector<4x512xf32>
    %180 = tpu.matmul %179, %17, %cst_142 {dimension_numbers = #tpu.dot_dimension_numbers<[1], [0], [0], [1], [0, 0, 1, 1], [], []>} : vector<4x8xf32>, vector<8x512xf32>, vector<4x512xf32> -> vector<4x512xf32>
    %181 = arith.addf %177, %180 : vector<4x512xf32>
    %c3_143 = arith.constant 3 : index
    %c0_144 = arith.constant 0 : index
    %c0_145 = arith.constant 0 : index
    %182 = vector.load %arg5[%c3_143, %c0_144, %c0_145] : memref<9x4x8xf32, #tpu.memory_space<vmem>>, vector<1x4x8xf32>
    %183 = vector.shape_cast %182 : vector<1x4x8xf32> to vector<4x8xf32>
    %cst_146 = arith.constant dense<0.000000e+00> : vector<4x512xf32>
    %184 = tpu.matmul %183, %96, %cst_146 {dimension_numbers = #tpu.dot_dimension_numbers<[1], [0], [0], [1], [0, 0, 1, 1], [], []>} : vector<4x8xf32>, vector<8x512xf32>, vector<4x512xf32> -> vector<4x512xf32>
    %185 = arith.addf %181, %184 : vector<4x512xf32>
    %c4_147 = arith.constant 4 : index
    %c0_148 = arith.constant 0 : index
    %c0_149 = arith.constant 0 : index
    %186 = vector.load %arg5[%c4_147, %c0_148, %c0_149] : memref<9x4x8xf32, #tpu.memory_space<vmem>>, vector<1x4x8xf32>
    %187 = vector.shape_cast %186 : vector<1x4x8xf32> to vector<4x8xf32>
    %cst_150 = arith.constant dense<0.000000e+00> : vector<4x512xf32>
    %188 = tpu.matmul %187, %25, %cst_150 {dimension_numbers = #tpu.dot_dimension_numbers<[1], [0], [0], [1], [0, 0, 1, 1], [], []>} : vector<4x8xf32>, vector<8x512xf32>, vector<4x512xf32> -> vector<4x512xf32>
    %189 = arith.addf %185, %188 : vector<4x512xf32>
    %c5_151 = arith.constant 5 : index
    %c0_152 = arith.constant 0 : index
    %c0_153 = arith.constant 0 : index
    %190 = vector.load %arg5[%c5_151, %c0_152, %c0_153] : memref<9x4x8xf32, #tpu.memory_space<vmem>>, vector<1x4x8xf32>
    %191 = vector.shape_cast %190 : vector<1x4x8xf32> to vector<4x8xf32>
    %cst_154 = arith.constant dense<0.000000e+00> : vector<4x512xf32>
    %192 = tpu.matmul %191, %33, %cst_154 {dimension_numbers = #tpu.dot_dimension_numbers<[1], [0], [0], [1], [0, 0, 1, 1], [], []>} : vector<4x8xf32>, vector<8x512xf32>, vector<4x512xf32> -> vector<4x512xf32>
    %193 = arith.addf %189, %192 : vector<4x512xf32>
    %c6_155 = arith.constant 6 : index
    %c0_156 = arith.constant 0 : index
    %c0_157 = arith.constant 0 : index
    %194 = vector.load %arg5[%c6_155, %c0_156, %c0_157] : memref<9x4x8xf32, #tpu.memory_space<vmem>>, vector<1x4x8xf32>
    %195 = vector.shape_cast %194 : vector<1x4x8xf32> to vector<4x8xf32>
    %cst_158 = arith.constant 0.000000e+00 : f32
    %196 = vector.broadcast %cst_158 : f32 to vector<8x15xf32>
    %197 = vector.extract_strided_slice %17 {offsets = [0, 15], sizes = [8, 497], strides = [1, 1]} : vector<8x512xf32> to vector<8x497xf32>
    %198 = tpu.concatenate %197, %196 in 1 : vector<8x497xf32>, vector<8x15xf32> -> vector<8x512xf32>
    %c6_159 = arith.constant 6 : index
    %c0_160 = arith.constant 0 : index
    %c0_161 = arith.constant 0 : index
    %199 = vector.load %arg13[%c6_159, %c0_160, %c0_161] : memref<9x1x512xf32, #tpu.memory_space<vmem>>, vector<1x1x512xf32>
    %200 = vector.shape_cast %199 : vector<1x1x512xf32> to vector<1x512xf32>
    %201 = vector.broadcast %200 : vector<1x512xf32> to vector<8x512xf32>
    %202 = arith.mulf %198, %201 : vector<8x512xf32>
    %cst_162 = arith.constant dense<0.000000e+00> : vector<4x512xf32>
    %203 = tpu.matmul %195, %202, %cst_162 {dimension_numbers = #tpu.dot_dimension_numbers<[1], [0], [0], [1], [0, 0, 1, 1], [], []>} : vector<4x8xf32>, vector<8x512xf32>, vector<4x512xf32> -> vector<4x512xf32>
    %204 = arith.addf %193, %203 : vector<4x512xf32>
    %c7_163 = arith.constant 7 : index
    %c0_164 = arith.constant 0 : index
    %c0_165 = arith.constant 0 : index
    %205 = vector.load %arg5[%c7_163, %c0_164, %c0_165] : memref<9x4x8xf32, #tpu.memory_space<vmem>>, vector<1x4x8xf32>
    %206 = vector.shape_cast %205 : vector<1x4x8xf32> to vector<4x8xf32>
    %cst_166 = arith.constant 0.000000e+00 : f32
    %207 = vector.broadcast %cst_166 : f32 to vector<8x16xf32>
    %208 = vector.extract_strided_slice %9 {offsets = [0, 16], sizes = [8, 496], strides = [1, 1]} : vector<8x512xf32> to vector<8x496xf32>
    %209 = tpu.concatenate %208, %207 in 1 : vector<8x496xf32>, vector<8x16xf32> -> vector<8x512xf32>
    %c7_167 = arith.constant 7 : index
    %c0_168 = arith.constant 0 : index
    %c0_169 = arith.constant 0 : index
    %210 = vector.load %arg13[%c7_167, %c0_168, %c0_169] : memref<9x1x512xf32, #tpu.memory_space<vmem>>, vector<1x1x512xf32>
    %211 = vector.shape_cast %210 : vector<1x1x512xf32> to vector<1x512xf32>
    %212 = vector.broadcast %211 : vector<1x512xf32> to vector<8x512xf32>
    %213 = arith.mulf %209, %212 : vector<8x512xf32>
    %cst_170 = arith.constant dense<0.000000e+00> : vector<4x512xf32>
    %214 = tpu.matmul %206, %213, %cst_170 {dimension_numbers = #tpu.dot_dimension_numbers<[1], [0], [0], [1], [0, 0, 1, 1], [], []>} : vector<4x8xf32>, vector<8x512xf32>, vector<4x512xf32> -> vector<4x512xf32>
    %215 = arith.addf %204, %214 : vector<4x512xf32>
    %c8_171 = arith.constant 8 : index
    %c0_172 = arith.constant 0 : index
    %c0_173 = arith.constant 0 : index
    %216 = vector.load %arg5[%c8_171, %c0_172, %c0_173] : memref<9x4x8xf32, #tpu.memory_space<vmem>>, vector<1x4x8xf32>
    %217 = vector.shape_cast %216 : vector<1x4x8xf32> to vector<4x8xf32>
    %cst_174 = arith.constant 0.000000e+00 : f32
    %218 = vector.broadcast %cst_174 : f32 to vector<8x16xf32>
    %219 = vector.extract_strided_slice %17 {offsets = [0, 16], sizes = [8, 496], strides = [1, 1]} : vector<8x512xf32> to vector<8x496xf32>
    %220 = tpu.concatenate %219, %218 in 1 : vector<8x496xf32>, vector<8x16xf32> -> vector<8x512xf32>
    %c7_175 = arith.constant 7 : index
    %c0_176 = arith.constant 0 : index
    %c0_177 = arith.constant 0 : index
    %221 = vector.load %arg13[%c7_175, %c0_176, %c0_177] : memref<9x1x512xf32, #tpu.memory_space<vmem>>, vector<1x1x512xf32>
    %222 = vector.shape_cast %221 : vector<1x1x512xf32> to vector<1x512xf32>
    %223 = vector.broadcast %222 : vector<1x512xf32> to vector<8x512xf32>
    %224 = arith.mulf %220, %223 : vector<8x512xf32>
    %cst_178 = arith.constant dense<0.000000e+00> : vector<4x512xf32>
    %225 = tpu.matmul %217, %224, %cst_178 {dimension_numbers = #tpu.dot_dimension_numbers<[1], [0], [0], [1], [0, 0, 1, 1], [], []>} : vector<4x8xf32>, vector<8x512xf32>, vector<4x512xf32> -> vector<4x512xf32>
    %226 = arith.addf %215, %225 : vector<4x512xf32>
    %227 = vector.broadcast %34 : vector<4x1xf32> to vector<4x512xf32>
    %228 = arith.addf %226, %227 : vector<4x512xf32>
    %cst_179 = arith.constant 0.000000e+00 : f32
    %229 = vector.broadcast %cst_179 : f32 to vector<4x512xf32>
    %c0_180 = arith.constant 0 : index
    %c0_181 = arith.constant 0 : index
    %c0_182 = arith.constant 0 : index
    %230 = vector.load %arg5[%c0_180, %c0_181, %c0_182] : memref<9x4x8xf32, #tpu.memory_space<vmem>>, vector<1x4x8xf32>
    %231 = vector.shape_cast %230 : vector<1x4x8xf32> to vector<4x8xf32>
    %cst_183 = arith.constant dense<0.000000e+00> : vector<4x512xf32>
    %232 = tpu.matmul %231, %9, %cst_183 {dimension_numbers = #tpu.dot_dimension_numbers<[1], [0], [0], [1], [0, 0, 1, 1], [], []>} : vector<4x8xf32>, vector<8x512xf32>, vector<4x512xf32> -> vector<4x512xf32>
    %233 = arith.addf %229, %232 : vector<4x512xf32>
    %c1_184 = arith.constant 1 : index
    %c0_185 = arith.constant 0 : index
    %c0_186 = arith.constant 0 : index
    %234 = vector.load %arg5[%c1_184, %c0_185, %c0_186] : memref<9x4x8xf32, #tpu.memory_space<vmem>>, vector<1x4x8xf32>
    %235 = vector.shape_cast %234 : vector<1x4x8xf32> to vector<4x8xf32>
    %cst_187 = arith.constant dense<0.000000e+00> : vector<4x512xf32>
    %236 = tpu.matmul %235, %17, %cst_187 {dimension_numbers = #tpu.dot_dimension_numbers<[1], [0], [0], [1], [0, 0, 1, 1], [], []>} : vector<4x8xf32>, vector<8x512xf32>, vector<4x512xf32> -> vector<4x512xf32>
    %237 = arith.addf %233, %236 : vector<4x512xf32>
    %c2_188 = arith.constant 2 : index
    %c0_189 = arith.constant 0 : index
    %c0_190 = arith.constant 0 : index
    %238 = vector.load %arg5[%c2_188, %c0_189, %c0_190] : memref<9x4x8xf32, #tpu.memory_space<vmem>>, vector<1x4x8xf32>
    %239 = vector.shape_cast %238 : vector<1x4x8xf32> to vector<4x8xf32>
    %cst_191 = arith.constant dense<0.000000e+00> : vector<4x512xf32>
    %240 = tpu.matmul %239, %145, %cst_191 {dimension_numbers = #tpu.dot_dimension_numbers<[1], [0], [0], [1], [0, 0, 1, 1], [], []>} : vector<4x8xf32>, vector<8x512xf32>, vector<4x512xf32> -> vector<4x512xf32>
    %241 = arith.addf %237, %240 : vector<4x512xf32>
    %c3_192 = arith.constant 3 : index
    %c0_193 = arith.constant 0 : index
    %c0_194 = arith.constant 0 : index
    %242 = vector.load %arg5[%c3_192, %c0_193, %c0_194] : memref<9x4x8xf32, #tpu.memory_space<vmem>>, vector<1x4x8xf32>
    %243 = vector.shape_cast %242 : vector<1x4x8xf32> to vector<4x8xf32>
    %cst_195 = arith.constant dense<0.000000e+00> : vector<4x512xf32>
    %244 = tpu.matmul %243, %25, %cst_195 {dimension_numbers = #tpu.dot_dimension_numbers<[1], [0], [0], [1], [0, 0, 1, 1], [], []>} : vector<4x8xf32>, vector<8x512xf32>, vector<4x512xf32> -> vector<4x512xf32>
    %245 = arith.addf %241, %244 : vector<4x512xf32>
    %c4_196 = arith.constant 4 : index
    %c0_197 = arith.constant 0 : index
    %c0_198 = arith.constant 0 : index
    %246 = vector.load %arg5[%c4_196, %c0_197, %c0_198] : memref<9x4x8xf32, #tpu.memory_space<vmem>>, vector<1x4x8xf32>
    %247 = vector.shape_cast %246 : vector<1x4x8xf32> to vector<4x8xf32>
    %cst_199 = arith.constant dense<0.000000e+00> : vector<4x512xf32>
    %248 = tpu.matmul %247, %33, %cst_199 {dimension_numbers = #tpu.dot_dimension_numbers<[1], [0], [0], [1], [0, 0, 1, 1], [], []>} : vector<4x8xf32>, vector<8x512xf32>, vector<4x512xf32> -> vector<4x512xf32>
    %249 = arith.addf %245, %248 : vector<4x512xf32>
    %c5_200 = arith.constant 5 : index
    %c0_201 = arith.constant 0 : index
    %c0_202 = arith.constant 0 : index
    %250 = vector.load %arg5[%c5_200, %c0_201, %c0_202] : memref<9x4x8xf32, #tpu.memory_space<vmem>>, vector<1x4x8xf32>
    %251 = vector.shape_cast %250 : vector<1x4x8xf32> to vector<4x8xf32>
    %cst_203 = arith.constant dense<0.000000e+00> : vector<4x512xf32>
    %252 = tpu.matmul %251, %164, %cst_203 {dimension_numbers = #tpu.dot_dimension_numbers<[1], [0], [0], [1], [0, 0, 1, 1], [], []>} : vector<4x8xf32>, vector<8x512xf32>, vector<4x512xf32> -> vector<4x512xf32>
    %253 = arith.addf %249, %252 : vector<4x512xf32>
    %c6_204 = arith.constant 6 : index
    %c0_205 = arith.constant 0 : index
    %c0_206 = arith.constant 0 : index
    %254 = vector.load %arg5[%c6_204, %c0_205, %c0_206] : memref<9x4x8xf32, #tpu.memory_space<vmem>>, vector<1x4x8xf32>
    %255 = vector.shape_cast %254 : vector<1x4x8xf32> to vector<4x8xf32>
    %cst_207 = arith.constant dense<0.000000e+00> : vector<4x512xf32>
    %256 = tpu.matmul %255, %213, %cst_207 {dimension_numbers = #tpu.dot_dimension_numbers<[1], [0], [0], [1], [0, 0, 1, 1], [], []>} : vector<4x8xf32>, vector<8x512xf32>, vector<4x512xf32> -> vector<4x512xf32>
    %257 = arith.addf %253, %256 : vector<4x512xf32>
    %c7_208 = arith.constant 7 : index
    %c0_209 = arith.constant 0 : index
    %c0_210 = arith.constant 0 : index
    %258 = vector.load %arg5[%c7_208, %c0_209, %c0_210] : memref<9x4x8xf32, #tpu.memory_space<vmem>>, vector<1x4x8xf32>
    %259 = vector.shape_cast %258 : vector<1x4x8xf32> to vector<4x8xf32>
    %cst_211 = arith.constant dense<0.000000e+00> : vector<4x512xf32>
    %260 = tpu.matmul %259, %224, %cst_211 {dimension_numbers = #tpu.dot_dimension_numbers<[1], [0], [0], [1], [0, 0, 1, 1], [], []>} : vector<4x8xf32>, vector<8x512xf32>, vector<4x512xf32> -> vector<4x512xf32>
    %261 = arith.addf %257, %260 : vector<4x512xf32>
    %c8_212 = arith.constant 8 : index
    %c0_213 = arith.constant 0 : index
    %c0_214 = arith.constant 0 : index
    %262 = vector.load %arg5[%c8_212, %c0_213, %c0_214] : memref<9x4x8xf32, #tpu.memory_space<vmem>>, vector<1x4x8xf32>
    %263 = vector.shape_cast %262 : vector<1x4x8xf32> to vector<4x8xf32>
    %cst_215 = arith.constant 0.000000e+00 : f32
    %264 = vector.broadcast %cst_215 : f32 to vector<8x17xf32>
    %265 = vector.extract_strided_slice %9 {offsets = [0, 17], sizes = [8, 495], strides = [1, 1]} : vector<8x512xf32> to vector<8x495xf32>
    %266 = tpu.concatenate %265, %264 in 1 : vector<8x495xf32>, vector<8x17xf32> -> vector<8x512xf32>
    %c8_216 = arith.constant 8 : index
    %c0_217 = arith.constant 0 : index
    %c0_218 = arith.constant 0 : index
    %267 = vector.load %arg13[%c8_216, %c0_217, %c0_218] : memref<9x1x512xf32, #tpu.memory_space<vmem>>, vector<1x1x512xf32>
    %268 = vector.shape_cast %267 : vector<1x1x512xf32> to vector<1x512xf32>
    %269 = vector.broadcast %268 : vector<1x512xf32> to vector<8x512xf32>
    %270 = arith.mulf %266, %269 : vector<8x512xf32>
    %cst_219 = arith.constant dense<0.000000e+00> : vector<4x512xf32>
    %271 = tpu.matmul %263, %270, %cst_219 {dimension_numbers = #tpu.dot_dimension_numbers<[1], [0], [0], [1], [0, 0, 1, 1], [], []>} : vector<4x8xf32>, vector<8x512xf32>, vector<4x512xf32> -> vector<4x512xf32>
    %272 = arith.addf %261, %271 : vector<4x512xf32>
    %273 = vector.broadcast %34 : vector<4x1xf32> to vector<4x512xf32>
    %274 = arith.addf %272, %273 : vector<4x512xf32>
    %cst_220 = arith.constant 0.000000e+00 : f32
    %275 = vector.broadcast %cst_220 : f32 to vector<4x1xf32>
    %cst_221 = arith.constant dense<0.000000e+00> : vector<4xf32>
    %276 = vector.multi_reduction <add>, %108, %cst_221 [1] : vector<4x512xf32> to vector<4xf32>
    %277 = vector.shape_cast %276 : vector<4xf32> to vector<4x1xf32>
    %278 = arith.addf %275, %277 : vector<4x1xf32>
    %cst_222 = arith.constant dense<0.000000e+00> : vector<4xf32>
    %279 = vector.multi_reduction <add>, %168, %cst_222 [1] : vector<4x512xf32> to vector<4xf32>
    %280 = vector.shape_cast %279 : vector<4xf32> to vector<4x1xf32>
    %281 = arith.addf %278, %280 : vector<4x1xf32>
    %cst_223 = arith.constant dense<0.000000e+00> : vector<4xf32>
    %282 = vector.multi_reduction <add>, %228, %cst_223 [1] : vector<4x512xf32> to vector<4xf32>
    %283 = vector.shape_cast %282 : vector<4xf32> to vector<4x1xf32>
    %284 = arith.addf %281, %283 : vector<4x1xf32>
    %cst_224 = arith.constant dense<0.000000e+00> : vector<4xf32>
    %285 = vector.multi_reduction <add>, %274, %cst_224 [1] : vector<4x512xf32> to vector<4xf32>
    %286 = vector.shape_cast %285 : vector<4xf32> to vector<4x1xf32>
    %287 = arith.addf %284, %286 : vector<4x1xf32>
    %cst_225 = arith.constant 4.8828125E-4 : f32
    %288 = vector.broadcast %cst_225 : f32 to vector<4x1xf32>
    %289 = arith.mulf %287, %288 : vector<4x1xf32>
    %cst_226 = arith.constant 0.000000e+00 : f32
    %290 = vector.broadcast %cst_226 : f32 to vector<4x1xf32>
    %291 = vector.broadcast %289 : vector<4x1xf32> to vector<4x512xf32>
    %292 = arith.subf %108, %291 : vector<4x512xf32>
    %293 = arith.mulf %292, %292 : vector<4x512xf32>
    %cst_227 = arith.constant dense<0.000000e+00> : vector<4xf32>
    %294 = vector.multi_reduction <add>, %293, %cst_227 [1] : vector<4x512xf32> to vector<4xf32>
    %295 = vector.shape_cast %294 : vector<4xf32> to vector<4x1xf32>
    %296 = arith.addf %290, %295 : vector<4x1xf32>
    %297 = vector.broadcast %289 : vector<4x1xf32> to vector<4x512xf32>
    %298 = arith.subf %168, %297 : vector<4x512xf32>
    %299 = arith.mulf %298, %298 : vector<4x512xf32>
    %cst_228 = arith.constant dense<0.000000e+00> : vector<4xf32>
    %300 = vector.multi_reduction <add>, %299, %cst_228 [1] : vector<4x512xf32> to vector<4xf32>
    %301 = vector.shape_cast %300 : vector<4xf32> to vector<4x1xf32>
    %302 = arith.addf %296, %301 : vector<4x1xf32>
    %303 = vector.broadcast %289 : vector<4x1xf32> to vector<4x512xf32>
    %304 = arith.subf %228, %303 : vector<4x512xf32>
    %305 = arith.mulf %304, %304 : vector<4x512xf32>
    %cst_229 = arith.constant dense<0.000000e+00> : vector<4xf32>
    %306 = vector.multi_reduction <add>, %305, %cst_229 [1] : vector<4x512xf32> to vector<4xf32>
    %307 = vector.shape_cast %306 : vector<4xf32> to vector<4x1xf32>
    %308 = arith.addf %302, %307 : vector<4x1xf32>
    %309 = vector.broadcast %289 : vector<4x1xf32> to vector<4x512xf32>
    %310 = arith.subf %274, %309 : vector<4x512xf32>
    %311 = arith.mulf %310, %310 : vector<4x512xf32>
    %cst_230 = arith.constant dense<0.000000e+00> : vector<4xf32>
    %312 = vector.multi_reduction <add>, %311, %cst_230 [1] : vector<4x512xf32> to vector<4xf32>
    %313 = vector.shape_cast %312 : vector<4xf32> to vector<4x1xf32>
    %314 = arith.addf %308, %313 : vector<4x1xf32>
    %c0_231 = arith.constant 0 : index
    %c0_232 = arith.constant 0 : index
    %315 = vector.load %arg7[%c0_231, %c0_232] : memref<4x1xf32, #tpu.memory_space<vmem>>, vector<4x1xf32>
    %cst_233 = arith.constant 4.8828125E-4 : f32
    %316 = vector.broadcast %cst_233 : f32 to vector<4x1xf32>
    %317 = arith.mulf %314, %316 : vector<4x1xf32>
    %cst_234 = arith.constant 9.99999974E-6 : f32
    %318 = vector.broadcast %cst_234 : f32 to vector<4x1xf32>
    %319 = arith.addf %317, %318 : vector<4x1xf32>
    %320 = math.rsqrt %319 : vector<4x1xf32>
    %321 = arith.mulf %315, %320 : vector<4x1xf32>
    %c0_235 = arith.constant 0 : index
    %c0_236 = arith.constant 0 : index
    %322 = vector.load %arg8[%c0_235, %c0_236] : memref<4x1xf32, #tpu.memory_space<vmem>>, vector<4x1xf32>
    %323 = arith.mulf %289, %321 : vector<4x1xf32>
    %324 = arith.subf %322, %323 : vector<4x1xf32>
    %325 = vector.broadcast %321 : vector<4x1xf32> to vector<4x512xf32>
    %326 = arith.mulf %108, %325 : vector<4x512xf32>
    %327 = vector.broadcast %324 : vector<4x1xf32> to vector<4x512xf32>
    %328 = arith.addf %326, %327 : vector<4x512xf32>
    %cst_237 = arith.constant 0.000000e+00 : f32
    %329 = vector.broadcast %cst_237 : f32 to vector<4x512xf32>
    %330 = arith.maximumf %328, %329 : vector<4x512xf32>
    %331 = vector.broadcast %321 : vector<4x1xf32> to vector<4x512xf32>
    %332 = arith.mulf %168, %331 : vector<4x512xf32>
    %333 = vector.broadcast %324 : vector<4x1xf32> to vector<4x512xf32>
    %334 = arith.addf %332, %333 : vector<4x512xf32>
    %cst_238 = arith.constant 0.000000e+00 : f32
    %335 = vector.broadcast %cst_238 : f32 to vector<4x512xf32>
    %336 = arith.maximumf %334, %335 : vector<4x512xf32>
    %337 = vector.broadcast %321 : vector<4x1xf32> to vector<4x512xf32>
    %338 = arith.mulf %228, %337 : vector<4x512xf32>
    %339 = vector.broadcast %324 : vector<4x1xf32> to vector<4x512xf32>
    %340 = arith.addf %338, %339 : vector<4x512xf32>
    %cst_239 = arith.constant 0.000000e+00 : f32
    %341 = vector.broadcast %cst_239 : f32 to vector<4x512xf32>
    %342 = arith.maximumf %340, %341 : vector<4x512xf32>
    %343 = vector.broadcast %321 : vector<4x1xf32> to vector<4x512xf32>
    %344 = arith.mulf %274, %343 : vector<4x512xf32>
    %345 = vector.broadcast %324 : vector<4x1xf32> to vector<4x512xf32>
    %346 = arith.addf %344, %345 : vector<4x512xf32>
    %cst_240 = arith.constant 0.000000e+00 : f32
    %347 = vector.broadcast %cst_240 : f32 to vector<4x512xf32>
    %348 = arith.maximumf %346, %347 : vector<4x512xf32>
    %c0_241 = arith.constant 0 : index
    %c0_242 = arith.constant 0 : index
    %349 = vector.load %arg10[%c0_241, %c0_242] : memref<4x1xf32, #tpu.memory_space<vmem>>, vector<4x1xf32>
    %cst_243 = arith.constant 0.000000e+00 : f32
    %350 = vector.broadcast %cst_243 : f32 to vector<4x512xf32>
    %c0_244 = arith.constant 0 : index
    %c0_245 = arith.constant 0 : index
    %c0_246 = arith.constant 0 : index
    %351 = vector.load %arg9[%c0_244, %c0_245, %c0_246] : memref<9x4x4xf32, #tpu.memory_space<vmem>>, vector<1x4x4xf32>
    %352 = vector.shape_cast %351 : vector<1x4x4xf32> to vector<4x4xf32>
    %cst_247 = arith.constant 0.000000e+00 : f32
    %353 = vector.broadcast %cst_247 : f32 to vector<4x17xf32>
    %354 = vector.extract_strided_slice %348 {offsets = [0, 0], sizes = [4, 495], strides = [1, 1]} : vector<4x512xf32> to vector<4x495xf32>
    %355 = tpu.concatenate %353, %354 in 1 : vector<4x17xf32>, vector<4x495xf32> -> vector<4x512xf32>
    %c0_248 = arith.constant 0 : index
    %c0_249 = arith.constant 0 : index
    %c0_250 = arith.constant 0 : index
    %356 = vector.load %arg13[%c0_248, %c0_249, %c0_250] : memref<9x1x512xf32, #tpu.memory_space<vmem>>, vector<1x1x512xf32>
    %357 = vector.shape_cast %356 : vector<1x1x512xf32> to vector<1x512xf32>
    %358 = vector.broadcast %357 : vector<1x512xf32> to vector<4x512xf32>
    %359 = arith.mulf %355, %358 : vector<4x512xf32>
    %cst_251 = arith.constant dense<0.000000e+00> : vector<4x512xf32>
    %360 = tpu.matmul %352, %359, %cst_251 {dimension_numbers = #tpu.dot_dimension_numbers<[1], [0], [0], [1], [0, 0, 1, 1], [], []>} : vector<4x4xf32>, vector<4x512xf32>, vector<4x512xf32> -> vector<4x512xf32>
    %361 = arith.addf %350, %360 : vector<4x512xf32>
    %c1_252 = arith.constant 1 : index
    %c0_253 = arith.constant 0 : index
    %c0_254 = arith.constant 0 : index
    %362 = vector.load %arg9[%c1_252, %c0_253, %c0_254] : memref<9x4x4xf32, #tpu.memory_space<vmem>>, vector<1x4x4xf32>
    %363 = vector.shape_cast %362 : vector<1x4x4xf32> to vector<4x4xf32>
    %cst_255 = arith.constant 0.000000e+00 : f32
    %364 = vector.broadcast %cst_255 : f32 to vector<4x16xf32>
    %365 = vector.extract_strided_slice %342 {offsets = [0, 0], sizes = [4, 496], strides = [1, 1]} : vector<4x512xf32> to vector<4x496xf32>
    %366 = tpu.concatenate %364, %365 in 1 : vector<4x16xf32>, vector<4x496xf32> -> vector<4x512xf32>
    %c1_256 = arith.constant 1 : index
    %c0_257 = arith.constant 0 : index
    %c0_258 = arith.constant 0 : index
    %367 = vector.load %arg13[%c1_256, %c0_257, %c0_258] : memref<9x1x512xf32, #tpu.memory_space<vmem>>, vector<1x1x512xf32>
    %368 = vector.shape_cast %367 : vector<1x1x512xf32> to vector<1x512xf32>
    %369 = vector.broadcast %368 : vector<1x512xf32> to vector<4x512xf32>
    %370 = arith.mulf %366, %369 : vector<4x512xf32>
    %cst_259 = arith.constant dense<0.000000e+00> : vector<4x512xf32>
    %371 = tpu.matmul %363, %370, %cst_259 {dimension_numbers = #tpu.dot_dimension_numbers<[1], [0], [0], [1], [0, 0, 1, 1], [], []>} : vector<4x4xf32>, vector<4x512xf32>, vector<4x512xf32> -> vector<4x512xf32>
    %372 = arith.addf %361, %371 : vector<4x512xf32>
    %c2_260 = arith.constant 2 : index
    %c0_261 = arith.constant 0 : index
    %c0_262 = arith.constant 0 : index
    %373 = vector.load %arg9[%c2_260, %c0_261, %c0_262] : memref<9x4x4xf32, #tpu.memory_space<vmem>>, vector<1x4x4xf32>
    %374 = vector.shape_cast %373 : vector<1x4x4xf32> to vector<4x4xf32>
    %cst_263 = arith.constant 0.000000e+00 : f32
    %375 = vector.broadcast %cst_263 : f32 to vector<4x16xf32>
    %376 = vector.extract_strided_slice %348 {offsets = [0, 0], sizes = [4, 496], strides = [1, 1]} : vector<4x512xf32> to vector<4x496xf32>
    %377 = tpu.concatenate %375, %376 in 1 : vector<4x16xf32>, vector<4x496xf32> -> vector<4x512xf32>
    %c1_264 = arith.constant 1 : index
    %c0_265 = arith.constant 0 : index
    %c0_266 = arith.constant 0 : index
    %378 = vector.load %arg13[%c1_264, %c0_265, %c0_266] : memref<9x1x512xf32, #tpu.memory_space<vmem>>, vector<1x1x512xf32>
    %379 = vector.shape_cast %378 : vector<1x1x512xf32> to vector<1x512xf32>
    %380 = vector.broadcast %379 : vector<1x512xf32> to vector<4x512xf32>
    %381 = arith.mulf %377, %380 : vector<4x512xf32>
    %cst_267 = arith.constant dense<0.000000e+00> : vector<4x512xf32>
    %382 = tpu.matmul %374, %381, %cst_267 {dimension_numbers = #tpu.dot_dimension_numbers<[1], [0], [0], [1], [0, 0, 1, 1], [], []>} : vector<4x4xf32>, vector<4x512xf32>, vector<4x512xf32> -> vector<4x512xf32>
    %383 = arith.addf %372, %382 : vector<4x512xf32>
    %c3_268 = arith.constant 3 : index
    %c0_269 = arith.constant 0 : index
    %c0_270 = arith.constant 0 : index
    %384 = vector.load %arg9[%c3_268, %c0_269, %c0_270] : memref<9x4x4xf32, #tpu.memory_space<vmem>>, vector<1x4x4xf32>
    %385 = vector.shape_cast %384 : vector<1x4x4xf32> to vector<4x4xf32>
    %cst_271 = arith.constant 0.000000e+00 : f32
    %386 = vector.broadcast %cst_271 : f32 to vector<4x1xf32>
    %387 = vector.extract_strided_slice %336 {offsets = [0, 0], sizes = [4, 511], strides = [1, 1]} : vector<4x512xf32> to vector<4x511xf32>
    %388 = tpu.concatenate %386, %387 in 1 : vector<4x1xf32>, vector<4x511xf32> -> vector<4x512xf32>
    %c3_272 = arith.constant 3 : index
    %c0_273 = arith.constant 0 : index
    %c0_274 = arith.constant 0 : index
    %389 = vector.load %arg13[%c3_272, %c0_273, %c0_274] : memref<9x1x512xf32, #tpu.memory_space<vmem>>, vector<1x1x512xf32>
    %390 = vector.shape_cast %389 : vector<1x1x512xf32> to vector<1x512xf32>
    %391 = vector.broadcast %390 : vector<1x512xf32> to vector<4x512xf32>
    %392 = arith.mulf %388, %391 : vector<4x512xf32>
    %cst_275 = arith.constant dense<0.000000e+00> : vector<4x512xf32>
    %393 = tpu.matmul %385, %392, %cst_275 {dimension_numbers = #tpu.dot_dimension_numbers<[1], [0], [0], [1], [0, 0, 1, 1], [], []>} : vector<4x4xf32>, vector<4x512xf32>, vector<4x512xf32> -> vector<4x512xf32>
    %394 = arith.addf %383, %393 : vector<4x512xf32>
    %c4_276 = arith.constant 4 : index
    %c0_277 = arith.constant 0 : index
    %c0_278 = arith.constant 0 : index
    %395 = vector.load %arg9[%c4_276, %c0_277, %c0_278] : memref<9x4x4xf32, #tpu.memory_space<vmem>>, vector<1x4x4xf32>
    %396 = vector.shape_cast %395 : vector<1x4x4xf32> to vector<4x4xf32>
    %cst_279 = arith.constant dense<0.000000e+00> : vector<4x512xf32>
    %397 = tpu.matmul %396, %330, %cst_279 {dimension_numbers = #tpu.dot_dimension_numbers<[1], [0], [0], [1], [0, 0, 1, 1], [], []>} : vector<4x4xf32>, vector<4x512xf32>, vector<4x512xf32> -> vector<4x512xf32>
    %398 = arith.addf %394, %397 : vector<4x512xf32>
    %c5_280 = arith.constant 5 : index
    %c0_281 = arith.constant 0 : index
    %c0_282 = arith.constant 0 : index
    %399 = vector.load %arg9[%c5_280, %c0_281, %c0_282] : memref<9x4x4xf32, #tpu.memory_space<vmem>>, vector<1x4x4xf32>
    %400 = vector.shape_cast %399 : vector<1x4x4xf32> to vector<4x4xf32>
    %cst_283 = arith.constant dense<0.000000e+00> : vector<4x512xf32>
    %401 = tpu.matmul %400, %336, %cst_283 {dimension_numbers = #tpu.dot_dimension_numbers<[1], [0], [0], [1], [0, 0, 1, 1], [], []>} : vector<4x4xf32>, vector<4x512xf32>, vector<4x512xf32> -> vector<4x512xf32>
    %402 = arith.addf %398, %401 : vector<4x512xf32>
    %c6_284 = arith.constant 6 : index
    %c0_285 = arith.constant 0 : index
    %c0_286 = arith.constant 0 : index
    %403 = vector.load %arg9[%c6_284, %c0_285, %c0_286] : memref<9x4x4xf32, #tpu.memory_space<vmem>>, vector<1x4x4xf32>
    %404 = vector.shape_cast %403 : vector<1x4x4xf32> to vector<4x4xf32>
    %cst_287 = arith.constant 0.000000e+00 : f32
    %405 = vector.broadcast %cst_287 : f32 to vector<4x1xf32>
    %406 = vector.extract_strided_slice %348 {offsets = [0, 0], sizes = [4, 511], strides = [1, 1]} : vector<4x512xf32> to vector<4x511xf32>
    %407 = tpu.concatenate %405, %406 in 1 : vector<4x1xf32>, vector<4x511xf32> -> vector<4x512xf32>
    %c3_288 = arith.constant 3 : index
    %c0_289 = arith.constant 0 : index
    %c0_290 = arith.constant 0 : index
    %408 = vector.load %arg13[%c3_288, %c0_289, %c0_290] : memref<9x1x512xf32, #tpu.memory_space<vmem>>, vector<1x1x512xf32>
    %409 = vector.shape_cast %408 : vector<1x1x512xf32> to vector<1x512xf32>
    %410 = vector.broadcast %409 : vector<1x512xf32> to vector<4x512xf32>
    %411 = arith.mulf %407, %410 : vector<4x512xf32>
    %cst_291 = arith.constant dense<0.000000e+00> : vector<4x512xf32>
    %412 = tpu.matmul %404, %411, %cst_291 {dimension_numbers = #tpu.dot_dimension_numbers<[1], [0], [0], [1], [0, 0, 1, 1], [], []>} : vector<4x4xf32>, vector<4x512xf32>, vector<4x512xf32> -> vector<4x512xf32>
    %413 = arith.addf %402, %412 : vector<4x512xf32>
    %c7_292 = arith.constant 7 : index
    %c0_293 = arith.constant 0 : index
    %c0_294 = arith.constant 0 : index
    %414 = vector.load %arg9[%c7_292, %c0_293, %c0_294] : memref<9x4x4xf32, #tpu.memory_space<vmem>>, vector<1x4x4xf32>
    %415 = vector.shape_cast %414 : vector<1x4x4xf32> to vector<4x4xf32>
    %cst_295 = arith.constant dense<0.000000e+00> : vector<4x512xf32>
    %416 = tpu.matmul %415, %342, %cst_295 {dimension_numbers = #tpu.dot_dimension_numbers<[1], [0], [0], [1], [0, 0, 1, 1], [], []>} : vector<4x4xf32>, vector<4x512xf32>, vector<4x512xf32> -> vector<4x512xf32>
    %417 = arith.addf %413, %416 : vector<4x512xf32>
    %c8_296 = arith.constant 8 : index
    %c0_297 = arith.constant 0 : index
    %c0_298 = arith.constant 0 : index
    %418 = vector.load %arg9[%c8_296, %c0_297, %c0_298] : memref<9x4x4xf32, #tpu.memory_space<vmem>>, vector<1x4x4xf32>
    %419 = vector.shape_cast %418 : vector<1x4x4xf32> to vector<4x4xf32>
    %cst_299 = arith.constant dense<0.000000e+00> : vector<4x512xf32>
    %420 = tpu.matmul %419, %348, %cst_299 {dimension_numbers = #tpu.dot_dimension_numbers<[1], [0], [0], [1], [0, 0, 1, 1], [], []>} : vector<4x4xf32>, vector<4x512xf32>, vector<4x512xf32> -> vector<4x512xf32>
    %421 = arith.addf %417, %420 : vector<4x512xf32>
    %422 = vector.broadcast %349 : vector<4x1xf32> to vector<4x512xf32>
    %423 = arith.addf %421, %422 : vector<4x512xf32>
    %cst_300 = arith.constant 0.000000e+00 : f32
    %424 = vector.broadcast %cst_300 : f32 to vector<4x512xf32>
    %c0_301 = arith.constant 0 : index
    %c0_302 = arith.constant 0 : index
    %c0_303 = arith.constant 0 : index
    %425 = vector.load %arg9[%c0_301, %c0_302, %c0_303] : memref<9x4x4xf32, #tpu.memory_space<vmem>>, vector<1x4x4xf32>
    %426 = vector.shape_cast %425 : vector<1x4x4xf32> to vector<4x4xf32>
    %cst_304 = arith.constant dense<0.000000e+00> : vector<4x512xf32>
    %427 = tpu.matmul %426, %370, %cst_304 {dimension_numbers = #tpu.dot_dimension_numbers<[1], [0], [0], [1], [0, 0, 1, 1], [], []>} : vector<4x4xf32>, vector<4x512xf32>, vector<4x512xf32> -> vector<4x512xf32>
    %428 = arith.addf %424, %427 : vector<4x512xf32>
    %c1_305 = arith.constant 1 : index
    %c0_306 = arith.constant 0 : index
    %c0_307 = arith.constant 0 : index
    %429 = vector.load %arg9[%c1_305, %c0_306, %c0_307] : memref<9x4x4xf32, #tpu.memory_space<vmem>>, vector<1x4x4xf32>
    %430 = vector.shape_cast %429 : vector<1x4x4xf32> to vector<4x4xf32>
    %cst_308 = arith.constant dense<0.000000e+00> : vector<4x512xf32>
    %431 = tpu.matmul %430, %381, %cst_308 {dimension_numbers = #tpu.dot_dimension_numbers<[1], [0], [0], [1], [0, 0, 1, 1], [], []>} : vector<4x4xf32>, vector<4x512xf32>, vector<4x512xf32> -> vector<4x512xf32>
    %432 = arith.addf %428, %431 : vector<4x512xf32>
    %c2_309 = arith.constant 2 : index
    %c0_310 = arith.constant 0 : index
    %c0_311 = arith.constant 0 : index
    %433 = vector.load %arg9[%c2_309, %c0_310, %c0_311] : memref<9x4x4xf32, #tpu.memory_space<vmem>>, vector<1x4x4xf32>
    %434 = vector.shape_cast %433 : vector<1x4x4xf32> to vector<4x4xf32>
    %cst_312 = arith.constant 0.000000e+00 : f32
    %435 = vector.broadcast %cst_312 : f32 to vector<4x15xf32>
    %436 = vector.extract_strided_slice %342 {offsets = [0, 0], sizes = [4, 497], strides = [1, 1]} : vector<4x512xf32> to vector<4x497xf32>
    %437 = tpu.concatenate %435, %436 in 1 : vector<4x15xf32>, vector<4x497xf32> -> vector<4x512xf32>
    %c2_313 = arith.constant 2 : index
    %c0_314 = arith.constant 0 : index
    %c0_315 = arith.constant 0 : index
    %438 = vector.load %arg13[%c2_313, %c0_314, %c0_315] : memref<9x1x512xf32, #tpu.memory_space<vmem>>, vector<1x1x512xf32>
    %439 = vector.shape_cast %438 : vector<1x1x512xf32> to vector<1x512xf32>
    %440 = vector.broadcast %439 : vector<1x512xf32> to vector<4x512xf32>
    %441 = arith.mulf %437, %440 : vector<4x512xf32>
    %cst_316 = arith.constant dense<0.000000e+00> : vector<4x512xf32>
    %442 = tpu.matmul %434, %441, %cst_316 {dimension_numbers = #tpu.dot_dimension_numbers<[1], [0], [0], [1], [0, 0, 1, 1], [], []>} : vector<4x4xf32>, vector<4x512xf32>, vector<4x512xf32> -> vector<4x512xf32>
    %443 = arith.addf %432, %442 : vector<4x512xf32>
    %c3_317 = arith.constant 3 : index
    %c0_318 = arith.constant 0 : index
    %c0_319 = arith.constant 0 : index
    %444 = vector.load %arg9[%c3_317, %c0_318, %c0_319] : memref<9x4x4xf32, #tpu.memory_space<vmem>>, vector<1x4x4xf32>
    %445 = vector.shape_cast %444 : vector<1x4x4xf32> to vector<4x4xf32>
    %cst_320 = arith.constant dense<0.000000e+00> : vector<4x512xf32>
    %446 = tpu.matmul %445, %330, %cst_320 {dimension_numbers = #tpu.dot_dimension_numbers<[1], [0], [0], [1], [0, 0, 1, 1], [], []>} : vector<4x4xf32>, vector<4x512xf32>, vector<4x512xf32> -> vector<4x512xf32>
    %447 = arith.addf %443, %446 : vector<4x512xf32>
    %c4_321 = arith.constant 4 : index
    %c0_322 = arith.constant 0 : index
    %c0_323 = arith.constant 0 : index
    %448 = vector.load %arg9[%c4_321, %c0_322, %c0_323] : memref<9x4x4xf32, #tpu.memory_space<vmem>>, vector<1x4x4xf32>
    %449 = vector.shape_cast %448 : vector<1x4x4xf32> to vector<4x4xf32>
    %cst_324 = arith.constant dense<0.000000e+00> : vector<4x512xf32>
    %450 = tpu.matmul %449, %336, %cst_324 {dimension_numbers = #tpu.dot_dimension_numbers<[1], [0], [0], [1], [0, 0, 1, 1], [], []>} : vector<4x4xf32>, vector<4x512xf32>, vector<4x512xf32> -> vector<4x512xf32>
    %451 = arith.addf %447, %450 : vector<4x512xf32>
    %c5_325 = arith.constant 5 : index
    %c0_326 = arith.constant 0 : index
    %c0_327 = arith.constant 0 : index
    %452 = vector.load %arg9[%c5_325, %c0_326, %c0_327] : memref<9x4x4xf32, #tpu.memory_space<vmem>>, vector<1x4x4xf32>
    %453 = vector.shape_cast %452 : vector<1x4x4xf32> to vector<4x4xf32>
    %cst_328 = arith.constant 0.000000e+00 : f32
    %454 = vector.broadcast %cst_328 : f32 to vector<4x1xf32>
    %455 = vector.extract_strided_slice %330 {offsets = [0, 1], sizes = [4, 511], strides = [1, 1]} : vector<4x512xf32> to vector<4x511xf32>
    %456 = tpu.concatenate %455, %454 in 1 : vector<4x511xf32>, vector<4x1xf32> -> vector<4x512xf32>
    %c5_329 = arith.constant 5 : index
    %c0_330 = arith.constant 0 : index
    %c0_331 = arith.constant 0 : index
    %457 = vector.load %arg13[%c5_329, %c0_330, %c0_331] : memref<9x1x512xf32, #tpu.memory_space<vmem>>, vector<1x1x512xf32>
    %458 = vector.shape_cast %457 : vector<1x1x512xf32> to vector<1x512xf32>
    %459 = vector.broadcast %458 : vector<1x512xf32> to vector<4x512xf32>
    %460 = arith.mulf %456, %459 : vector<4x512xf32>
    %cst_332 = arith.constant dense<0.000000e+00> : vector<4x512xf32>
    %461 = tpu.matmul %453, %460, %cst_332 {dimension_numbers = #tpu.dot_dimension_numbers<[1], [0], [0], [1], [0, 0, 1, 1], [], []>} : vector<4x4xf32>, vector<4x512xf32>, vector<4x512xf32> -> vector<4x512xf32>
    %462 = arith.addf %451, %461 : vector<4x512xf32>
    %c6_333 = arith.constant 6 : index
    %c0_334 = arith.constant 0 : index
    %c0_335 = arith.constant 0 : index
    %463 = vector.load %arg9[%c6_333, %c0_334, %c0_335] : memref<9x4x4xf32, #tpu.memory_space<vmem>>, vector<1x4x4xf32>
    %464 = vector.shape_cast %463 : vector<1x4x4xf32> to vector<4x4xf32>
    %cst_336 = arith.constant dense<0.000000e+00> : vector<4x512xf32>
    %465 = tpu.matmul %464, %342, %cst_336 {dimension_numbers = #tpu.dot_dimension_numbers<[1], [0], [0], [1], [0, 0, 1, 1], [], []>} : vector<4x4xf32>, vector<4x512xf32>, vector<4x512xf32> -> vector<4x512xf32>
    %466 = arith.addf %462, %465 : vector<4x512xf32>
    %c7_337 = arith.constant 7 : index
    %c0_338 = arith.constant 0 : index
    %c0_339 = arith.constant 0 : index
    %467 = vector.load %arg9[%c7_337, %c0_338, %c0_339] : memref<9x4x4xf32, #tpu.memory_space<vmem>>, vector<1x4x4xf32>
    %468 = vector.shape_cast %467 : vector<1x4x4xf32> to vector<4x4xf32>
    %cst_340 = arith.constant dense<0.000000e+00> : vector<4x512xf32>
    %469 = tpu.matmul %468, %348, %cst_340 {dimension_numbers = #tpu.dot_dimension_numbers<[1], [0], [0], [1], [0, 0, 1, 1], [], []>} : vector<4x4xf32>, vector<4x512xf32>, vector<4x512xf32> -> vector<4x512xf32>
    %470 = arith.addf %466, %469 : vector<4x512xf32>
    %c8_341 = arith.constant 8 : index
    %c0_342 = arith.constant 0 : index
    %c0_343 = arith.constant 0 : index
    %471 = vector.load %arg9[%c8_341, %c0_342, %c0_343] : memref<9x4x4xf32, #tpu.memory_space<vmem>>, vector<1x4x4xf32>
    %472 = vector.shape_cast %471 : vector<1x4x4xf32> to vector<4x4xf32>
    %cst_344 = arith.constant 0.000000e+00 : f32
    %473 = vector.broadcast %cst_344 : f32 to vector<4x1xf32>
    %474 = vector.extract_strided_slice %342 {offsets = [0, 1], sizes = [4, 511], strides = [1, 1]} : vector<4x512xf32> to vector<4x511xf32>
    %475 = tpu.concatenate %474, %473 in 1 : vector<4x511xf32>, vector<4x1xf32> -> vector<4x512xf32>
    %c5_345 = arith.constant 5 : index
    %c0_346 = arith.constant 0 : index
    %c0_347 = arith.constant 0 : index
    %476 = vector.load %arg13[%c5_345, %c0_346, %c0_347] : memref<9x1x512xf32, #tpu.memory_space<vmem>>, vector<1x1x512xf32>
    %477 = vector.shape_cast %476 : vector<1x1x512xf32> to vector<1x512xf32>
    %478 = vector.broadcast %477 : vector<1x512xf32> to vector<4x512xf32>
    %479 = arith.mulf %475, %478 : vector<4x512xf32>
    %cst_348 = arith.constant dense<0.000000e+00> : vector<4x512xf32>
    %480 = tpu.matmul %472, %479, %cst_348 {dimension_numbers = #tpu.dot_dimension_numbers<[1], [0], [0], [1], [0, 0, 1, 1], [], []>} : vector<4x4xf32>, vector<4x512xf32>, vector<4x512xf32> -> vector<4x512xf32>
    %481 = arith.addf %470, %480 : vector<4x512xf32>
    %482 = vector.broadcast %349 : vector<4x1xf32> to vector<4x512xf32>
    %483 = arith.addf %481, %482 : vector<4x512xf32>
    %cst_349 = arith.constant 0.000000e+00 : f32
    %484 = vector.broadcast %cst_349 : f32 to vector<4x512xf32>
    %c0_350 = arith.constant 0 : index
    %c0_351 = arith.constant 0 : index
    %c0_352 = arith.constant 0 : index
    %485 = vector.load %arg9[%c0_350, %c0_351, %c0_352] : memref<9x4x4xf32, #tpu.memory_space<vmem>>, vector<1x4x4xf32>
    %486 = vector.shape_cast %485 : vector<1x4x4xf32> to vector<4x4xf32>
    %cst_353 = arith.constant dense<0.000000e+00> : vector<4x512xf32>
    %487 = tpu.matmul %486, %392, %cst_353 {dimension_numbers = #tpu.dot_dimension_numbers<[1], [0], [0], [1], [0, 0, 1, 1], [], []>} : vector<4x4xf32>, vector<4x512xf32>, vector<4x512xf32> -> vector<4x512xf32>
    %488 = arith.addf %484, %487 : vector<4x512xf32>
    %c1_354 = arith.constant 1 : index
    %c0_355 = arith.constant 0 : index
    %c0_356 = arith.constant 0 : index
    %489 = vector.load %arg9[%c1_354, %c0_355, %c0_356] : memref<9x4x4xf32, #tpu.memory_space<vmem>>, vector<1x4x4xf32>
    %490 = vector.shape_cast %489 : vector<1x4x4xf32> to vector<4x4xf32>
    %cst_357 = arith.constant dense<0.000000e+00> : vector<4x512xf32>
    %491 = tpu.matmul %490, %330, %cst_357 {dimension_numbers = #tpu.dot_dimension_numbers<[1], [0], [0], [1], [0, 0, 1, 1], [], []>} : vector<4x4xf32>, vector<4x512xf32>, vector<4x512xf32> -> vector<4x512xf32>
    %492 = arith.addf %488, %491 : vector<4x512xf32>
    %c2_358 = arith.constant 2 : index
    %c0_359 = arith.constant 0 : index
    %c0_360 = arith.constant 0 : index
    %493 = vector.load %arg9[%c2_358, %c0_359, %c0_360] : memref<9x4x4xf32, #tpu.memory_space<vmem>>, vector<1x4x4xf32>
    %494 = vector.shape_cast %493 : vector<1x4x4xf32> to vector<4x4xf32>
    %cst_361 = arith.constant dense<0.000000e+00> : vector<4x512xf32>
    %495 = tpu.matmul %494, %336, %cst_361 {dimension_numbers = #tpu.dot_dimension_numbers<[1], [0], [0], [1], [0, 0, 1, 1], [], []>} : vector<4x4xf32>, vector<4x512xf32>, vector<4x512xf32> -> vector<4x512xf32>
    %496 = arith.addf %492, %495 : vector<4x512xf32>
    %c3_362 = arith.constant 3 : index
    %c0_363 = arith.constant 0 : index
    %c0_364 = arith.constant 0 : index
    %497 = vector.load %arg9[%c3_362, %c0_363, %c0_364] : memref<9x4x4xf32, #tpu.memory_space<vmem>>, vector<1x4x4xf32>
    %498 = vector.shape_cast %497 : vector<1x4x4xf32> to vector<4x4xf32>
    %cst_365 = arith.constant dense<0.000000e+00> : vector<4x512xf32>
    %499 = tpu.matmul %498, %411, %cst_365 {dimension_numbers = #tpu.dot_dimension_numbers<[1], [0], [0], [1], [0, 0, 1, 1], [], []>} : vector<4x4xf32>, vector<4x512xf32>, vector<4x512xf32> -> vector<4x512xf32>
    %500 = arith.addf %496, %499 : vector<4x512xf32>
    %c4_366 = arith.constant 4 : index
    %c0_367 = arith.constant 0 : index
    %c0_368 = arith.constant 0 : index
    %501 = vector.load %arg9[%c4_366, %c0_367, %c0_368] : memref<9x4x4xf32, #tpu.memory_space<vmem>>, vector<1x4x4xf32>
    %502 = vector.shape_cast %501 : vector<1x4x4xf32> to vector<4x4xf32>
    %cst_369 = arith.constant dense<0.000000e+00> : vector<4x512xf32>
    %503 = tpu.matmul %502, %342, %cst_369 {dimension_numbers = #tpu.dot_dimension_numbers<[1], [0], [0], [1], [0, 0, 1, 1], [], []>} : vector<4x4xf32>, vector<4x512xf32>, vector<4x512xf32> -> vector<4x512xf32>
    %504 = arith.addf %500, %503 : vector<4x512xf32>
    %c5_370 = arith.constant 5 : index
    %c0_371 = arith.constant 0 : index
    %c0_372 = arith.constant 0 : index
    %505 = vector.load %arg9[%c5_370, %c0_371, %c0_372] : memref<9x4x4xf32, #tpu.memory_space<vmem>>, vector<1x4x4xf32>
    %506 = vector.shape_cast %505 : vector<1x4x4xf32> to vector<4x4xf32>
    %cst_373 = arith.constant dense<0.000000e+00> : vector<4x512xf32>
    %507 = tpu.matmul %506, %348, %cst_373 {dimension_numbers = #tpu.dot_dimension_numbers<[1], [0], [0], [1], [0, 0, 1, 1], [], []>} : vector<4x4xf32>, vector<4x512xf32>, vector<4x512xf32> -> vector<4x512xf32>
    %508 = arith.addf %504, %507 : vector<4x512xf32>
    %c6_374 = arith.constant 6 : index
    %c0_375 = arith.constant 0 : index
    %c0_376 = arith.constant 0 : index
    %509 = vector.load %arg9[%c6_374, %c0_375, %c0_376] : memref<9x4x4xf32, #tpu.memory_space<vmem>>, vector<1x4x4xf32>
    %510 = vector.shape_cast %509 : vector<1x4x4xf32> to vector<4x4xf32>
    %cst_377 = arith.constant 0.000000e+00 : f32
    %511 = vector.broadcast %cst_377 : f32 to vector<4x15xf32>
    %512 = vector.extract_strided_slice %336 {offsets = [0, 15], sizes = [4, 497], strides = [1, 1]} : vector<4x512xf32> to vector<4x497xf32>
    %513 = tpu.concatenate %512, %511 in 1 : vector<4x497xf32>, vector<4x15xf32> -> vector<4x512xf32>
    %c6_378 = arith.constant 6 : index
    %c0_379 = arith.constant 0 : index
    %c0_380 = arith.constant 0 : index
    %514 = vector.load %arg13[%c6_378, %c0_379, %c0_380] : memref<9x1x512xf32, #tpu.memory_space<vmem>>, vector<1x1x512xf32>
    %515 = vector.shape_cast %514 : vector<1x1x512xf32> to vector<1x512xf32>
    %516 = vector.broadcast %515 : vector<1x512xf32> to vector<4x512xf32>
    %517 = arith.mulf %513, %516 : vector<4x512xf32>
    %cst_381 = arith.constant dense<0.000000e+00> : vector<4x512xf32>
    %518 = tpu.matmul %510, %517, %cst_381 {dimension_numbers = #tpu.dot_dimension_numbers<[1], [0], [0], [1], [0, 0, 1, 1], [], []>} : vector<4x4xf32>, vector<4x512xf32>, vector<4x512xf32> -> vector<4x512xf32>
    %519 = arith.addf %508, %518 : vector<4x512xf32>
    %c7_382 = arith.constant 7 : index
    %c0_383 = arith.constant 0 : index
    %c0_384 = arith.constant 0 : index
    %520 = vector.load %arg9[%c7_382, %c0_383, %c0_384] : memref<9x4x4xf32, #tpu.memory_space<vmem>>, vector<1x4x4xf32>
    %521 = vector.shape_cast %520 : vector<1x4x4xf32> to vector<4x4xf32>
    %cst_385 = arith.constant 0.000000e+00 : f32
    %522 = vector.broadcast %cst_385 : f32 to vector<4x16xf32>
    %523 = vector.extract_strided_slice %330 {offsets = [0, 16], sizes = [4, 496], strides = [1, 1]} : vector<4x512xf32> to vector<4x496xf32>
    %524 = tpu.concatenate %523, %522 in 1 : vector<4x496xf32>, vector<4x16xf32> -> vector<4x512xf32>
    %c7_386 = arith.constant 7 : index
    %c0_387 = arith.constant 0 : index
    %c0_388 = arith.constant 0 : index
    %525 = vector.load %arg13[%c7_386, %c0_387, %c0_388] : memref<9x1x512xf32, #tpu.memory_space<vmem>>, vector<1x1x512xf32>
    %526 = vector.shape_cast %525 : vector<1x1x512xf32> to vector<1x512xf32>
    %527 = vector.broadcast %526 : vector<1x512xf32> to vector<4x512xf32>
    %528 = arith.mulf %524, %527 : vector<4x512xf32>
    %cst_389 = arith.constant dense<0.000000e+00> : vector<4x512xf32>
    %529 = tpu.matmul %521, %528, %cst_389 {dimension_numbers = #tpu.dot_dimension_numbers<[1], [0], [0], [1], [0, 0, 1, 1], [], []>} : vector<4x4xf32>, vector<4x512xf32>, vector<4x512xf32> -> vector<4x512xf32>
    %530 = arith.addf %519, %529 : vector<4x512xf32>
    %c8_390 = arith.constant 8 : index
    %c0_391 = arith.constant 0 : index
    %c0_392 = arith.constant 0 : index
    %531 = vector.load %arg9[%c8_390, %c0_391, %c0_392] : memref<9x4x4xf32, #tpu.memory_space<vmem>>, vector<1x4x4xf32>
    %532 = vector.shape_cast %531 : vector<1x4x4xf32> to vector<4x4xf32>
    %cst_393 = arith.constant 0.000000e+00 : f32
    %533 = vector.broadcast %cst_393 : f32 to vector<4x16xf32>
    %534 = vector.extract_strided_slice %336 {offsets = [0, 16], sizes = [4, 496], strides = [1, 1]} : vector<4x512xf32> to vector<4x496xf32>
    %535 = tpu.concatenate %534, %533 in 1 : vector<4x496xf32>, vector<4x16xf32> -> vector<4x512xf32>
    %c7_394 = arith.constant 7 : index
    %c0_395 = arith.constant 0 : index
    %c0_396 = arith.constant 0 : index
    %536 = vector.load %arg13[%c7_394, %c0_395, %c0_396] : memref<9x1x512xf32, #tpu.memory_space<vmem>>, vector<1x1x512xf32>
    %537 = vector.shape_cast %536 : vector<1x1x512xf32> to vector<1x512xf32>
    %538 = vector.broadcast %537 : vector<1x512xf32> to vector<4x512xf32>
    %539 = arith.mulf %535, %538 : vector<4x512xf32>
    %cst_397 = arith.constant dense<0.000000e+00> : vector<4x512xf32>
    %540 = tpu.matmul %532, %539, %cst_397 {dimension_numbers = #tpu.dot_dimension_numbers<[1], [0], [0], [1], [0, 0, 1, 1], [], []>} : vector<4x4xf32>, vector<4x512xf32>, vector<4x512xf32> -> vector<4x512xf32>
    %541 = arith.addf %530, %540 : vector<4x512xf32>
    %542 = vector.broadcast %349 : vector<4x1xf32> to vector<4x512xf32>
    %543 = arith.addf %541, %542 : vector<4x512xf32>
    %cst_398 = arith.constant 0.000000e+00 : f32
    %544 = vector.broadcast %cst_398 : f32 to vector<4x512xf32>
    %c0_399 = arith.constant 0 : index
    %c0_400 = arith.constant 0 : index
    %c0_401 = arith.constant 0 : index
    %545 = vector.load %arg9[%c0_399, %c0_400, %c0_401] : memref<9x4x4xf32, #tpu.memory_space<vmem>>, vector<1x4x4xf32>
    %546 = vector.shape_cast %545 : vector<1x4x4xf32> to vector<4x4xf32>
    %cst_402 = arith.constant dense<0.000000e+00> : vector<4x512xf32>
    %547 = tpu.matmul %546, %330, %cst_402 {dimension_numbers = #tpu.dot_dimension_numbers<[1], [0], [0], [1], [0, 0, 1, 1], [], []>} : vector<4x4xf32>, vector<4x512xf32>, vector<4x512xf32> -> vector<4x512xf32>
    %548 = arith.addf %544, %547 : vector<4x512xf32>
    %c1_403 = arith.constant 1 : index
    %c0_404 = arith.constant 0 : index
    %c0_405 = arith.constant 0 : index
    %549 = vector.load %arg9[%c1_403, %c0_404, %c0_405] : memref<9x4x4xf32, #tpu.memory_space<vmem>>, vector<1x4x4xf32>
    %550 = vector.shape_cast %549 : vector<1x4x4xf32> to vector<4x4xf32>
    %cst_406 = arith.constant dense<0.000000e+00> : vector<4x512xf32>
    %551 = tpu.matmul %550, %336, %cst_406 {dimension_numbers = #tpu.dot_dimension_numbers<[1], [0], [0], [1], [0, 0, 1, 1], [], []>} : vector<4x4xf32>, vector<4x512xf32>, vector<4x512xf32> -> vector<4x512xf32>
    %552 = arith.addf %548, %551 : vector<4x512xf32>
    %c2_407 = arith.constant 2 : index
    %c0_408 = arith.constant 0 : index
    %c0_409 = arith.constant 0 : index
    %553 = vector.load %arg9[%c2_407, %c0_408, %c0_409] : memref<9x4x4xf32, #tpu.memory_space<vmem>>, vector<1x4x4xf32>
    %554 = vector.shape_cast %553 : vector<1x4x4xf32> to vector<4x4xf32>
    %cst_410 = arith.constant dense<0.000000e+00> : vector<4x512xf32>
    %555 = tpu.matmul %554, %460, %cst_410 {dimension_numbers = #tpu.dot_dimension_numbers<[1], [0], [0], [1], [0, 0, 1, 1], [], []>} : vector<4x4xf32>, vector<4x512xf32>, vector<4x512xf32> -> vector<4x512xf32>
    %556 = arith.addf %552, %555 : vector<4x512xf32>
    %c3_411 = arith.constant 3 : index
    %c0_412 = arith.constant 0 : index
    %c0_413 = arith.constant 0 : index
    %557 = vector.load %arg9[%c3_411, %c0_412, %c0_413] : memref<9x4x4xf32, #tpu.memory_space<vmem>>, vector<1x4x4xf32>
    %558 = vector.shape_cast %557 : vector<1x4x4xf32> to vector<4x4xf32>
    %cst_414 = arith.constant dense<0.000000e+00> : vector<4x512xf32>
    %559 = tpu.matmul %558, %342, %cst_414 {dimension_numbers = #tpu.dot_dimension_numbers<[1], [0], [0], [1], [0, 0, 1, 1], [], []>} : vector<4x4xf32>, vector<4x512xf32>, vector<4x512xf32> -> vector<4x512xf32>
    %560 = arith.addf %556, %559 : vector<4x512xf32>
    %c4_415 = arith.constant 4 : index
    %c0_416 = arith.constant 0 : index
    %c0_417 = arith.constant 0 : index
    %561 = vector.load %arg9[%c4_415, %c0_416, %c0_417] : memref<9x4x4xf32, #tpu.memory_space<vmem>>, vector<1x4x4xf32>
    %562 = vector.shape_cast %561 : vector<1x4x4xf32> to vector<4x4xf32>
    %cst_418 = arith.constant dense<0.000000e+00> : vector<4x512xf32>
    %563 = tpu.matmul %562, %348, %cst_418 {dimension_numbers = #tpu.dot_dimension_numbers<[1], [0], [0], [1], [0, 0, 1, 1], [], []>} : vector<4x4xf32>, vector<4x512xf32>, vector<4x512xf32> -> vector<4x512xf32>
    %564 = arith.addf %560, %563 : vector<4x512xf32>
    %c5_419 = arith.constant 5 : index
    %c0_420 = arith.constant 0 : index
    %c0_421 = arith.constant 0 : index
    %565 = vector.load %arg9[%c5_419, %c0_420, %c0_421] : memref<9x4x4xf32, #tpu.memory_space<vmem>>, vector<1x4x4xf32>
    %566 = vector.shape_cast %565 : vector<1x4x4xf32> to vector<4x4xf32>
    %cst_422 = arith.constant dense<0.000000e+00> : vector<4x512xf32>
    %567 = tpu.matmul %566, %479, %cst_422 {dimension_numbers = #tpu.dot_dimension_numbers<[1], [0], [0], [1], [0, 0, 1, 1], [], []>} : vector<4x4xf32>, vector<4x512xf32>, vector<4x512xf32> -> vector<4x512xf32>
    %568 = arith.addf %564, %567 : vector<4x512xf32>
    %c6_423 = arith.constant 6 : index
    %c0_424 = arith.constant 0 : index
    %c0_425 = arith.constant 0 : index
    %569 = vector.load %arg9[%c6_423, %c0_424, %c0_425] : memref<9x4x4xf32, #tpu.memory_space<vmem>>, vector<1x4x4xf32>
    %570 = vector.shape_cast %569 : vector<1x4x4xf32> to vector<4x4xf32>
    %cst_426 = arith.constant dense<0.000000e+00> : vector<4x512xf32>
    %571 = tpu.matmul %570, %528, %cst_426 {dimension_numbers = #tpu.dot_dimension_numbers<[1], [0], [0], [1], [0, 0, 1, 1], [], []>} : vector<4x4xf32>, vector<4x512xf32>, vector<4x512xf32> -> vector<4x512xf32>
    %572 = arith.addf %568, %571 : vector<4x512xf32>
    %c7_427 = arith.constant 7 : index
    %c0_428 = arith.constant 0 : index
    %c0_429 = arith.constant 0 : index
    %573 = vector.load %arg9[%c7_427, %c0_428, %c0_429] : memref<9x4x4xf32, #tpu.memory_space<vmem>>, vector<1x4x4xf32>
    %574 = vector.shape_cast %573 : vector<1x4x4xf32> to vector<4x4xf32>
    %cst_430 = arith.constant dense<0.000000e+00> : vector<4x512xf32>
    %575 = tpu.matmul %574, %539, %cst_430 {dimension_numbers = #tpu.dot_dimension_numbers<[1], [0], [0], [1], [0, 0, 1, 1], [], []>} : vector<4x4xf32>, vector<4x512xf32>, vector<4x512xf32> -> vector<4x512xf32>
    %576 = arith.addf %572, %575 : vector<4x512xf32>
    %c8_431 = arith.constant 8 : index
    %c0_432 = arith.constant 0 : index
    %c0_433 = arith.constant 0 : index
    %577 = vector.load %arg9[%c8_431, %c0_432, %c0_433] : memref<9x4x4xf32, #tpu.memory_space<vmem>>, vector<1x4x4xf32>
    %578 = vector.shape_cast %577 : vector<1x4x4xf32> to vector<4x4xf32>
    %cst_434 = arith.constant 0.000000e+00 : f32
    %579 = vector.broadcast %cst_434 : f32 to vector<4x17xf32>
    %580 = vector.extract_strided_slice %330 {offsets = [0, 17], sizes = [4, 495], strides = [1, 1]} : vector<4x512xf32> to vector<4x495xf32>
    %581 = tpu.concatenate %580, %579 in 1 : vector<4x495xf32>, vector<4x17xf32> -> vector<4x512xf32>
    %c8_435 = arith.constant 8 : index
    %c0_436 = arith.constant 0 : index
    %c0_437 = arith.constant 0 : index
    %582 = vector.load %arg13[%c8_435, %c0_436, %c0_437] : memref<9x1x512xf32, #tpu.memory_space<vmem>>, vector<1x1x512xf32>
    %583 = vector.shape_cast %582 : vector<1x1x512xf32> to vector<1x512xf32>
    %584 = vector.broadcast %583 : vector<1x512xf32> to vector<4x512xf32>
    %585 = arith.mulf %581, %584 : vector<4x512xf32>
    %cst_438 = arith.constant dense<0.000000e+00> : vector<4x512xf32>
    %586 = tpu.matmul %578, %585, %cst_438 {dimension_numbers = #tpu.dot_dimension_numbers<[1], [0], [0], [1], [0, 0, 1, 1], [], []>} : vector<4x4xf32>, vector<4x512xf32>, vector<4x512xf32> -> vector<4x512xf32>
    %587 = arith.addf %576, %586 : vector<4x512xf32>
    %588 = vector.broadcast %349 : vector<4x1xf32> to vector<4x512xf32>
    %589 = arith.addf %587, %588 : vector<4x512xf32>
    %cst_439 = arith.constant 0.000000e+00 : f32
    %590 = vector.broadcast %cst_439 : f32 to vector<4x1xf32>
    %cst_440 = arith.constant dense<0.000000e+00> : vector<4xf32>
    %591 = vector.multi_reduction <add>, %423, %cst_440 [1] : vector<4x512xf32> to vector<4xf32>
    %592 = vector.shape_cast %591 : vector<4xf32> to vector<4x1xf32>
    %593 = arith.addf %590, %592 : vector<4x1xf32>
    %cst_441 = arith.constant dense<0.000000e+00> : vector<4xf32>
    %594 = vector.multi_reduction <add>, %483, %cst_441 [1] : vector<4x512xf32> to vector<4xf32>
    %595 = vector.shape_cast %594 : vector<4xf32> to vector<4x1xf32>
    %596 = arith.addf %593, %595 : vector<4x1xf32>
    %cst_442 = arith.constant dense<0.000000e+00> : vector<4xf32>
    %597 = vector.multi_reduction <add>, %543, %cst_442 [1] : vector<4x512xf32> to vector<4xf32>
    %598 = vector.shape_cast %597 : vector<4xf32> to vector<4x1xf32>
    %599 = arith.addf %596, %598 : vector<4x1xf32>
    %cst_443 = arith.constant dense<0.000000e+00> : vector<4xf32>
    %600 = vector.multi_reduction <add>, %589, %cst_443 [1] : vector<4x512xf32> to vector<4xf32>
    %601 = vector.shape_cast %600 : vector<4xf32> to vector<4x1xf32>
    %602 = arith.addf %599, %601 : vector<4x1xf32>
    %cst_444 = arith.constant 4.8828125E-4 : f32
    %603 = vector.broadcast %cst_444 : f32 to vector<4x1xf32>
    %604 = arith.mulf %602, %603 : vector<4x1xf32>
    %cst_445 = arith.constant 0.000000e+00 : f32
    %605 = vector.broadcast %cst_445 : f32 to vector<4x1xf32>
    %606 = vector.broadcast %604 : vector<4x1xf32> to vector<4x512xf32>
    %607 = arith.subf %423, %606 : vector<4x512xf32>
    %608 = arith.mulf %607, %607 : vector<4x512xf32>
    %cst_446 = arith.constant dense<0.000000e+00> : vector<4xf32>
    %609 = vector.multi_reduction <add>, %608, %cst_446 [1] : vector<4x512xf32> to vector<4xf32>
    %610 = vector.shape_cast %609 : vector<4xf32> to vector<4x1xf32>
    %611 = arith.addf %605, %610 : vector<4x1xf32>
    %612 = vector.broadcast %604 : vector<4x1xf32> to vector<4x512xf32>
    %613 = arith.subf %483, %612 : vector<4x512xf32>
    %614 = arith.mulf %613, %613 : vector<4x512xf32>
    %cst_447 = arith.constant dense<0.000000e+00> : vector<4xf32>
    %615 = vector.multi_reduction <add>, %614, %cst_447 [1] : vector<4x512xf32> to vector<4xf32>
    %616 = vector.shape_cast %615 : vector<4xf32> to vector<4x1xf32>
    %617 = arith.addf %611, %616 : vector<4x1xf32>
    %618 = vector.broadcast %604 : vector<4x1xf32> to vector<4x512xf32>
    %619 = arith.subf %543, %618 : vector<4x512xf32>
    %620 = arith.mulf %619, %619 : vector<4x512xf32>
    %cst_448 = arith.constant dense<0.000000e+00> : vector<4xf32>
    %621 = vector.multi_reduction <add>, %620, %cst_448 [1] : vector<4x512xf32> to vector<4xf32>
    %622 = vector.shape_cast %621 : vector<4xf32> to vector<4x1xf32>
    %623 = arith.addf %617, %622 : vector<4x1xf32>
    %624 = vector.broadcast %604 : vector<4x1xf32> to vector<4x512xf32>
    %625 = arith.subf %589, %624 : vector<4x512xf32>
    %626 = arith.mulf %625, %625 : vector<4x512xf32>
    %cst_449 = arith.constant dense<0.000000e+00> : vector<4xf32>
    %627 = vector.multi_reduction <add>, %626, %cst_449 [1] : vector<4x512xf32> to vector<4xf32>
    %628 = vector.shape_cast %627 : vector<4xf32> to vector<4x1xf32>
    %629 = arith.addf %623, %628 : vector<4x1xf32>
    %c0_450 = arith.constant 0 : index
    %c0_451 = arith.constant 0 : index
    %630 = vector.load %arg11[%c0_450, %c0_451] : memref<4x1xf32, #tpu.memory_space<vmem>>, vector<4x1xf32>
    %cst_452 = arith.constant 4.8828125E-4 : f32
    %631 = vector.broadcast %cst_452 : f32 to vector<4x1xf32>
    %632 = arith.mulf %629, %631 : vector<4x1xf32>
    %cst_453 = arith.constant 9.99999974E-6 : f32
    %633 = vector.broadcast %cst_453 : f32 to vector<4x1xf32>
    %634 = arith.addf %632, %633 : vector<4x1xf32>
    %635 = math.rsqrt %634 : vector<4x1xf32>
    %636 = arith.mulf %630, %635 : vector<4x1xf32>
    %c0_454 = arith.constant 0 : index
    %c0_455 = arith.constant 0 : index
    %637 = vector.load %arg12[%c0_454, %c0_455] : memref<4x1xf32, #tpu.memory_space<vmem>>, vector<4x1xf32>
    %638 = arith.mulf %604, %636 : vector<4x1xf32>
    %639 = arith.subf %637, %638 : vector<4x1xf32>
    %640 = vector.broadcast %636 : vector<4x1xf32> to vector<4x512xf32>
    %641 = arith.mulf %423, %640 : vector<4x512xf32>
    %642 = vector.broadcast %639 : vector<4x1xf32> to vector<4x512xf32>
    %643 = arith.addf %641, %642 : vector<4x512xf32>
    %cst_456 = arith.constant 0.000000e+00 : f32
    %644 = vector.broadcast %cst_456 : f32 to vector<4x512xf32>
    %645 = arith.maximumf %643, %644 : vector<4x512xf32>
    %646 = vector.broadcast %636 : vector<4x1xf32> to vector<4x512xf32>
    %647 = arith.mulf %483, %646 : vector<4x512xf32>
    %648 = vector.broadcast %639 : vector<4x1xf32> to vector<4x512xf32>
    %649 = arith.addf %647, %648 : vector<4x512xf32>
    %cst_457 = arith.constant 0.000000e+00 : f32
    %650 = vector.broadcast %cst_457 : f32 to vector<4x512xf32>
    %651 = arith.maximumf %649, %650 : vector<4x512xf32>
    %652 = vector.broadcast %636 : vector<4x1xf32> to vector<4x512xf32>
    %653 = arith.mulf %543, %652 : vector<4x512xf32>
    %654 = vector.broadcast %639 : vector<4x1xf32> to vector<4x512xf32>
    %655 = arith.addf %653, %654 : vector<4x512xf32>
    %cst_458 = arith.constant 0.000000e+00 : f32
    %656 = vector.broadcast %cst_458 : f32 to vector<4x512xf32>
    %657 = arith.maximumf %655, %656 : vector<4x512xf32>
    %658 = vector.broadcast %636 : vector<4x1xf32> to vector<4x512xf32>
    %659 = arith.mulf %589, %658 : vector<4x512xf32>
    %660 = vector.broadcast %639 : vector<4x1xf32> to vector<4x512xf32>
    %661 = arith.addf %659, %660 : vector<4x512xf32>
    %cst_459 = arith.constant 0.000000e+00 : f32
    %662 = vector.broadcast %cst_459 : f32 to vector<4x512xf32>
    %663 = arith.maximumf %661, %662 : vector<4x512xf32>
    %c0_460 = arith.constant 0 : index
    %c0_461 = arith.constant 0 : index
    %c0_462 = arith.constant 0 : index
    %664 = vector.load %arg14[%c0_460, %c0_461, %c0_462] : memref<4x4x512xf32, #tpu.memory_space<vmem>>, vector<1x4x512xf32>
    %665 = vector.shape_cast %664 : vector<1x4x512xf32> to vector<4x512xf32>
    %666 = vector.shape_cast %645 : vector<4x512xf32> to vector<1x4x512xf32>
    tpu.vector_store %arg14[%c0_460, %c0_461, %c0_462], %666 {strides = array<i32>} : memref<4x4x512xf32, #tpu.memory_space<vmem>>, vector<1x4x512xf32>,
    %c1_463 = arith.constant 1 : index
    %c0_464 = arith.constant 0 : index
    %c0_465 = arith.constant 0 : index
    %667 = vector.load %arg14[%c1_463, %c0_464, %c0_465] : memref<4x4x512xf32, #tpu.memory_space<vmem>>, vector<1x4x512xf32>
    %668 = vector.shape_cast %667 : vector<1x4x512xf32> to vector<4x512xf32>
    %669 = vector.shape_cast %651 : vector<4x512xf32> to vector<1x4x512xf32>
    tpu.vector_store %arg14[%c1_463, %c0_464, %c0_465], %669 {strides = array<i32>} : memref<4x4x512xf32, #tpu.memory_space<vmem>>, vector<1x4x512xf32>,
    %c2_466 = arith.constant 2 : index
    %c0_467 = arith.constant 0 : index
    %c0_468 = arith.constant 0 : index
    %670 = vector.load %arg14[%c2_466, %c0_467, %c0_468] : memref<4x4x512xf32, #tpu.memory_space<vmem>>, vector<1x4x512xf32>
    %671 = vector.shape_cast %670 : vector<1x4x512xf32> to vector<4x512xf32>
    %672 = vector.shape_cast %657 : vector<4x512xf32> to vector<1x4x512xf32>
    tpu.vector_store %arg14[%c2_466, %c0_467, %c0_468], %672 {strides = array<i32>} : memref<4x4x512xf32, #tpu.memory_space<vmem>>, vector<1x4x512xf32>,
    %c3_469 = arith.constant 3 : index
    %c0_470 = arith.constant 0 : index
    %c0_471 = arith.constant 0 : index
    %673 = vector.load %arg14[%c3_469, %c0_470, %c0_471] : memref<4x4x512xf32, #tpu.memory_space<vmem>>, vector<1x4x512xf32>
    %674 = vector.shape_cast %673 : vector<1x4x512xf32> to vector<4x512xf32>
    %675 = vector.shape_cast %663 : vector<4x512xf32> to vector<1x4x512xf32>
    tpu.vector_store %arg14[%c3_469, %c0_470, %c0_471], %675 {strides = array<i32>} : memref<4x4x512xf32, #tpu.memory_space<vmem>>, vector<1x4x512xf32>,
    return
  }
  func.func @transform_0(%arg0: i32) -> (i32, i32) {
    %c0_i32 = arith.constant 0 : i32
    %c0_i32_0 = arith.constant 0 : i32
    %c0_i32_1 = arith.constant 0 : i32
    return %c0_i32, %c0_i32_0 : i32, i32
  }
  func.func @transform_1(%arg0: i32) -> (i32, i32, i32) {
    %c0_i32 = arith.constant 0 : i32
    %c0_i32_0 = arith.constant 0 : i32
    %c0_i32_1 = arith.constant 0 : i32
    %c0_i32_2 = arith.constant 0 : i32
    return %c0_i32, %c0_i32_0, %c0_i32_1 : i32, i32, i32
  }
  func.func @transform_2(%arg0: i32) -> (i32, i32, i32) {
    %c0_i32 = arith.constant 0 : i32
    %c0_i32_0 = arith.constant 0 : i32
    %c0_i32_1 = arith.constant 0 : i32
    %c0_i32_2 = arith.constant 0 : i32
    return %c0_i32, %c0_i32_0, %c0_i32_1 : i32, i32, i32
  }
  func.func @transform_3(%arg0: i32) -> (i32, i32) {
    %c0_i32 = arith.constant 0 : i32
    %c0_i32_0 = arith.constant 0 : i32
    %c0_i32_1 = arith.constant 0 : i32
    return %c0_i32, %c0_i32_0 : i32, i32
  }
  func.func @transform_4(%arg0: i32) -> (i32, i32, i32) {
    %c0_i32 = arith.constant 0 : i32
    %c0_i32_0 = arith.constant 0 : i32
    %c0_i32_1 = arith.constant 0 : i32
    %c0_i32_2 = arith.constant 0 : i32
    return %c0_i32, %c0_i32_0, %c0_i32_1 : i32, i32, i32
  }
  func.func @transform_5(%arg0: i32) -> (i32, i32) {
    %c0_i32 = arith.constant 0 : i32
    %c0_i32_0 = arith.constant 0 : i32
    %c0_i32_1 = arith.constant 0 : i32
    return %c0_i32, %c0_i32_0 : i32, i32
  }
  func.func @transform_6(%arg0: i32) -> (i32, i32) {
    %c0_i32 = arith.constant 0 : i32
    %c0_i32_0 = arith.constant 0 : i32
    %c0_i32_1 = arith.constant 0 : i32
    return %c0_i32, %c0_i32_0 : i32, i32
  }
  func.func @transform_7(%arg0: i32) -> (i32, i32) {
    %c0_i32 = arith.constant 0 : i32
    %c0_i32_0 = arith.constant 0 : i32
    %c0_i32_1 = arith.constant 0 : i32
    return %c0_i32, %c0_i32_0 : i32, i32
  }
  func.func @transform_8(%arg0: i32) -> (i32, i32, i32) {
    %c0_i32 = arith.constant 0 : i32
    %c0_i32_0 = arith.constant 0 : i32
    %c0_i32_1 = arith.constant 0 : i32
    %c0_i32_2 = arith.constant 0 : i32
    return %c0_i32, %c0_i32_0, %c0_i32_1 : i32, i32, i32
  }
  func.func @transform_9(%arg0: i32) -> (i32, i32) {
    %c0_i32 = arith.constant 0 : i32
    %c0_i32_0 = arith.constant 0 : i32
    %c0_i32_1 = arith.constant 0 : i32
    return %c0_i32, %c0_i32_0 : i32, i32
  }
  func.func @transform_10(%arg0: i32) -> (i32, i32) {
    %c0_i32 = arith.constant 0 : i32
    %c0_i32_0 = arith.constant 0 : i32
    %c0_i32_1 = arith.constant 0 : i32
    return %c0_i32, %c0_i32_0 : i32, i32
  }
  func.func @transform_11(%arg0: i32) -> (i32, i32) {
    %c0_i32 = arith.constant 0 : i32
    %c0_i32_0 = arith.constant 0 : i32
    %c0_i32_1 = arith.constant 0 : i32
    return %c0_i32, %c0_i32_0 : i32, i32
  }
  func.func @transform_12(%arg0: i32) -> (i32, i32, i32) {
    %c0_i32 = arith.constant 0 : i32
    %c0_i32_0 = arith.constant 0 : i32
    %c0_i32_1 = arith.constant 0 : i32
    %c0_i32_2 = arith.constant 0 : i32
    return %c0_i32, %c0_i32_0, %c0_i32_1 : i32, i32, i32
  }
  func.func @transform_13(%arg0: i32) -> (i32, i32, i32) {
    %c0_i32 = arith.constant 0 : i32
    %c0_i32_0 = arith.constant 0 : i32
    %c0_i32_1 = arith.constant 0 : i32
    %c0_i32_2 = arith.constant 0 : i32
    return %c0_i32, %c0_i32_0, %c0_i32_1 : i32, i32, i32
  }
}

</mosaic_0001>

<bundles_post_ra>
// kernel: upsampler_forward.1
= control target key start
LH: loop header
LB: loop body
LE: loop exit
PB: predicated region body
PF: predicated region fallthrough
CT: control target
= control target key end

     0   :  { %v15359_v3 = vmov 0.0   ;;  %vm55_vm0 = vcmask 64512   ;;  %v13156_v10 = vmov 0   ;;  %s13157_s14 = smov 16   ;;  %s13158_s22 = smov 17   ;;  %vm740_vm1 = vcmask 130048   ;;  %s15322_s0 = inlined_call_operand.vmem [shape: f32[8,512], index: 0, kind: input, shape index: {}]   ;;  %s15323_s2 = inlined_call_operand.vmem [shape: f32[4,8,8], index: 2, kind: input, shape index: {}]   ;;  %s15324_s3 = inlined_call_operand.vmem [shape: f32[8,1], index: 3, kind: input, shape index: {}]   ;;  %s15325_s1 = inlined_call_operand.vmem [shape: f32[4,8,512], index: 1, kind: input, shape index: {}]   ;;  %s15326_s12 = inlined_call_operand.vmem [shape: f32[9,1,512], index: 12, kind: input, shape index: {}]   ;;  %s15327_s4 = inlined_call_operand.vmem [shape: f32[9,4,8], index: 4, kind: input, shape index: {}]   ;;  %s15328_s5 = inlined_call_operand.vmem [shape: f32[4,1], index: 5, kind: input, shape index: {}]   ;;  %s15329_s6 = inlined_call_operand.vmem [shape: f32[4,1], index: 6, kind: input, shape index: {}]   ;;  %s15330_s7 = inlined_call_operand.vmem [shape: f32[4,1], index: 7, kind: input, shape index: {}]   ;;  %s15331_s9 = inlined_call_operand.vmem [shape: f32[4,1], index: 9, kind: input, shape index: {}]   ;;  %s15332_s8 = inlined_call_operand.vmem [shape: f32[9,4,4], index: 8, kind: input, shape index: {}]   ;;  %s15333_s10 = inlined_call_operand.vmem [shape: f32[4,1], index: 10, kind: input, shape index: {}]   ;;  %s15334_s11 = inlined_call_operand.vmem [shape: f32[4,1], index: 11, kind: input, shape index: {}]   ;;  %s15335_s13 = inlined_call_operand.vmem [shape: f32[4,4,512], index: 13, kind: output, shape index: {}]  }
   0x1   :  { %v45_v0 = vld [vmem:[%s15322_s0 + $0x8] sm:$0xff]  ;;  %v47_v1 = vld [vmem:[%s15322_s0 + $0x18] sm:$0xff]  ;;  %v44_v2 = vld [vmem:[%s15322_s0] sm:$0xff]  ;;  %123 = vmatprep.mubr.f32.mxu0 %v15359_v3  ;;  %194 = vmatprep.mubr.f32.mxu1 %v15359_v3  ;;  %s13159_s29 = smov 1   ;;  %s13160_s30 = smov 15   ;;  %vm691_vm2 = vcmask 138240  }
   0x2   :  { %59 = vmatprep.subr.mxu0 %v45_v0  ;;  %130 = vmatprep.subr.mxu1 %v47_v1  ;;  %v46_v4 = vld [vmem:[%s15322_s0 + $0x10] sm:$0xff]  ;;  %v49_v5 = vld [vmem:[%s15323_s2] sm:$0xff]  ;;  %v12545_v6 = vld [vmem:[%s15323_s2 + $0x8] sm:$0xff]  ;;  %s13161_s23 = smov 127   ;;  %s13163_s24 = smov 112   ;;  %vm1251_vm3 = vcmask 7168  }
   0x3   :  { %60 = vmatpush1.msra.mxu0 %v44_v2  ;;  %131 = vmatpush1.msra.mxu1 %v46_v4  ;;  %v12552_v7 = vld [vmem:[%s15323_s2 + $0x10] sm:$0xff]  ;;  %v12559_v8 = vld [vmem:[%s15323_s2 + $0x18] sm:$0xff]  ;;  %v48_v9 = vld [vmem:[%s15324_s3] sm:$0xff]  ;;  %s13164_s2 = smov 111   ;;  %vm2512_vm4 = vcmask 121856   ;;  %vm2998_vm5 = vcmask 1039360  }
   0x4   :  { %12543 = vmatmul.mubr.msk.f32.vlgmr.msra.gmra.mrb[0].mxu0 %vm55_vm0, %v49_v5  ;;  %12544 = vmatmul.mubr.msk.f32.vlgmr.msra.gmra.mrb[0].mxu1 %vm55_vm0, %v49_v5  ;;  %v12555_v21 = vld [vmem:[%s15325_s1 + $0x40] sm:$0xff]  ;;  %v12556_v25 = vld [vmem:[%s15325_s1 + $0x48] sm:$0xff]  ;;  %v12558_v32 = vld [vmem:[%s15325_s1 + $0x58] sm:$0xff]  ;;  %vm4518_vm6 = vcmask 924672   ;;  %vm4708_vm7 = vcmask 916480   ;;  %vm6228_vm8 = vcmask 908288  }
   0x5   :  { %214 = vmatprep.subr.mxu0 %v45_v0  ;;  %285 = vmatprep.subr.mxu1 %v47_v1  ;;  %v12557_v35 = vld [vmem:[%s15325_s1 + $0x50] sm:$0xff]  ;;  %v12563_v42 = vld [vmem:[%s15325_s1 + $0x68] sm:$0xff]  ;;  %v12562_v43 = vld [vmem:[%s15325_s1 + $0x60] sm:$0xff]  ;;  %vm6414_vm9 = vcmask 1043456   ;;  %vm6646_vm10 = vcmask 31744  }
   0x6   :  { %215 = vmatpush1.msra.mxu0 %v44_v2  ;;  %278 = vmatprep.mubr.f32.mxu0 %v15359_v3  ;;  %v12565_v48 = vld [vmem:[%s15325_s1 + $0x78] sm:$0xff]  ;;  %v12564_v49 = vld [vmem:[%s15325_s1 + $0x70] sm:$0xff]  ;;  %v12549_v54 = vld [vmem:[%s15325_s1 + $0x28] sm:$0xff] }
   0x7   :  { %286 = vmatpush1.msra.mxu1 %v46_v4  ;;  %349 = vmatprep.mubr.f32.mxu1 %v15359_v3  ;;  %v12548_v55 = vld [vmem:[%s15325_s1 + $0x20] sm:$0xff]  ;;  %v12551_v60 = vld [vmem:[%s15325_s1 + $0x38] sm:$0xff]  ;;  %v12550_v61 = vld [vmem:[%s15325_s1 + $0x30] sm:$0xff] }
   0x8   :  { %12546 = vmatmul.mubr.msk.f32.vlgmr.msra.gmra.mrb[2].mxu0 %vm55_vm0, %v12545_v6  ;;  %12547 = vmatmul.mubr.msk.f32.vlgmr.msra.gmra.mrb[2].mxu1 %vm55_vm0, %v12545_v6 }
   0x9   :  { %370 = vmatprep.subr.mxu0 %v45_v0  ;;  %441 = vmatprep.subr.mxu1 %v47_v1 }
   0xa   :  { %371 = vmatpush1.msra.mxu0 %v44_v2  ;;  %434 = vmatprep.mubr.f32.mxu0 %v15359_v3 }
   0xb   :  { %442 = vmatpush1.msra.mxu1 %v46_v4  ;;  %505 = vmatprep.mubr.f32.mxu1 %v15359_v3 }
   0xc   :  { %12553 = vmatmul.mubr.msk.f32.vlgmr.msra.gmra.mrb[4].mxu0 %vm55_vm0, %v12552_v7  ;;  %12554 = vmatmul.mubr.msk.f32.vlgmr.msra.gmra.mrb[4].mxu1 %vm55_vm0, %v12552_v7 }
   0xd   :  { %526 = vmatprep.subr.mxu0 %v45_v0  ;;  %597 = vmatprep.subr.mxu1 %v47_v1 }
   0xe   :  { %527 = vmatpush1.msra.mxu0 %v44_v2  ;;  %590 = vmatprep.mubr.f32.mxu0 %v15359_v3  ;;  %v203_v2 = vld [vmem:[%s15325_s1 + $0x10] sm:$0xff] }
   0xf   :  { %598 = vmatpush1.msra.mxu1 %v46_v4  ;;  %661 = vmatprep.mubr.f32.mxu1 %v15359_v3  ;;  %v202_v4 = vld [vmem:[%s15325_s1 + $0x8] sm:$0xff] }
  0x10   :  { %12560 = vmatmul.mubr.msk.f32.vlgmr.msra.gmra.mrb[6].mxu0 %vm55_vm0, %v12559_v8  ;;  %12561 = vmatmul.mubr.msk.f32.vlgmr.msra.gmra.mrb[6].mxu1 %vm55_vm0, %v12559_v8 }
  0x11   :  { %13149 = vset.pattern.permute.xlu0 %v13156_v10  ;;  %843 = vmatprep.mubr.f32.mxu0 %v15359_v3 }
  0x12   :  { %52 = vperm.xlu0 %13149, %v48_v9   ;;  %914 = vmatprep.mubr.f32.mxu1 %v15359_v3  ;;  %v204_v9 = vld [vmem:[%s15325_s1 + $0x18] sm:$0xff] }
  0x13   :  { %13150 = vset.pattern.permute.xlu1 %v13156_v10  ;;  %v201_v10 = vld [vmem:[%s15325_s1] sm:$0xff]  ;;  %s13162_s1 = smov 113  }
  0x91   :  { %v13288_v19 = vpop.permute.xlu0 %52 }
  0xd7   :  { %v13280_v11 = vpop.f32.mrb[0].mxu0  ;;  %v13282_v12 = vpop.f32.mrb[0].mxu1 }
  0xd8   :  { %v13284_v13 = vpop.f32.mrb[1].mxu0  ;;  %v13286_v14 = vpop.f32.mrb[1].mxu1  ;;  %v197_v0 = vadd.f32 %v13282_v12, %v13288_v19  ;;  %v126_v7 = vadd.f32 %v13280_v11, %v13288_v19 }
  0xd9   :  { %v128_v1 = vadd.f32 %v13284_v13, %v13288_v19  ;;  %v199_v6 = vadd.f32 %v13286_v14, %v13288_v19  ;;  %v702_v13 = vlaneseq }
  0xda   :  { %v13420_v5 = vadd.f32 %v203_v2, %v197_v0  ;;  %v13440_v11 = vadd.f32 %v201_v10, %v126_v7 }
  0xdb   :  { %v280_v15 = vpop.f32.mrb[2].mxu0  ;;  %v351_v16 = vpop.f32.mrb[2].mxu1  ;;  %v13426_v8 = vadd.f32 %v202_v4, %v128_v1  ;;  %v13438_v12 = vadd.f32 %v204_v9, %v199_v6  ;;  %v703_v14 = vshrl.u32 %v702_v13, 7 }
  0xdc   :  { %v282_v17 = vpop.f32.mrb[3].mxu0  ;;  %v353_v18 = vpop.f32.mrb[3].mxu1  ;;  %v281_v53 = vadd.f32 %v280_v15, %v13288_v19  ;;  %v352_v59 = vadd.f32 %v351_v16, %v13288_v19 }
  0xdd   :  { %v283_v52 = vadd.f32 %v282_v17, %v13288_v19  ;;  %v354_v57 = vadd.f32 %v353_v18, %v13288_v19  ;;  %v13486_v15 = vsub.s32 1, %v703_v14  ;;  %v13488_v16 = vsub.s32 0, %v703_v14  ;;  %v12567_v17 = vld [vmem:[%s15326_s12 + $0x4] sm:$0xf] }
  0xde   :  { %v13373_v58 = vadd.f32 %v12548_v55, %v281_v53  ;;  %v13388_v63 = vadd.f32 %v12550_v61, %v352_v59  ;;  %v13493_v18 = vsub.s32 2, %v703_v14  ;;  %v13561_v59 = vld [vmem:[%s15327_s4] sm:$0xf] }
  0xdf   :  { %v436_v20 = vpop.f32.mrb[4].mxu0  ;;  %v507_v22 = vpop.f32.mrb[4].mxu1  ;;  %v13370_v56 = vadd.f32 %v12549_v54, %v283_v52  ;;  %v13386_v62 = vadd.f32 %v12551_v60, %v354_v57 }
  0xe0   :  { %v437_v23 = vadd.f32 %v436_v20, %v13288_v19  ;;  %v438_v24 = vpop.f32.mrb[5].mxu0  ;;  %v509_v26 = vpop.f32.mrb[5].mxu1  ;;  %v508_v30 = vadd.f32 %v507_v22, %v13288_v19  ;;  %v13498_v20 = vsub.s32 3, %v703_v14 }
  0xe1   :  { %v439_v27 = vadd.f32 %v438_v24, %v13288_v19  ;;  %v510_v29 = vadd.f32 %v509_v26, %v13288_v19  ;;  %v13506_v26 = vrot.slane %v12567_v17, %v13493_v18 }
  0xe2   :  { %v13298_v28 = vadd.f32 %v12555_v21, %v437_v23  ;;  %v13317_v40 = vadd.f32 %v12557_v35, %v508_v30  ;;  %v13501_v21 = vrot.slane %v12567_v17, %v13488_v16 }
  0xe3   :  { %v13302_v31 = vadd.f32 %v12556_v25, %v439_v27  ;;  %v592_v33 = vpop.f32.mrb[6].mxu0  ;;  %v663_v34 = vpop.f32.mrb[6].mxu1  ;;  %v13314_v38 = vadd.f32 %v12558_v32, %v510_v29  ;;  %v13512_v29 = vrot.slane %v12567_v17, %v13498_v20 }
  0xe4   :  { %v594_v36 = vpop.f32.mrb[7].mxu0  ;;  %v665_v37 = vpop.f32.mrb[7].mxu1  ;;  %732 = vrot.lane.b32.xlu0 %v13298_v28, %s13157_s14  ;;  %v593_v41 = vadd.f32 %v592_v33, %v13288_v19  ;;  %v664_v47 = vadd.f32 %v663_v34, %v13288_v19  ;;  %v13520_v33 = vld [vmem:[%s15327_s4 + $0x4] sm:$0xf]  ;;  %v700_v34 = vld [vmem:[%s15326_s12] sm:$0xf] }
  0xe5   :  { %734 = vrot.lane.b32.xlu1 %v13302_v31, %s13157_s14  ;;  %v595_v39 = vadd.f32 %v594_v36, %v13288_v19  ;;  %v666_v45 = vadd.f32 %v665_v37, %v13288_v19  ;;  %v13496_v19 = vrot.slane %v12567_v17, %v13486_v15  ;;  %v13552_v53 = vrot.slane %v700_v34, %v13493_v18  ;;  %v13584_v17 = vld [vmem:[%s15327_s4 + $0x8] sm:$0xf] }
  0xe6   :  { %v13333_v46 = vadd.f32 %v12562_v43, %v593_v41  ;;  %v13348_v51 = vadd.f32 %v12564_v49, %v664_v47  ;;  %v13535_v41 = vrot.slane %v700_v34, %v13488_v16  ;;  %v13541_v43 = vrot.slane %v700_v34, %v13486_v15 }
  0xe7   :  { %v13330_v44 = vadd.f32 %v12563_v42, %v595_v39  ;;  %v13346_v50 = vadd.f32 %v12565_v48, %v666_v45  ;;  %15363 = vst [vmem:[#allocation2_spill] sm:$0xff] %v13552_v53  ;;  %v13556_v55 = vrot.slane %v700_v34, %v13498_v20 }
  0xe8   :  { %738 = vrot.lane.b32.xlu0 %v13314_v38, %s13157_s14 }
  0xe9   :  { %736 = vrot.lane.b32.xlu1 %v13317_v40, %s13157_s14 }
  0xec   :  { %685 = vrot.lane.b32.xlu0 %v13330_v44, %s13158_s22 }
  0xed   :  { %683 = vrot.lane.b32.xlu1 %v13333_v46, %s13158_s22 }
  0xf0   :  { %689 = vrot.lane.b32.xlu0 %v13346_v50, %s13158_s22 }
  0xf1   :  { %687 = vrot.lane.b32.xlu1 %v13348_v51, %s13158_s22 }
  0xf4   :  { %1070 = vrot.lane.b32.xlu0 %v13330_v44, %s13157_s14 }
  0xf5   :  { %1068 = vrot.lane.b32.xlu1 %v13333_v46, %s13157_s14 }
  0xf8   :  { %1074 = vrot.lane.b32.xlu0 %v13346_v50, %s13157_s14 }
  0xf9   :  { %1072 = vrot.lane.b32.xlu1 %v13348_v51, %s13157_s14 }
  0xfc   :  { %1245 = vrot.lane.b32.xlu0 %v13370_v56, %s13159_s29 }
  0xfd   :  { %1243 = vrot.lane.b32.xlu1 %v13373_v58, %s13159_s29 }
 0x100   :  { %1249 = vrot.lane.b32.xlu0 %v13386_v62, %s13159_s29 }
 0x101   :  { %1247 = vrot.lane.b32.xlu1 %v13388_v63, %s13159_s29 }
 0x104   :  { %1742 = vrot.lane.b32.xlu0 %v13330_v44, %s13159_s29 }
 0x105   :  { %1740 = vrot.lane.b32.xlu1 %v13333_v46, %s13159_s29 }
 0x108   :  { %1746 = vrot.lane.b32.xlu0 %v13346_v50, %s13159_s29 }
 0x109   :  { %1744 = vrot.lane.b32.xlu1 %v13348_v51, %s13159_s29 }
 0x10c   :  { %2506 = vrot.lane.b32.xlu0 %v13302_v31, %s13160_s30 }
 0x10d   :  { %2504 = vrot.lane.b32.xlu1 %v13298_v28, %s13160_s30 }
 0x110   :  { %2510 = vrot.lane.b32.xlu0 %v13314_v38, %s13160_s30 }
 0x111   :  { %2508 = vrot.lane.b32.xlu1 %v13317_v40, %s13160_s30 }
 0x114   :  { %2994 = vrot.lane.b32.xlu0 %v13420_v5, %s13161_s23 }
 0x115   :  { %2992 = vrot.lane.b32.xlu1 %v13426_v8, %s13161_s23 }
 0x118   :  { %2996 = vrot.lane.b32.xlu0 %v13438_v12, %s13161_s23 }
 0x119   :  { %2990 = vrot.lane.b32.xlu1 %v13440_v11, %s13161_s23 }
 0x11c   :  { %3476 = vrot.lane.b32.xlu0 %v13317_v40, %s13161_s23 }
 0x11d   :  { %3474 = vrot.lane.b32.xlu1 %v13302_v31, %s13161_s23 }
 0x120   :  { %3478 = vrot.lane.b32.xlu0 %v13314_v38, %s13161_s23 }
 0x121   :  { %3472 = vrot.lane.b32.xlu1 %v13298_v28, %s13161_s23 }
 0x124   :  { %4514 = vrot.lane.b32.xlu0 %v13388_v63, %s13162_s1 }
 0x125   :  { %4512 = vrot.lane.b32.xlu1 %v13370_v56, %s13162_s1 }
 0x128   :  { %4516 = vrot.lane.b32.xlu0 %v13386_v62, %s13162_s1 }
 0x129   :  { %4510 = vrot.lane.b32.xlu1 %v13373_v58, %s13162_s1 }
 0x12c   :  { %4704 = vrot.lane.b32.xlu0 %v13420_v5, %s13163_s24 }
 0x12d   :  { %4702 = vrot.lane.b32.xlu1 %v13426_v8, %s13163_s24 }
 0x130   :  { %4706 = vrot.lane.b32.xlu0 %v13438_v12, %s13163_s24 }
 0x131   :  { %4700 = vrot.lane.b32.xlu1 %v13440_v11, %s13163_s24 }
 0x134   :  { %4894 = vrot.lane.b32.xlu0 %v13388_v63, %s13163_s24 }
 0x135   :  { %4892 = vrot.lane.b32.xlu1 %v13370_v56, %s13163_s24 }
 0x138   :  { %4896 = vrot.lane.b32.xlu0 %v13386_v62, %s13163_s24 }
 0x139   :  { %4890 = vrot.lane.b32.xlu1 %v13373_v58, %s13163_s24 }
 0x13c   :  { %6224 = vrot.lane.b32.xlu0 %v13420_v5, %s13164_s2 }
 0x13d   :  { %6222 = vrot.lane.b32.xlu1 %v13426_v8, %s13164_s2 }
 0x140   :  { %6226 = vrot.lane.b32.xlu0 %v13438_v12, %s13164_s2 }
 0x141   :  { %6220 = vrot.lane.b32.xlu1 %v13440_v11, %s13164_s2 }
 0x156   :  { %v733_v22 = vpop.permute.xlu0 %732 }
 0x157   :  { %v748_v23 = vsel %vm740_vm1, 0.0, %v733_v22  ;;  %v735_v24 = vpop.permute.xlu1 %734 }
 0x158   :  { %v741_v25 = vsel %vm740_vm1, %v733_v22, %v735_v24  ;;  %v13515_v30 = vmul.f32 %v13501_v21, %v748_v23  ;;  %v12576_v22 = vld [vmem:[%s15326_s12 + $0xc] sm:$0xf] }
 0x159   :  { %v13509_v27 = vmul.f32 %v13496_v19, %v741_v25 }
 0x15a   :  { %v739_v32 = vpop.permute.xlu0 %738 }
 0x15b   :  { %v737_v35 = vpop.permute.xlu1 %736  ;;  %779 = vmatprep.subr.mxu0 %v13509_v27 }
 0x15c   :  { %v742_v36 = vsel %vm740_vm1, %v735_v24, %v737_v35  ;;  %v743_v37 = vsel %vm740_vm1, %v737_v35, %v739_v32  ;;  %780 = vmatpush1.msra.mxu0 %v13515_v30  ;;  %v13603_v35 = vrot.slane %v12576_v22, %v13488_v16 }
 0x15d   :  { %v13530_v39 = vmul.f32 %v13506_v26, %v742_v36  ;;  %12568 = vmatmul.mubr.msk.f32.vlgmr.msra.gmra.mrb[8].mxu0 %vm55_vm0, %v13520_v33  ;;  %v13538_v42 = vmul.f32 %v13512_v29, %v743_v37  ;;  %v13606_v36 = vrot.slane %v12576_v22, %v13486_v15 }
 0x15e   :  { %v686_v45 = vpop.permute.xlu0 %685  ;;  %988 = vmatprep.mubr.f32.mxu0 %v15359_v3  ;;  %15364 = vst [vmem:[#allocation3_spill] sm:$0xff] %v13603_v35 }
 0x15f   :  { %v684_v47 = vpop.permute.xlu1 %683  ;;  %850 = vmatprep.subr.mxu1 %v13538_v42  ;;  %15365 = vst [vmem:[#allocation4_spill] sm:$0xff] %v13606_v36 }
 0x160   :  { %v692_v48 = vsel %vm691_vm2, %v684_v47, %v686_v45  ;;  %v699_v49 = vsel %vm691_vm2, 0.0, %v684_v47  ;;  %851 = vmatpush1.msra.mxu1 %v13530_v39 }
 0x161   :  { %v722_v52 = vmul.f32 %v13535_v41, %v699_v49  ;;  %12569 = vmatmul.mubr.msk.f32.vlgmr.msra.gmra.mrb[8].mxu1 %vm55_vm0, %v13520_v33  ;;  %v723_v54 = vmul.f32 %v13541_v43, %v692_v48 }
 0x162   :  { %v690_v57 = vpop.permute.xlu0 %689  ;;  %1059 = vmatprep.mubr.f32.mxu1 %v15359_v3 }
 0x163   :  { %v688_v60 = vpop.permute.xlu1 %687  ;;  %924 = vmatprep.subr.mxu0 %v723_v54  ;;  %v13622_v54 = vrot.slane %v12576_v22, %v13493_v18 }
 0x164   :  { %v693_v61 = vsel %vm691_vm2, %v686_v45, %v688_v60  ;;  %v694_v0 = vsel %vm691_vm2, %v688_v60, %v690_v57  ;;  %925 = vmatpush1.msra.mxu0 %v722_v52  ;;  %v13625_v57 = vrot.slane %v12576_v22, %v13498_v20  ;;  %v677_v60 = vld [vmem:[%s15328_s5] sm:$0xf] }
 0x165   :  { %v724_v1 = vmul.f32 %v13552_v53, %v693_v61  ;;  %12570 = vmatmul.mubr.msk.f32.vlgmr.msra.gmra.mrb[8].mxu0 %vm55_vm0, %v13561_v59  ;;  %v725_v2 = vmul.f32 %v13556_v55, %v694_v0  ;;  %15366 = vst [vmem:[#allocation5_spill] sm:$0xff] %v13622_v54  ;;  %v13633_v0 = vld [vmem:[%s15327_s4 + $0xc] sm:$0xf]  ;;  %2213 = vperm.xlu1 %13150, %v677_v60   ;;  %v13685_v60 = vld [vmem:[%s15327_s4 + $0x14] sm:$0xf] }
 0x166   :  { %v1071_v4 = vpop.permute.xlu0 %1070  ;;  %1155 = vmatprep.mubr.f32.mxu0 %v15359_v3  ;;  %15367 = vst [vmem:[#allocation6_spill] sm:$0xff] %v13625_v57 }
 0x167   :  { %v1069_v6 = vpop.permute.xlu1 %1068  ;;  %995 = vmatprep.subr.mxu1 %v725_v2 }
 0x168   :  { %v1076_v7 = vsel %vm740_vm1, %v1069_v6, %v1071_v4  ;;  %v1083_v9 = vsel %vm740_vm1, 0.0, %v1069_v6  ;;  %996 = vmatpush1.msra.mxu1 %v724_v1 }
 0x169   :  { %v13574_v10 = vmul.f32 %v1083_v9, %v13501_v21  ;;  %12571 = vmatmul.mubr.msk.f32.vlgmr.msra.gmra.mrb[8].mxu1 %vm55_vm0, %v13561_v59  ;;  %v13579_v13 = vmul.f32 %v1076_v7, %v13496_v19 }
 0x16a   :  { %v1075_v14 = vpop.permute.xlu0 %1074  ;;  %1226 = vmatprep.mubr.f32.mxu1 %v15359_v3 }
 0x16b   :  { %v1073_v23 = vpop.permute.xlu1 %1072  ;;  %1091 = vmatprep.subr.mxu0 %v13579_v13 }
 0x16c   :  { %v1077_v24 = vsel %vm740_vm1, %v1071_v4, %v1073_v23  ;;  %v1078_v25 = vsel %vm740_vm1, %v1073_v23, %v1075_v14  ;;  %1092 = vmatpush1.msra.mxu0 %v13574_v10  ;;  %v13662_v23 = vld [vmem:[%s15327_s4 + $0x10] sm:$0xf] }
 0x16d   :  { %v13595_v32 = vmul.f32 %v1077_v24, %v13506_v26  ;;  %12573 = vmatmul.mubr.msk.f32.vlgmr.msra.gmra.mrb[8].mxu0 %vm55_vm0, %v13584_v17  ;;  %v13600_v34 = vmul.f32 %v1078_v25, %v13512_v29 }
 0x16e   :  { %v1246_v37 = vpop.permute.xlu0 %1245  ;;  %1354 = vmatprep.mubr.f32.mxu0 %v15359_v3 }
 0x16f   :  { %1162 = vmatprep.subr.mxu1 %v13600_v34  ;;  %v1244_v45 = vpop.permute.xlu1 %1243 }
 0x170   :  { %v1252_v47 = vsel %vm1251_vm3, %v1244_v45, %v1246_v37  ;;  %v1259_v48 = vsel %vm1251_vm3, 0.0, %v1244_v45  ;;  %1163 = vmatpush1.msra.mxu1 %v13595_v32 }
 0x171   :  { %v13614_v49 = vmul.f32 %v13603_v35, %v1259_v48  ;;  %12574 = vmatmul.mubr.msk.f32.vlgmr.msra.gmra.mrb[8].mxu1 %vm55_vm0, %v13584_v17  ;;  %v13619_v52 = vmul.f32 %v13606_v36, %v1252_v47 }
 0x172   :  { %v1250_v61 = vpop.permute.xlu0 %1249  ;;  %1425 = vmatprep.mubr.f32.mxu1 %v15359_v3 }
 0x173   :  { %1290 = vmatprep.subr.mxu0 %v13619_v52  ;;  %v1248_v1 = vpop.permute.xlu1 %1247 }
 0x174   :  { %v1253_v2 = vsel %vm1251_vm3, %v1246_v37, %v1248_v1  ;;  %v1254_v4 = vsel %vm1251_vm3, %v1248_v1, %v1250_v61  ;;  %1291 = vmatpush1.msra.mxu0 %v13614_v49 }
 0x175   :  { %v13641_v6 = vmul.f32 %v13622_v54, %v1253_v2  ;;  %12577 = vmatmul.mubr.msk.f32.vlgmr.msra.gmra.mrb[8].mxu0 %vm55_vm0, %v13633_v0  ;;  %1441 = vmatprep.subr.mxu0 %v13426_v8  ;;  %v13647_v7 = vmul.f32 %v13625_v57, %v1254_v4  ;;  %v13707_v4 = vld [vmem:[%s15327_s4 + $0x18] sm:$0xf] }
 0x176   :  { %v1743_v9 = vpop.permute.xlu0 %1742  ;;  %1442 = vmatpush1.msra.mxu0 %v13440_v11  ;;  %1505 = vmatprep.mubr.f32.mxu0 %v15359_v3 }
 0x177   :  { %1361 = vmatprep.subr.mxu1 %v13647_v7  ;;  %v1741_v14 = vpop.permute.xlu1 %1740  ;;  %1592 = vmatprep.subr.mxu0 %v13370_v56 }
 0x178   :  { %1362 = vmatpush1.msra.mxu1 %v13641_v6  ;;  %v1748_v22 = vsel %vm1251_vm3, %v1741_v14, %v1743_v9  ;;  %v1755_v47 = vsel %vm1251_vm3, 0.0, %v1741_v14 }
 0x179   :  { %12578 = vmatmul.mubr.msk.f32.vlgmr.msra.gmra.mrb[8].mxu1 %vm55_vm0, %v13633_v0  ;;  %1512 = vmatprep.subr.mxu1 %v13438_v12  ;;  %v13669_v37 = vmul.f32 %v1748_v22, %v13606_v36  ;;  %v13690_v61 = vmul.f32 %v1755_v47, %v13603_v35 }
 0x17a   :  { %1513 = vmatpush1.msra.mxu1 %v13420_v5  ;;  %1576 = vmatprep.mubr.f32.mxu1 %v15359_v3  ;;  %v1747_v24 = vpop.permute.xlu0 %1746 }
 0x17b   :  { %1663 = vmatprep.subr.mxu1 %v13386_v62  ;;  %v1745_v25 = vpop.permute.xlu1 %1744 }
 0x17c   :  { %v1750_v45 = vsel %vm1251_vm3, %v1745_v25, %v1747_v24  ;;  %v1749_v1 = vsel %vm1251_vm3, %v1743_v9, %v1745_v25  ;;  %v13722_v9 = vld [vmem:[%s15327_s4 + $0x1c] sm:$0xf]  ;;  %v12598_v24 = vld [vmem:[%s15326_s12 + $0x8] sm:$0xf]  ;;  %v13740_v25 = vld [vmem:[%s15327_s4 + $0x20] sm:$0xf] }
 0x17d   :  { %12580 = vmatmul.mubr.msk.f32.vlgmr.msra.gmra.mrb[8].mxu0 %vm55_vm0, %v13662_v23  ;;  %v13679_v48 = vmul.f32 %v1750_v45, %v13625_v57  ;;  %v13699_v2 = vmul.f32 %v1749_v1, %v13622_v54 }
 0x17e   :  { %1593 = vmatpush1.msra.mxu0 %v13373_v58  ;;  %1656 = vmatprep.mubr.f32.mxu0 %v15359_v3  ;;  %v2507_v14 = vpop.permute.xlu0 %2506 }
 0x17f   :  { %1763 = vmatprep.subr.mxu0 %v13669_v37  ;;  %v2505_v22 = vpop.permute.xlu1 %2504 }
 0x180   :  { %v2513_v45 = vsel %vm2512_vm4, %v2505_v22, %v2507_v14 }
 0x181   :  { %12581 = vmatmul.mubr.msk.f32.vlgmr.msra.gmra.mrb[8].mxu1 %vm55_vm0, %v13662_v23 }
 0x182   :  { %1664 = vmatpush1.msra.mxu1 %v13388_v63  ;;  %1727 = vmatprep.mubr.f32.mxu1 %v15359_v3  ;;  %v2511_v47 = vpop.permute.xlu0 %2510 }
 0x183   :  { %1834 = vmatprep.subr.mxu1 %v13679_v48  ;;  %v2509_v1 = vpop.permute.xlu1 %2508 }
 0x184   :  { %v2515_v57 = vsel %vm2512_vm4, %v2509_v1, %v2511_v47 }
 0x185   :  { %12583 = vmatmul.mubr.msk.f32.vlgmr.msra.gmra.mrb[8].mxu0 %vm55_vm0, %v13685_v60 }
 0x186   :  { %1764 = vmatpush1.msra.mxu0 %v13690_v61  ;;  %1827 = vmatprep.mubr.f32.mxu0 %v15359_v3 }
 0x187   :  { %1914 = vmatprep.subr.mxu0 %v13302_v31 }
 0x189   :  { %12584 = vmatmul.mubr.msk.f32.vlgmr.msra.gmra.mrb[8].mxu1 %vm55_vm0, %v13685_v60 }
 0x18a   :  { %1835 = vmatpush1.msra.mxu1 %v13699_v2  ;;  %1898 = vmatprep.mubr.f32.mxu1 %v15359_v3 }
 0x18b   :  { %1985 = vmatprep.subr.mxu1 %v13314_v38 }
 0x18d   :  { %12586 = vmatmul.mubr.msk.f32.vlgmr.msra.gmra.mrb[8].mxu0 %vm55_vm0, %v13707_v4 }
 0x18e   :  { %1915 = vmatpush1.msra.mxu0 %v13298_v28  ;;  %1978 = vmatprep.mubr.f32.mxu0 %v15359_v3 }
 0x18f   :  { %2065 = vmatprep.subr.mxu0 %v13330_v44 }
 0x191   :  { %12587 = vmatmul.mubr.msk.f32.vlgmr.msra.gmra.mrb[8].mxu1 %vm55_vm0, %v13707_v4 }
 0x192   :  { %1986 = vmatpush1.msra.mxu1 %v13317_v40  ;;  %2049 = vmatprep.mubr.f32.mxu1 %v15359_v3 }
 0x193   :  { %2136 = vmatprep.subr.mxu1 %v13346_v50 }
 0x195   :  { %12589 = vmatmul.mubr.msk.f32.vlgmr.msra.gmra.mrb[8].mxu0 %vm55_vm0, %v13722_v9 }
 0x196   :  { %2066 = vmatpush1.msra.mxu0 %v13333_v46  ;;  %2129 = vmatprep.mubr.f32.mxu0 %v15359_v3 }
 0x197   :  { %2220 = vmatprep.subr.mxu0 %v13579_v13  ;;  %v13745_v13 = vrot.slane %v12598_v24, %v13486_v15 }
 0x199   :  { %12590 = vmatmul.mubr.msk.f32.vlgmr.msra.gmra.mrb[8].mxu1 %vm55_vm0, %v13722_v9  ;;  %15368 = vst [vmem:[#allocation7_spill] sm:$0xff] %v13745_v13  ;;  %v2545_v54 = vmul.f32 %v13745_v13, %v2513_v45 }
 0x19a   :  { %2137 = vmatpush1.msra.mxu1 %v13348_v51  ;;  %2200 = vmatprep.mubr.f32.mxu1 %v15359_v3 }
 0x19b   :  { %2291 = vmatprep.subr.mxu1 %v13600_v34  ;;  %v13755_v34 = vrot.slane %v12598_v24, %v13498_v20 }
 0x19d   :  { %12592 = vmatmul.mubr.msk.f32.vlgmr.msra.gmra.mrb[8].mxu0 %vm55_vm0, %v13740_v25  ;;  %15369 = vst [vmem:[#allocation8_spill] sm:$0xff] %v13755_v34  ;;  %v2547_v45 = vmul.f32 %v13755_v34, %v2515_v57  ;;  %v12605_v57 = vld [vmem:[%s15326_s12 + $0x14] sm:$0xf] }
 0x19e   :  { %2221 = vmatpush1.msra.mxu0 %v13574_v10  ;;  %2284 = vmatprep.mubr.f32.mxu0 %v15359_v3  ;;  %v2520_v10 = vsel %vm2512_vm4, 0.0, %v2505_v22  ;;  %v13799_v22 = vrot.slane %v12605_v57, %v13486_v15 }
 0x19f   :  { %2362 = vmatprep.subr.mxu0 %v13509_v27  ;;  %v13766_v27 = vrot.slane %v12598_v24, %v13488_v16 }
 0x1a0   :  { %15372 = vst [vmem:[#allocation11_spill] sm:$0xff] %v13799_v22 }
 0x1a1   :  { %12593 = vmatmul.mubr.msk.f32.vlgmr.msra.gmra.mrb[8].mxu1 %vm55_vm0, %v13740_v25  ;;  %12594 = vmatmul.mubr.msk.f32.vlgmr.msra.gmra.mrb[10].mxu0 %vm55_vm0, %v13520_v33  ;;  %15370 = vst [vmem:[#allocation9_spill] sm:$0xff] %v13766_v27 }
 0x1a2   :  { %2292 = vmatpush1.msra.mxu1 %v13595_v32  ;;  %2363 = vmatpush1.msra.mxu0 %v13515_v30  ;;  %v2544_v30 = vmul.f32 %v13766_v27, %v2520_v10  ;;  %v2514_v32 = vsel %vm2512_vm4, %v2507_v14, %v2509_v1  ;;  %v2993_v14 = vpop.permute.xlu1 %2992  ;;  %v13811_v10 = vrot.slane %v12605_v57, %v13498_v20 }
 0x1a3   :  { %2433 = vmatprep.subr.mxu1 %v13538_v42  ;;  %2548 = vmatprep.subr.mxu0 %v2545_v54  ;;  %v13778_v42 = vrot.slane %v12598_v24, %v13493_v18  ;;  %v2995_v54 = vpop.permute.xlu0 %2994 }
 0x1a4   :  { %2355 = vmatprep.mubr.f32.mxu1 %v15359_v3  ;;  %2426 = vmatprep.mubr.f32.mxu0 %v15359_v3  ;;  %v3000_v24 = vsel %vm2998_vm5, %v2993_v14, %v2995_v54  ;;  %15373 = vst [vmem:[#allocation12_spill] sm:$0xff] %v13811_v10 }
 0x1a5   :  { %12595 = vmatmul.mubr.msk.f32.vlgmr.msra.gmra.mrb[10].mxu1 %vm55_vm0, %v13520_v33  ;;  %15371 = vst [vmem:[#allocation10_spill] sm:$0xff] %v13778_v42  ;;  %v13808_v1 = vmul.f32 %v13799_v22, %v3000_v24 }
 0x1a6   :  { %2434 = vmatpush1.msra.mxu1 %v13530_v39  ;;  %2497 = vmatprep.mubr.f32.mxu1 %v15359_v3  ;;  %v2546_v39 = vmul.f32 %v13778_v42, %v2514_v32  ;;  %v13820_v32 = vrot.slane %v12605_v57, %v13488_v16  ;;  %v13832_v42 = vrot.slane %v12605_v57, %v13493_v18 }
 0x1a7   :  { %2619 = vmatprep.subr.mxu1 %v2547_v45  ;;  %v2997_v47 = vpop.permute.xlu0 %2996 }
 0x1a8   :  { %v3006_v45 = vsel %vm2998_vm5, %v2997_v47, 0.0  ;;  %15374 = vst [vmem:[#allocation13_spill] sm:$0xff] %v13820_v32  ;;  %15375 = vst [vmem:[#allocation14_spill] sm:$0xff] %v13832_v42 }
 0x1a9   :  { %12596 = vmatmul.mubr.msk.f32.vlgmr.msra.gmra.mrb[10].mxu0 %vm55_vm0, %v13561_v59 }
 0x1aa   :  { %2549 = vmatpush1.msra.mxu0 %v2544_v30  ;;  %2612 = vmatprep.mubr.f32.mxu0 %v15359_v3  ;;  %v2991_v30 = vpop.permute.xlu1 %2990 }
 0x1ab   :  { %2694 = vmatprep.subr.mxu0 %v13426_v8  ;;  %v2999_v24 = vsel %vm2998_vm5, %v2991_v30, %v2993_v14 }
 0x1ac   :  { %v13835_v27 = vmul.f32 %v13820_v32, %v2999_v24 }
 0x1ad   :  { %12597 = vmatmul.mubr.msk.f32.vlgmr.msra.gmra.mrb[10].mxu1 %vm55_vm0, %v13561_v59 }
 0x1ae   :  { %2620 = vmatpush1.msra.mxu1 %v2546_v39  ;;  %2683 = vmatprep.mubr.f32.mxu1 %v15359_v3  ;;  %v13823_v39 = vmul.f32 %v13811_v10, %v3006_v45  ;;  %v3001_v45 = vsel %vm2998_vm5, %v2995_v54, %v2997_v47  ;;  %v3477_v54 = vpop.permute.xlu0 %3476  ;;  %v3475_v57 = vpop.permute.xlu1 %3474 }
 0x1af   :  { %2765 = vmatprep.subr.mxu1 %v13438_v12  ;;  %v13844_v14 = vmul.f32 %v13832_v42, %v3001_v45  ;;  %v3481_v47 = vsel %vm2998_vm5, %v3475_v57, %v3477_v54 }
 0x1b0   :  { %v13863_v24 = vmul.f32 %v3481_v47, %v13799_v22 }
 0x1b1   :  { %12599 = vmatmul.mubr.msk.f32.vlgmr.msra.gmra.mrb[10].mxu0 %vm55_vm0, %v13584_v17 }
 0x1b2   :  { %2695 = vmatpush1.msra.mxu0 %v13440_v11  ;;  %2758 = vmatprep.mubr.f32.mxu0 %v15359_v3  ;;  %v3479_v30 = vpop.permute.xlu0 %3478  ;;  %v3473_v34 = vpop.permute.xlu1 %3472 }
 0x1b3   :  { %2840 = vmatprep.subr.mxu0 %v13370_v56  ;;  %v3487_v45 = vsel %vm2998_vm5, %v3479_v30, 0.0  ;;  %v3480_v35 = vsel %vm2998_vm5, %v3473_v34, %v3475_v57  ;;  %v3482_v22 = vsel %vm2998_vm5, %v3477_v54, %v3479_v30  ;;  %v12629_v30 = vld [vmem:[%s15326_s12 + $0x1c] sm:$0xf] }
 0x1b4   :  { %v13872_v13 = vmul.f32 %v3487_v45, %v13811_v10  ;;  %v13881_v47 = vmul.f32 %v3480_v35, %v13820_v32  ;;  %v13890_v34 = vmul.f32 %v3482_v22, %v13832_v42  ;;  %v13972_v32 = vrot.slane %v12629_v30, %v13486_v15 }
 0x1b5   :  { %12600 = vmatmul.mubr.msk.f32.vlgmr.msra.gmra.mrb[10].mxu1 %vm55_vm0, %v13584_v17 }
 0x1b6   :  { %2766 = vmatpush1.msra.mxu1 %v13420_v5  ;;  %2829 = vmatprep.mubr.f32.mxu1 %v15359_v3  ;;  %v4515_v35 = vpop.permute.xlu0 %4514 }
 0x1b7   :  { %2911 = vmatprep.subr.mxu1 %v13386_v62 }
 0x1b9   :  { %12601 = vmatmul.mubr.msk.f32.vlgmr.msra.gmra.mrb[10].mxu0 %vm55_vm0, %v13633_v0 }
 0x1ba   :  { %2841 = vmatpush1.msra.mxu0 %v13373_v58  ;;  %2904 = vmatprep.mubr.f32.mxu0 %v15359_v3 }
 0x1bb   :  { %3034 = vmatprep.subr.mxu0 %v13808_v1 }
 0x1bd   :  { %12602 = vmatmul.mubr.msk.f32.vlgmr.msra.gmra.mrb[10].mxu1 %vm55_vm0, %v13633_v0 }
 0x1be   :  { %2912 = vmatpush1.msra.mxu1 %v13388_v63  ;;  %2975 = vmatprep.mubr.f32.mxu1 %v15359_v3 }
 0x1bf   :  { %3105 = vmatprep.subr.mxu1 %v13823_v39 }
 0x1c1   :  { %12603 = vmatmul.mubr.msk.f32.vlgmr.msra.gmra.mrb[10].mxu0 %vm55_vm0, %v13662_v23 }
 0x1c2   :  { %3035 = vmatpush1.msra.mxu0 %v13835_v27  ;;  %3098 = vmatprep.mubr.f32.mxu0 %v15359_v3 }
 0x1c3   :  { %3180 = vmatprep.subr.mxu0 %v13302_v31 }
 0x1c5   :  { %12604 = vmatmul.mubr.msk.f32.vlgmr.msra.gmra.mrb[10].mxu1 %vm55_vm0, %v13662_v23 }
 0x1c6   :  { %3106 = vmatpush1.msra.mxu1 %v13844_v14  ;;  %3169 = vmatprep.mubr.f32.mxu1 %v15359_v3 }
 0x1c7   :  { %3251 = vmatprep.subr.mxu1 %v13314_v38 }
 0x1c9   :  { %12606 = vmatmul.mubr.msk.f32.vlgmr.msra.gmra.mrb[10].mxu0 %vm55_vm0, %v13685_v60 }
 0x1ca   :  { %3181 = vmatpush1.msra.mxu0 %v13298_v28  ;;  %3244 = vmatprep.mubr.f32.mxu0 %v15359_v3 }
 0x1cb   :  { %3326 = vmatprep.subr.mxu0 %v13330_v44 }
 0x1cd   :  { %12607 = vmatmul.mubr.msk.f32.vlgmr.msra.gmra.mrb[10].mxu1 %vm55_vm0, %v13685_v60 }
 0x1ce   :  { %3252 = vmatpush1.msra.mxu1 %v13317_v40  ;;  %3315 = vmatprep.mubr.f32.mxu1 %v15359_v3 }
 0x1cf   :  { %3397 = vmatprep.subr.mxu1 %v13346_v50 }
 0x1d1   :  { %12608 = vmatmul.mubr.msk.f32.vlgmr.msra.gmra.mrb[10].mxu0 %vm55_vm0, %v13707_v4 }
 0x1d2   :  { %3327 = vmatpush1.msra.mxu0 %v13333_v46  ;;  %3390 = vmatprep.mubr.f32.mxu0 %v15359_v3 }
 0x1d3   :  { %3492 = vmatprep.subr.mxu0 %v13863_v24 }
 0x1d5   :  { %12609 = vmatmul.mubr.msk.f32.vlgmr.msra.gmra.mrb[10].mxu1 %vm55_vm0, %v13707_v4 }
 0x1d6   :  { %3398 = vmatpush1.msra.mxu1 %v13348_v51  ;;  %3461 = vmatprep.mubr.f32.mxu1 %v15359_v3 }
 0x1d7   :  { %3563 = vmatprep.subr.mxu1 %v13872_v13 }
 0x1d9   :  { %12610 = vmatmul.mubr.msk.f32.vlgmr.msra.gmra.mrb[10].mxu0 %vm55_vm0, %v13722_v9 }
 0x1da   :  { %3493 = vmatpush1.msra.mxu0 %v13881_v47  ;;  %3556 = vmatprep.mubr.f32.mxu0 %v15359_v3 }
 0x1db   :  { %3642 = vmatprep.subr.mxu0 %v13426_v8 }
 0x1dd   :  { %12611 = vmatmul.mubr.msk.f32.vlgmr.msra.gmra.mrb[10].mxu1 %vm55_vm0, %v13722_v9 }
 0x1de   :  { %3564 = vmatpush1.msra.mxu1 %v13890_v34  ;;  %3627 = vmatprep.mubr.f32.mxu1 %v15359_v3 }
 0x1df   :  { %3713 = vmatprep.subr.mxu1 %v13438_v12 }
 0x1e1   :  { %12612 = vmatmul.mubr.msk.f32.vlgmr.msra.gmra.mrb[10].mxu0 %vm55_vm0, %v13740_v25 }
 0x1e2   :  { %3643 = vmatpush1.msra.mxu0 %v13440_v11  ;;  %3706 = vmatprep.mubr.f32.mxu0 %v15359_v3 }
 0x1e3   :  { %3784 = vmatprep.subr.mxu0 %v13619_v52  ;;  %v4517_v52 = vpop.permute.xlu0 %4516 }
 0x1e4   :  { %v4526_v57 = vsel %vm4518_vm6, %v4517_v52, 0.0 }
 0x1e5   :  { %12613 = vmatmul.mubr.msk.f32.vlgmr.msra.gmra.mrb[10].mxu1 %vm55_vm0, %v13740_v25  ;;  %12614 = vmatmul.mubr.msk.f32.vlgmr.msra.gmra.mrb[12].mxu0 %vm55_vm0, %v13520_v33 }
 0x1e6   :  { %3714 = vmatpush1.msra.mxu1 %v13420_v5  ;;  %3785 = vmatpush1.msra.mxu0 %v13614_v49  ;;  %v4513_v49 = vpop.permute.xlu1 %4512 }
 0x1e7   :  { %3855 = vmatprep.subr.mxu1 %v13647_v7  ;;  %3926 = vmatprep.subr.mxu0 %v13370_v56  ;;  %v12626_v7 = vld [vmem:[%s15326_s12 + $0x18] sm:$0xf] }
 0x1e8   :  { %3777 = vmatprep.mubr.f32.mxu1 %v15359_v3  ;;  %3848 = vmatprep.mubr.f32.mxu0 %v15359_v3  ;;  %v13956_v54 = vrot.slane %v12626_v7, %v13498_v20 }
 0x1e9   :  { %12615 = vmatmul.mubr.msk.f32.vlgmr.msra.gmra.mrb[12].mxu1 %vm55_vm0, %v13520_v33 }
 0x1ea   :  { %3856 = vmatpush1.msra.mxu1 %v13641_v6  ;;  %3919 = vmatprep.mubr.f32.mxu1 %v15359_v3  ;;  %v4511_v6 = vpop.permute.xlu1 %4510  ;;  %15377 = vst [vmem:[#allocation16_spill] sm:$0xff] %v13956_v54 }
 0x1eb   :  { %3997 = vmatprep.subr.mxu1 %v13386_v62  ;;  %v4519_v42 = vsel %vm4518_vm6, %v4511_v6, %v4513_v49 }
 0x1ed   :  { %12616 = vmatmul.mubr.msk.f32.vlgmr.msra.gmra.mrb[12].mxu0 %vm55_vm0, %v13561_v59 }
 0x1ee   :  { %3927 = vmatpush1.msra.mxu0 %v13373_v58  ;;  %3990 = vmatprep.mubr.f32.mxu0 %v15359_v3 }
 0x1ef   :  { %4072 = vmatprep.subr.mxu0 %v13669_v37  ;;  %v13946_v37 = vrot.slane %v12626_v7, %v13486_v15 }
 0x1f1   :  { %12617 = vmatmul.mubr.msk.f32.vlgmr.msra.gmra.mrb[12].mxu1 %vm55_vm0, %v13561_v59  ;;  %15376 = vst [vmem:[#allocation15_spill] sm:$0xff] %v13946_v37 }
 0x1f2   :  { %3998 = vmatpush1.msra.mxu1 %v13388_v63  ;;  %4061 = vmatprep.mubr.f32.mxu1 %v15359_v3 }
 0x1f3   :  { %4143 = vmatprep.subr.mxu1 %v13679_v48  ;;  %v4705_v48 = vpop.permute.xlu0 %4704 }
 0x1f5   :  { %12618 = vmatmul.mubr.msk.f32.vlgmr.msra.gmra.mrb[12].mxu0 %vm55_vm0, %v13584_v17 }
 0x1f6   :  { %4073 = vmatpush1.msra.mxu0 %v13690_v61  ;;  %4136 = vmatprep.mubr.f32.mxu0 %v15359_v3  ;;  %v4520_v61 = vsel %vm4518_vm6, %v4513_v49, %v4515_v35  ;;  %v4521_v49 = vsel %vm4518_vm6, %v4515_v35, %v4517_v52 }
 0x1f7   :  { %4218 = vmatprep.subr.mxu0 %v13302_v31  ;;  %v4551_v22 = vmul.f32 %v13946_v37, %v4520_v61  ;;  %v4707_v45 = vpop.permute.xlu0 %4706  ;;  %v13967_v61 = vrot.slane %v12626_v7, %v13488_v16  ;;  %v4553_v37 = vmul.f32 %v13956_v54, %v4526_v57  ;;  %v13988_v54 = vrot.slane %v12629_v30, %v13498_v20 }
 0x1f9   :  { %12619 = vmatmul.mubr.msk.f32.vlgmr.msra.gmra.mrb[12].mxu1 %vm55_vm0, %v13584_v17  ;;  %15378 = vst [vmem:[#allocation17_spill] sm:$0xff] %v13967_v61  ;;  %v4550_v57 = vmul.f32 %v13967_v61, %v4519_v42 }
 0x1fa   :  { %4144 = vmatpush1.msra.mxu1 %v13699_v2  ;;  %4207 = vmatprep.mubr.f32.mxu1 %v15359_v3  ;;  %v4703_v2 = vpop.permute.xlu1 %4702 }
 0x1fb   :  { %4289 = vmatprep.subr.mxu1 %v13314_v38  ;;  %v4710_v36 = vsel %vm4708_vm7, %v4703_v2, %v4705_v48  ;;  %v4895_v53 = vpop.permute.xlu0 %4894 }
 0x1fc   :  { %v13985_v6 = vmul.f32 %v13972_v32, %v4710_v36  ;;  %v13997_v36 = vrot.slane %v12629_v30, %v13488_v16 }
 0x1fd   :  { %12620 = vmatmul.mubr.msk.f32.vlgmr.msra.gmra.mrb[12].mxu0 %vm55_vm0, %v13633_v0 }
 0x1fe   :  { %4219 = vmatpush1.msra.mxu0 %v13298_v28  ;;  %4282 = vmatprep.mubr.f32.mxu0 %v15359_v3  ;;  %v4701_v10 = vpop.permute.xlu1 %4700 }
 0x1ff   :  { %4364 = vmatprep.subr.mxu0 %v13330_v44  ;;  %v4709_v52 = vsel %vm4708_vm7, %v4701_v10, %v4703_v2  ;;  %v4897_v61 = vpop.permute.xlu0 %4896 }
 0x200   :  { %v4905_v2 = vsel %vm4708_vm7, %v4897_v61, 0.0 }
 0x201   :  { %12621 = vmatmul.mubr.msk.f32.vlgmr.msra.gmra.mrb[12].mxu1 %vm55_vm0, %v13633_v0 }
 0x202   :  { %4290 = vmatpush1.msra.mxu1 %v13317_v40  ;;  %4353 = vmatprep.mubr.f32.mxu1 %v15359_v3 }
 0x203   :  { %4435 = vmatprep.subr.mxu1 %v13346_v50 }
 0x205   :  { %12622 = vmatmul.mubr.msk.f32.vlgmr.msra.gmra.mrb[12].mxu0 %vm55_vm0, %v13662_v23 }
 0x206   :  { %4365 = vmatpush1.msra.mxu0 %v13333_v46  ;;  %4428 = vmatprep.mubr.f32.mxu0 %v15359_v3 }
 0x207   :  { %4554 = vmatprep.subr.mxu0 %v4551_v22  ;;  %v13980_v22 = vrot.slane %v12626_v7, %v13493_v18  ;;  %v4893_v7 = vpop.permute.xlu1 %4892 }
 0x209   :  { %12623 = vmatmul.mubr.msk.f32.vlgmr.msra.gmra.mrb[12].mxu1 %vm55_vm0, %v13662_v23  ;;  %15379 = vst [vmem:[#allocation18_spill] sm:$0xff] %v13980_v22  ;;  %v4552_v42 = vmul.f32 %v13980_v22, %v4521_v49  ;;  %v14009_v49 = vrot.slane %v12629_v30, %v13493_v18  ;;  %v14012_v22 = vmul.f32 %v13997_v36, %v4709_v52 }
 0x20a   :  { %4436 = vmatpush1.msra.mxu1 %v13348_v51  ;;  %4499 = vmatprep.mubr.f32.mxu1 %v15359_v3  ;;  %v4716_v3 = vsel %vm4708_vm7, %v4707_v45, 0.0 }
 0x20b   :  { %4625 = vmatprep.subr.mxu1 %v4553_v37  ;;  %v15380_v37 = vmov 0.0   ;;  %v14000_v35 = vmul.f32 %v13988_v54, %v4716_v3  ;;  %v4711_v3 = vsel %vm4708_vm7, %v4705_v48, %v4707_v45  ;;  %v14028_v48 = vmul.f32 %v4905_v2, %v13988_v54 }
 0x20c   :  { %v14025_v30 = vmul.f32 %v14009_v49, %v4711_v3 }
 0x20d   :  { %12624 = vmatmul.mubr.msk.f32.vlgmr.msra.gmra.mrb[12].mxu0 %vm55_vm0, %v13685_v60 }
 0x20e   :  { %4555 = vmatpush1.msra.mxu0 %v4550_v57  ;;  %4618 = vmatprep.mubr.f32.mxu0 %v15380_v37  ;;  %v4899_v57 = vsel %vm4708_vm7, %v4893_v7, %v4895_v53 }
 0x20f   :  { %4744 = vmatprep.subr.mxu0 %v13985_v6  ;;  %v14016_v10 = vmul.f32 %v4899_v57, %v13972_v32  ;;  %v4900_v57 = vsel %vm4708_vm7, %v4895_v53, %v4897_v61 }
 0x211   :  { %12625 = vmatmul.mubr.msk.f32.vlgmr.msra.gmra.mrb[12].mxu1 %vm55_vm0, %v13685_v60 }
 0x212   :  { %4626 = vmatpush1.msra.mxu1 %v4552_v42  ;;  %4689 = vmatprep.mubr.f32.mxu1 %v15380_v37  ;;  %v4891_v42 = vpop.permute.xlu1 %4890 }
 0x213   :  { %4815 = vmatprep.subr.mxu1 %v14000_v35  ;;  %v4898_v45 = vsel %vm4708_vm7, %v4891_v42, %v4893_v7  ;;  %v14046_v7 = vmul.f32 %v4900_v57, %v14009_v49 }
 0x214   :  { %v14037_v52 = vmul.f32 %v4898_v45, %v13997_v36 }
 0x215   :  { %12627 = vmatmul.mubr.msk.f32.vlgmr.msra.gmra.mrb[12].mxu0 %vm55_vm0, %v13707_v4 }
 0x216   :  { %4745 = vmatpush1.msra.mxu0 %v14012_v22  ;;  %4808 = vmatprep.mubr.f32.mxu0 %v15380_v37 }
 0x217   :  { %4910 = vmatprep.subr.mxu0 %v14016_v10 }
 0x219   :  { %12628 = vmatmul.mubr.msk.f32.vlgmr.msra.gmra.mrb[12].mxu1 %vm55_vm0, %v13707_v4 }
 0x21a   :  { %4816 = vmatpush1.msra.mxu1 %v14025_v30  ;;  %4879 = vmatprep.mubr.f32.mxu1 %v15380_v37 }
 0x21b   :  { %4981 = vmatprep.subr.mxu1 %v14028_v48 }
 0x21d   :  { %12630 = vmatmul.mubr.msk.f32.vlgmr.msra.gmra.mrb[12].mxu0 %vm55_vm0, %v13722_v9 }
 0x21e   :  { %4911 = vmatpush1.msra.mxu0 %v14037_v52  ;;  %4974 = vmatprep.mubr.f32.mxu0 %v15380_v37 }
 0x21f   :  { %5060 = vmatprep.subr.mxu0 %v13370_v56 }
 0x221   :  { %12631 = vmatmul.mubr.msk.f32.vlgmr.msra.gmra.mrb[12].mxu1 %vm55_vm0, %v13722_v9 }
 0x222   :  { %4982 = vmatpush1.msra.mxu1 %v14046_v7  ;;  %5045 = vmatprep.mubr.f32.mxu1 %v15380_v37 }
 0x223   :  { %5131 = vmatprep.subr.mxu1 %v13386_v62 }
 0x225   :  { %12632 = vmatmul.mubr.msk.f32.vlgmr.msra.gmra.mrb[12].mxu0 %vm55_vm0, %v13740_v25 }
 0x226   :  { %5061 = vmatpush1.msra.mxu0 %v13373_v58  ;;  %5124 = vmatprep.mubr.f32.mxu0 %v15380_v37 }
 0x227   :  { %5202 = vmatprep.subr.mxu0 %v13426_v8 }
 0x229   :  { %12633 = vmatmul.mubr.msk.f32.vlgmr.msra.gmra.mrb[12].mxu1 %vm55_vm0, %v13740_v25  ;;  %12634 = vmatmul.mubr.msk.f32.vlgmr.msra.gmra.mrb[14].mxu0 %vm55_vm0, %v13520_v33 }
 0x22a   :  { %5132 = vmatpush1.msra.mxu1 %v13388_v63  ;;  %5203 = vmatpush1.msra.mxu0 %v13440_v11 }
 0x22b   :  { %5273 = vmatprep.subr.mxu1 %v13438_v12  ;;  %5344 = vmatprep.subr.mxu0 %v13808_v1 }
 0x22c   :  { %5195 = vmatprep.mubr.f32.mxu1 %v15380_v37  ;;  %5266 = vmatprep.mubr.f32.mxu0 %v15380_v37 }
 0x22d   :  { %12635 = vmatmul.mubr.msk.f32.vlgmr.msra.gmra.mrb[14].mxu1 %vm55_vm0, %v13520_v33 }
 0x22e   :  { %5274 = vmatpush1.msra.mxu1 %v13420_v5  ;;  %5337 = vmatprep.mubr.f32.mxu1 %v15380_v37 }
 0x22f   :  { %5415 = vmatprep.subr.mxu1 %v13823_v39 }
 0x231   :  { %12636 = vmatmul.mubr.msk.f32.vlgmr.msra.gmra.mrb[14].mxu0 %vm55_vm0, %v13561_v59 }
 0x232   :  { %5345 = vmatpush1.msra.mxu0 %v13835_v27  ;;  %5408 = vmatprep.mubr.f32.mxu0 %v15380_v37 }
 0x233   :  { %5490 = vmatprep.subr.mxu0 %v13302_v31  ;;  %v12650_v31 = vld [vmem:[%s15326_s12 + $0x20] sm:$0xf] }
 0x234   :  { %v14140_v62 = vrot.slane %v12650_v31, %v13488_v16  ;;  %v14149_v8 = vrot.slane %v12650_v31, %v13493_v18 }
 0x235   :  { %12637 = vmatmul.mubr.msk.f32.vlgmr.msra.gmra.mrb[14].mxu1 %vm55_vm0, %v13561_v59 }
 0x236   :  { %5416 = vmatpush1.msra.mxu1 %v13844_v14  ;;  %5479 = vmatprep.mubr.f32.mxu1 %v15380_v37 }
 0x237   :  { %5561 = vmatprep.subr.mxu1 %v13314_v38  ;;  %v6223_v38 = vpop.permute.xlu1 %6222 }
 0x239   :  { %12638 = vmatmul.mubr.msk.f32.vlgmr.msra.gmra.mrb[14].mxu0 %vm55_vm0, %v13584_v17 }
 0x23a   :  { %5491 = vmatpush1.msra.mxu0 %v13298_v28  ;;  %5554 = vmatprep.mubr.f32.mxu0 %v15380_v37  ;;  %v6225_v28 = vpop.permute.xlu0 %6224 }
 0x23b   :  { %5636 = vmatprep.subr.mxu0 %v13330_v44  ;;  %v6230_v44 = vsel %vm6228_vm8, %v6223_v38, %v6225_v28  ;;  %v6221_v58 = vpop.permute.xlu1 %6220 }
 0x23c   :  { %v6229_v5 = vsel %vm6228_vm8, %v6221_v58, %v6223_v38 }
 0x23d   :  { %12639 = vmatmul.mubr.msk.f32.vlgmr.msra.gmra.mrb[14].mxu1 %vm55_vm0, %v13584_v17  ;;  %v6260_v12 = vmul.f32 %v14140_v62, %v6229_v5 }
 0x23e   :  { %5562 = vmatpush1.msra.mxu1 %v13317_v40  ;;  %5625 = vmatprep.mubr.f32.mxu1 %v15380_v37  ;;  %v14122_v40 = vrot.slane %v12650_v31, %v13486_v15 }
 0x23f   :  { %5707 = vmatprep.subr.mxu1 %v13346_v50  ;;  %v2214_v16 = vpop.permute.xlu1 %2213 }
 0x240   :  { %v6261_v50 = vmul.f32 %v14122_v40, %v6230_v44 }
 0x241   :  { %12640 = vmatmul.mubr.msk.f32.vlgmr.msra.gmra.mrb[14].mxu0 %vm55_vm0, %v13633_v0 }
 0x242   :  { %5637 = vmatpush1.msra.mxu0 %v13333_v46  ;;  %5700 = vmatprep.mubr.f32.mxu0 %v15380_v37  ;;  %v6227_v46 = vpop.permute.xlu0 %6226 }
 0x243   :  { %5782 = vmatprep.subr.mxu0 %v13863_v24  ;;  %v6236_v56 = vsel %vm6228_vm8, %v6227_v46, 0.0  ;;  %v6231_v11 = vsel %vm6228_vm8, %v6225_v28, %v6227_v46 }
 0x244   :  { %v6262_v15 = vmul.f32 %v14149_v8, %v6231_v11 }
 0x245   :  { %12641 = vmatmul.mubr.msk.f32.vlgmr.msra.gmra.mrb[14].mxu1 %vm55_vm0, %v13633_v0 }
 0x246   :  { %5708 = vmatpush1.msra.mxu1 %v13348_v51  ;;  %5771 = vmatprep.mubr.f32.mxu1 %v15380_v37  ;;  %v14132_v51 = vrot.slane %v12650_v31, %v13498_v20 }
 0x247   :  { %5853 = vmatprep.subr.mxu1 %v13872_v13 }
 0x248   :  { %v6263_v63 = vmul.f32 %v14132_v51, %v6236_v56 }
 0x249   :  { %12642 = vmatmul.mubr.msk.f32.vlgmr.msra.gmra.mrb[14].mxu0 %vm55_vm0, %v13662_v23 }
 0x24a   :  { %5783 = vmatpush1.msra.mxu0 %v13881_v47  ;;  %5846 = vmatprep.mubr.f32.mxu0 %v15380_v37 }
 0x24b   :  { %5928 = vmatprep.subr.mxu0 %v13985_v6 }
 0x24d   :  { %12643 = vmatmul.mubr.msk.f32.vlgmr.msra.gmra.mrb[14].mxu1 %vm55_vm0, %v13662_v23 }
 0x24e   :  { %5854 = vmatpush1.msra.mxu1 %v13890_v34  ;;  %5917 = vmatprep.mubr.f32.mxu1 %v15380_v37 }
 0x24f   :  { %5999 = vmatprep.subr.mxu1 %v14000_v35 }
 0x251   :  { %12644 = vmatmul.mubr.msk.f32.vlgmr.msra.gmra.mrb[14].mxu0 %vm55_vm0, %v13685_v60 }
 0x252   :  { %5929 = vmatpush1.msra.mxu0 %v14012_v22  ;;  %5992 = vmatprep.mubr.f32.mxu0 %v15380_v37 }
 0x253   :  { %6074 = vmatprep.subr.mxu0 %v14016_v10 }
 0x255   :  { %12645 = vmatmul.mubr.msk.f32.vlgmr.msra.gmra.mrb[14].mxu1 %vm55_vm0, %v13685_v60 }
 0x256   :  { %6000 = vmatpush1.msra.mxu1 %v14025_v30  ;;  %6063 = vmatprep.mubr.f32.mxu1 %v15380_v37 }
 0x257   :  { %6145 = vmatprep.subr.mxu1 %v14028_v48 }
 0x259   :  { %12646 = vmatmul.mubr.msk.f32.vlgmr.msra.gmra.mrb[14].mxu0 %vm55_vm0, %v13707_v4 }
 0x25a   :  { %6075 = vmatpush1.msra.mxu0 %v14037_v52  ;;  %6138 = vmatprep.mubr.f32.mxu0 %v15380_v37 }
 0x25b   :  { %6264 = vmatprep.subr.mxu0 %v6261_v50 }
 0x25d   :  { %12647 = vmatmul.mubr.msk.f32.vlgmr.msra.gmra.mrb[14].mxu1 %vm55_vm0, %v13707_v4 }
 0x25e   :  { %6146 = vmatpush1.msra.mxu1 %v14046_v7  ;;  %6209 = vmatprep.mubr.f32.mxu1 %v15380_v37 }
 0x25f   :  { %6335 = vmatprep.subr.mxu1 %v6263_v63 }
 0x261   :  { %12648 = vmatmul.mubr.msk.f32.vlgmr.msra.gmra.mrb[14].mxu0 %vm55_vm0, %v13722_v9 }
 0x262   :  { %6265 = vmatpush1.msra.mxu0 %v6260_v12  ;;  %6328 = vmatprep.mubr.f32.mxu0 %v15380_v37 }
 0x265   :  { %12649 = vmatmul.mubr.msk.f32.vlgmr.msra.gmra.mrb[14].mxu1 %vm55_vm0, %v13722_v9 }
 0x266   :  { %6336 = vmatpush1.msra.mxu1 %v6262_v15  ;;  %6399 = vmatprep.mubr.f32.mxu1 %v15380_v37 }
 0x269   :  { %12651 = vmatmul.mubr.msk.f32.vlgmr.msra.gmra.mrb[14].mxu0 %vm55_vm0, %v13740_v25 }
 0x26a   :  { %6726 = vmatprep.mubr.f32.mxu0 %v15380_v37 }
 0x26d   :  { %12652 = vmatmul.mubr.msk.f32.vlgmr.msra.gmra.mrb[14].mxu1 %vm55_vm0, %v13740_v25 }
 0x26e   :  { %6797 = vmatprep.mubr.f32.mxu1 %v15380_v37 }
 0x270   :  { %v2131_v18 = vpop.f32.mrb[8].mxu0 }
 0x271   :  { %v14166_v20 = vadd.f32 %v2214_v16, %v2131_v18  ;;  %v2133_v33 = vpop.f32.mrb[9].mxu0 }
 0x272   :  { %v14168_v53 = vadd.f32 %v2214_v16, %v2133_v33 }
 0x273   :  { %v6415_v59 = vsel %vm6414_vm9, %v14166_v20, 0.0 }
 0x274   :  { %v6416_v17 = vsel %vm6414_vm9, %v14168_v53, 0.0  ;;  %v2202_v0 = vpop.f32.mrb[8].mxu1 }
 0x275   :  { %v14174_v23 = vadd.f32 %v2214_v16, %v2202_v0  ;;  %v2204_v60 = vpop.f32.mrb[9].mxu1  ;;  %v6417_v4 = vadd.f32 %v6416_v17, %v6415_v59 }
 0x276   :  { %v14176_v9 = vadd.f32 %v2214_v16, %v2204_v60 }
 0x277   :  { %v6418_v25 = vsel %vm6414_vm9, %v14174_v23, 0.0 }
 0x278   :  { %v6419_v13 = vadd.f32 %v6418_v25, %v6417_v4  ;;  %v6420_v27 = vsel %vm6414_vm9, %v14176_v9, 0.0 }
 0x27a   :  { %v6421_v1 = vadd.f32 %v6420_v27, %v6419_v13 }
 0x27c   :  { %6422 = vadd.xlane.f32.xlu0 %v6421_v1 }
 0x2b4   :  { %v3558_v39 = vpop.f32.mrb[10].mxu0 }
 0x2b5   :  { %v14182_v14 = vadd.f32 %v3558_v39, %v2214_v16  ;;  %v3560_v24 = vpop.f32.mrb[11].mxu0 }
 0x2b6   :  { %v14184_v47 = vadd.f32 %v3560_v24, %v2214_v16 }
 0x2b7   :  { %v6425_v34 = vsel %vm6414_vm9, %v14182_v14, 0.0 }
 0x2b8   :  { %v6426_v61 = vsel %vm6414_vm9, %v14184_v47, 0.0  ;;  %v3629_v22 = vpop.f32.mrb[10].mxu1 }
 0x2b9   :  { %v14190_v6 = vadd.f32 %v3629_v22, %v2214_v16  ;;  %v3631_v35 = vpop.f32.mrb[11].mxu1  ;;  %v6427_v3 = vadd.f32 %v6426_v61, %v6425_v34 }
 0x2ba   :  { %v14192_v10 = vadd.f32 %v3631_v35, %v2214_v16 }
 0x2bb   :  { %v6428_v2 = vsel %vm6414_vm9, %v14190_v6, 0.0 }
 0x2bc   :  { %v6429_v42 = vadd.f32 %v6428_v2, %v6427_v3  ;;  %v6430_v30 = vsel %vm6414_vm9, %v14192_v10, 0.0 }
 0x2be   :  { %v6431_v48 = vadd.f32 %v6430_v30, %v6429_v42 }
 0x2c0   :  { %6432 = vadd.xlane.f32.xlu1 %v6431_v48 }
 0x2f8   :  { %v4976_v45 = vpop.f32.mrb[12].mxu0 }
 0x2f9   :  { %v14198_v52 = vadd.f32 %v4976_v45, %v2214_v16  ;;  %v4978_v57 = vpop.f32.mrb[13].mxu0 }
 0x2fa   :  { %v14200_v7 = vadd.f32 %v4978_v57, %v2214_v16 }
 0x2fb   :  { %v6435_v28 = vsel %vm6414_vm9, %v14198_v52, 0.0 }
 0x2fc   :  { %v6436_v31 = vsel %vm6414_vm9, %v14200_v7, 0.0  ;;  %v5047_v38 = vpop.f32.mrb[12].mxu1 }
 0x2fd   :  { %v14206_v44 = vadd.f32 %v5047_v38, %v2214_v16  ;;  %v5049_v46 = vpop.f32.mrb[13].mxu1  ;;  %v6437_v50 = vadd.f32 %v6436_v31, %v6435_v28 }
 0x2fe   :  { %v14208_v56 = vadd.f32 %v5049_v46, %v2214_v16 }
 0x2ff   :  { %v6438_v58 = vsel %vm6414_vm9, %v14206_v44, 0.0 }
 0x300   :  { %v6439_v63 = vadd.f32 %v6438_v58, %v6437_v50  ;;  %v6440_v5 = vsel %vm6414_vm9, %v14208_v56, 0.0 }
 0x302   :  { %v6441_v12 = vadd.f32 %v6440_v5, %v6439_v63 }
 0x304   :  { %6442 = vadd.xlane.f32.xlu0 %v6441_v12 }
 0x309   :  { %v6423_v34 = vpop.xlane.xlu0 %6422 }
 0x33c   :  { %v6330_v11 = vpop.f32.mrb[14].mxu0 }
 0x33d   :  { %v14214_v15 = vadd.f32 %v6330_v11, %v2214_v16  ;;  %v6332_v18 = vpop.f32.mrb[15].mxu0 }
 0x33e   :  { %v14216_v33 = vadd.f32 %v6332_v18, %v2214_v16 }
 0x33f   :  { %v6445_v59 = vsel %vm6414_vm9, %v14214_v15, 0.0 }
 0x340   :  { %v6446_v17 = vsel %vm6414_vm9, %v14216_v33, 0.0  ;;  %v6401_v0 = vpop.f32.mrb[14].mxu1 }
 0x341   :  { %v14222_v60 = vadd.f32 %v6401_v0, %v2214_v16  ;;  %v6403_v4 = vpop.f32.mrb[15].mxu1  ;;  %v6447_v25 = vadd.f32 %v6446_v17, %v6445_v59 }
 0x342   :  { %v14224_v13 = vadd.f32 %v6403_v4, %v2214_v16 }
 0x343   :  { %v6448_v27 = vsel %vm6414_vm9, %v14222_v60, 0.0 }
 0x344   :  { %v6449_v1 = vadd.f32 %v6448_v27, %v6447_v25  ;;  %v6450_v39 = vsel %vm6414_vm9, %v14224_v13, 0.0 }
 0x346   :  { %v6451_v24 = vadd.f32 %v6450_v39, %v6449_v1 }
 0x348   :  { %6452 = vadd.xlane.f32.xlu0 %v6451_v24 }
 0x34d   :  { %v6433_v61 = vpop.xlane.xlu1 %6432 }
 0x34e   :  { %v6434_v35 = vadd.f32 %v6433_v61, %v6423_v34 }
 0x391   :  { %v6443_v22 = vpop.xlane.xlu0 %6442 }
 0x392   :  { %v6444_v3 = vadd.f32 %v6443_v22, %v6434_v35 }
 0x3d5   :  { %v6453_v2 = vpop.xlane.xlu0 %6452 }
 0x3d6   :  { %v6454_v42 = vadd.f32 %v6453_v2, %v6444_v3 }
 0x3d8   :  { %v14230_v30 = vmul.f32 0.00048828125, %v6454_v42 }
 0x3da   :  { %v6474_v16 = vsub.f32 %v14182_v14, %v14230_v30  ;;  %v6475_v48 = vsub.f32 %v14184_v47, %v14230_v30  ;;  %v6476_v45 = vsub.f32 %v14190_v6, %v14230_v30  ;;  %v6477_v57 = vsub.f32 %v14192_v10, %v14230_v30 }
 0x3db   :  { %v6456_v28 = vsub.f32 %v14166_v20, %v14230_v30  ;;  %v6457_v31 = vsub.f32 %v14168_v53, %v14230_v30  ;;  %v6458_v38 = vsub.f32 %v14174_v23, %v14230_v30  ;;  %v6459_v46 = vsub.f32 %v14176_v9, %v14230_v30 }
 0x3dc   :  { %v6478_v50 = vmul.f32 %v6474_v16, %v6474_v16  ;;  %v6479_v58 = vmul.f32 %v6475_v48, %v6475_v48  ;;  %v6480_v63 = vmul.f32 %v6476_v45, %v6476_v45  ;;  %v6481_v5 = vmul.f32 %v6477_v57, %v6477_v57 }
 0x3dd   :  { %v6460_v12 = vmul.f32 %v6456_v28, %v6456_v28  ;;  %v6461_v11 = vmul.f32 %v6457_v31, %v6457_v31  ;;  %v6462_v18 = vmul.f32 %v6458_v38, %v6458_v38  ;;  %v6463_v59 = vmul.f32 %v6459_v46, %v6459_v46 }
 0x3de   :  { %v6482_v17 = vsel %vm6414_vm9, %v6478_v50, 0.0  ;;  %v6483_v0 = vsel %vm6414_vm9, %v6479_v58, 0.0  ;;  %v6485_v4 = vsel %vm6414_vm9, %v6480_v63, 0.0  ;;  %v6487_v25 = vsel %vm6414_vm9, %v6481_v5, 0.0 }
 0x3df   :  { %v6484_v27 = vadd.f32 %v6483_v0, %v6482_v17  ;;  %v6464_v1 = vsel %vm6414_vm9, %v6460_v12, 0.0  ;;  %v6465_v39 = vsel %vm6414_vm9, %v6461_v11, 0.0  ;;  %v6467_v24 = vsel %vm6414_vm9, %v6462_v18, 0.0 }
 0x3e0   :  { %v6466_v34 = vadd.f32 %v6465_v39, %v6464_v1  ;;  %v6469_v61 = vsel %vm6414_vm9, %v6463_v59, 0.0  ;;  %v6510_v22 = vsub.f32 %v14214_v15, %v14230_v30  ;;  %v6511_v35 = vsub.f32 %v14216_v33, %v14230_v30 }
 0x3e1   :  { %v6486_v3 = vadd.f32 %v6485_v4, %v6484_v27  ;;  %v6512_v2 = vsub.f32 %v14222_v60, %v14230_v30  ;;  %v6513_v42 = vsub.f32 %v14224_v13, %v14230_v30  ;;  %v6492_v16 = vsub.f32 %v14198_v52, %v14230_v30 }
 0x3e2   :  { %v6468_v48 = vadd.f32 %v6467_v24, %v6466_v34  ;;  %v6514_v45 = vmul.f32 %v6510_v22, %v6510_v22  ;;  %v6515_v57 = vmul.f32 %v6511_v35, %v6511_v35  ;;  %v6493_v28 = vsub.f32 %v14200_v7, %v14230_v30 }
 0x3e3   :  { %v6488_v31 = vadd.f32 %v6487_v25, %v6486_v3  ;;  %v6516_v38 = vmul.f32 %v6512_v2, %v6512_v2  ;;  %v6517_v46 = vmul.f32 %v6513_v42, %v6513_v42  ;;  %v6494_v50 = vsub.f32 %v14206_v44, %v14230_v30 }
 0x3e4   :  { %v6470_v58 = vadd.f32 %v6469_v61, %v6468_v48  ;;  %v6518_v63 = vsel %vm6414_vm9, %v6514_v45, 0.0  ;;  %v6519_v5 = vsel %vm6414_vm9, %v6515_v57, 0.0  ;;  %v6495_v12 = vsub.f32 %v14208_v56, %v14230_v30 }
 0x3e5   :  { %6489 = vadd.xlane.f32.xlu0 %v6488_v31  ;;  %v6520_v11 = vadd.f32 %v6519_v5, %v6518_v63  ;;  %v6496_v18 = vmul.f32 %v6492_v16, %v6492_v16  ;;  %v6521_v59 = vsel %vm6414_vm9, %v6516_v38, 0.0  ;;  %v6497_v17 = vmul.f32 %v6493_v28, %v6493_v28  ;;  %v6533_v63 = vld [vmem:[%s15330_s7] sm:$0xf] }
 0x3e6   :  { %6471 = vadd.xlane.f32.xlu1 %v6470_v58  ;;  %v6498_v0 = vmul.f32 %v6494_v50, %v6494_v50  ;;  %v6523_v27 = vsel %vm6414_vm9, %v6517_v46, 0.0  ;;  %v6499_v1 = vmul.f32 %v6495_v12, %v6495_v12  ;;  %v6528_v46 = vld [vmem:[%s15329_s6] sm:$0xf] }
 0x3e7   :  { %v6522_v4 = vadd.f32 %v6521_v59, %v6520_v11  ;;  %v6500_v25 = vsel %vm6414_vm9, %v6496_v18, 0.0  ;;  %v6501_v39 = vsel %vm6414_vm9, %v6497_v17, 0.0 }
 0x3e8   :  { %v6502_v34 = vadd.f32 %v6501_v39, %v6500_v25  ;;  %v6503_v61 = vsel %vm6414_vm9, %v6498_v0, 0.0  ;;  %v6505_v35 = vsel %vm6414_vm9, %v6499_v1, 0.0 }
 0x3e9   :  { %v6524_v24 = vadd.f32 %v6523_v27, %v6522_v4 }
 0x3ea   :  { %v6504_v22 = vadd.f32 %v6503_v61, %v6502_v34 }
 0x3eb   :  { %6525 = vadd.xlane.f32.xlu0 %v6524_v24 }
 0x3ec   :  { %v6506_v3 = vadd.f32 %v6505_v35, %v6504_v22 }
 0x3ee   :  { %6507 = vadd.xlane.f32.xlu1 %v6506_v3 }
 0x472   :  { %v6490_v42 = vpop.xlane.xlu0 %6489 }
 0x473   :  { %v6472_v2 = vpop.xlane.xlu1 %6471 }
 0x474   :  { %v6491_v16 = vadd.f32 %v6490_v42, %v6472_v2 }
 0x478   :  { %v6526_v57 = vpop.xlane.xlu0 %6525 }
 0x47b   :  { %v6508_v48 = vpop.xlane.xlu1 %6507 }
 0x47c   :  { %v6509_v45 = vadd.f32 %v6508_v48, %v6491_v16 }
 0x47e   :  { %v6527_v28 = vadd.f32 %v6526_v57, %v6509_v45 }
 0x480   :  { %v6529_v31 = vmul.f32 0.00048828125, %v6527_v28 }
 0x482   :  { %v6530_v38 = vadd.f32 1e-05, %v6529_v31 }
 0x484   :  { %13151 = vrsqrt.f32 %v6530_v38 }
 0x48e   :  { %v13152_v50 = vpop.eup %13151 }
 0x48f   :  { %v6532_v58 = vmul.f32 %v13152_v50, %v6528_v46 }
 0x491   :  { %6538 = vperm.xlu1 %13150, %v6532_v58   ;;  %v6534_v5 = vmul.f32 %v6532_v58, %v14230_v30 }
 0x493   :  { %v6535_v12 = vsub.f32 %v6533_v63, %v6534_v5 }
 0x495   :  { %6547 = vperm.xlu0 %13149, %v6535_v12  }
 0x510   :  { %v14287_v11 = vpop.permute.xlu1 %6538 }
 0x511   :  { %v6572_v18 = vmul.f32 %v14287_v11, %v14206_v44  ;;  %v6570_v59 = vmul.f32 %v14287_v11, %v14198_v52  ;;  %v6582_v25 = vmul.f32 %v14287_v11, %v14214_v15  ;;  %v6571_v30 = vmul.f32 %v14287_v11, %v14200_v7 }
 0x512   :  { %v6584_v15 = vmul.f32 %v14287_v11, %v14222_v60  ;;  %v6573_v7 = vmul.f32 %v14287_v11, %v14208_v56  ;;  %v6583_v60 = vmul.f32 %v14287_v11, %v14216_v33  ;;  %v6585_v3 = vmul.f32 %v14287_v11, %v14224_v13 }
 0x513   :  { %v6558_v33 = vmul.f32 %v14287_v11, %v14182_v14  ;;  %v6560_v13 = vmul.f32 %v14287_v11, %v14190_v6  ;;  %v6559_v14 = vmul.f32 %v14287_v11, %v14184_v47  ;;  %v6561_v6 = vmul.f32 %v14287_v11, %v14192_v10 }
 0x514   :  { %v14293_v17 = vpop.permute.xlu0 %6547  ;;  %v6542_v10 = vmul.f32 %v14287_v11, %v14168_v53  ;;  %v6541_v58 = vmul.f32 %v14287_v11, %v14166_v20  ;;  %v6543_v53 = vmul.f32 %v14287_v11, %v14174_v23  ;;  %v6544_v20 = vmul.f32 %v14287_v11, %v14176_v9  ;;  %v6594_v9 = vld [vmem:[%s15331_s9] sm:$0xf] }
 0x515   :  { %v6576_v0 = vadd.f32 %v6572_v18, %v14293_v17  ;;  %v6574_v4 = vadd.f32 %v6570_v59, %v14293_v17  ;;  %v6586_v44 = vadd.f32 %v6582_v25, %v14293_v17  ;;  %v6575_v52 = vadd.f32 %v6571_v30, %v14293_v17 }
 0x516   :  { %v6588_v34 = vadd.f32 %v6584_v15, %v14293_v17  ;;  %v6577_v61 = vadd.f32 %v6573_v7, %v14293_v17  ;;  %v6587_v35 = vadd.f32 %v6583_v60, %v14293_v17  ;;  %v6589_v42 = vadd.f32 %v6585_v3, %v14293_v17  ;;  %v14481_v7 = vld [vmem:[%s15332_s8 + $0x4] sm:$0xf] }
 0x517   :  { %v14301_v27 = vmax.f32 %v6576_v0, 0.0  ;;  %v14303_v1 = vmax.f32 %v6574_v4, 0.0  ;;  %v14315_v39 = vmax.f32 %v6586_v44, 0.0  ;;  %v14317_v24 = vmax.f32 %v6575_v52, 0.0 }
 0x518   :  { %v14327_v22 = vmax.f32 %v6588_v34, 0.0  ;;  %v14329_v56 = vmax.f32 %v6577_v61, 0.0  ;;  %v14338_v2 = vmax.f32 %v6587_v35, 0.0  ;;  %v14347_v16 = vmax.f32 %v6589_v42, 0.0 }
 0x519   :  { %6630 = vrot.lane.b32.xlu0 %v14301_v27, %s13157_s14  ;;  %6626 = vrot.lane.b32.xlu1 %v14303_v1, %s13157_s14  ;;  %v6562_v48 = vadd.f32 %v6558_v33, %v14293_v17  ;;  %v6564_v57 = vadd.f32 %v6560_v13, %v14293_v17  ;;  %v6563_v31 = vadd.f32 %v6559_v14, %v14293_v17 }
 0x51a   :  { %v6565_v46 = vadd.f32 %v6561_v6, %v14293_v17  ;;  %v6551_v50 = vadd.f32 %v14293_v17, %v6542_v10  ;;  %v6550_v5 = vadd.f32 %v14293_v17, %v6541_v58  ;;  %v6552_v18 = vadd.f32 %v14293_v17, %v6543_v53  ;;  %v14511_v6 = vld [vmem:[%s15332_s8] sm:$0xf] }
 0x51b   :  { %v14356_v45 = vmax.f32 %v6562_v48, 0.0  ;;  %v14365_v28 = vmax.f32 %v6564_v57, 0.0  ;;  %v14374_v38 = vmax.f32 %v6563_v31, 0.0  ;;  %v6553_v0 = vadd.f32 %v14293_v17, %v6544_v20 }
 0x51c   :  { %v14381_v47 = vmax.f32 %v6565_v46, 0.0  ;;  %v14400_v63 = vmax.f32 %v6551_v50, 0.0  ;;  %v14409_v12 = vmax.f32 %v6550_v5, 0.0  ;;  %v14418_v59 = vmax.f32 %v6552_v18, 0.0 }
 0x51d   :  { %6600 = vrot.lane.b32.xlu0 %v14315_v39, %s13158_s22  ;;  %6628 = vrot.lane.b32.xlu1 %v14317_v24, %s13157_s14  ;;  %v14425_v23 = vmax.f32 %v6553_v0, 0.0 }
 0x521   :  { %6604 = vrot.lane.b32.xlu0 %v14327_v22, %s13158_s22  ;;  %6632 = vrot.lane.b32.xlu1 %v14329_v56, %s13157_s14 }
 0x525   :  { %6963 = vrot.lane.b32.xlu0 %v14315_v39, %s13157_s14  ;;  %6602 = vrot.lane.b32.xlu1 %v14338_v2, %s13158_s22 }
 0x529   :  { %6967 = vrot.lane.b32.xlu0 %v14327_v22, %s13157_s14  ;;  %6606 = vrot.lane.b32.xlu1 %v14347_v16, %s13158_s22 }
 0x52d   :  { %6965 = vrot.lane.b32.xlu1 %v14338_v2, %s13157_s14  ;;  %7150 = vrot.lane.b32.xlu0 %v14356_v45, %s13159_s29 }
 0x531   :  { %6969 = vrot.lane.b32.xlu1 %v14347_v16, %s13157_s14  ;;  %7154 = vrot.lane.b32.xlu0 %v14365_v28, %s13159_s29 }
 0x535   :  { %7152 = vrot.lane.b32.xlu1 %v14374_v38, %s13159_s29  ;;  %7655 = vrot.lane.b32.xlu0 %v14315_v39, %s13159_s29 }
 0x539   :  { %7156 = vrot.lane.b32.xlu1 %v14381_v47, %s13159_s29  ;;  %7659 = vrot.lane.b32.xlu0 %v14327_v22, %s13159_s29 }
 0x53d   :  { %7657 = vrot.lane.b32.xlu1 %v14338_v2, %s13159_s29  ;;  %8447 = vrot.lane.b32.xlu0 %v14303_v1, %s13160_s30 }
 0x541   :  { %7661 = vrot.lane.b32.xlu1 %v14347_v16, %s13159_s29  ;;  %8451 = vrot.lane.b32.xlu0 %v14301_v27, %s13160_s30 }
 0x545   :  { %8449 = vrot.lane.b32.xlu1 %v14317_v24, %s13160_s30  ;;  %8919 = vrot.lane.b32.xlu0 %v14400_v63, %s13161_s23 }
 0x549   :  { %8453 = vrot.lane.b32.xlu1 %v14329_v56, %s13160_s30  ;;  %8917 = vrot.lane.b32.xlu0 %v14409_v12, %s13161_s23 }
 0x54d   :  { %8921 = vrot.lane.b32.xlu1 %v14418_v59, %s13161_s23  ;;  %9389 = vrot.lane.b32.xlu0 %v14317_v24, %s13161_s23 }
 0x551   :  { %8923 = vrot.lane.b32.xlu1 %v14425_v23, %s13161_s23  ;;  %9387 = vrot.lane.b32.xlu0 %v14303_v1, %s13161_s23 }
 0x555   :  { %9391 = vrot.lane.b32.xlu1 %v14301_v27, %s13161_s23  ;;  %10439 = vrot.lane.b32.xlu0 %v14374_v38, %s13162_s1 }
 0x559   :  { %9393 = vrot.lane.b32.xlu1 %v14329_v56, %s13161_s23  ;;  %10437 = vrot.lane.b32.xlu0 %v14356_v45, %s13162_s1 }
 0x55d   :  { %10441 = vrot.lane.b32.xlu1 %v14365_v28, %s13162_s1  ;;  %10617 = vrot.lane.b32.xlu0 %v14400_v63, %s13163_s24 }
 0x561   :  { %10443 = vrot.lane.b32.xlu1 %v14381_v47, %s13162_s1  ;;  %10615 = vrot.lane.b32.xlu0 %v14409_v12, %s13163_s24 }
 0x565   :  { %10619 = vrot.lane.b32.xlu1 %v14418_v59, %s13163_s24  ;;  %10795 = vrot.lane.b32.xlu0 %v14374_v38, %s13163_s24 }
 0x569   :  { %10621 = vrot.lane.b32.xlu1 %v14425_v23, %s13163_s24  ;;  %10793 = vrot.lane.b32.xlu0 %v14356_v45, %s13163_s24 }
 0x56d   :  { %10797 = vrot.lane.b32.xlu1 %v14365_v28, %s13163_s24  ;;  %12137 = vrot.lane.b32.xlu0 %v14400_v63, %s13164_s2 }
 0x571   :  { %10799 = vrot.lane.b32.xlu1 %v14381_v47, %s13163_s24  ;;  %12135 = vrot.lane.b32.xlu0 %v14409_v12, %s13164_s2 }
 0x575   :  { %12139 = vrot.lane.b32.xlu1 %v14418_v59, %s13164_s2  ;;  %8156 = vperm.xlu0 %13149, %v6594_v9   ;;  %v14538_v9 = vld [vmem:[%s15332_s8 + $0x8] sm:$0xf] }
 0x579   :  { %12141 = vrot.lane.b32.xlu1 %v14425_v23, %s13164_s2 }
 0x58b   :  { %v6631_v11 = vpop.permute.xlu0 %6630  ;;  %v6627_v17 = vpop.permute.xlu1 %6626 }
 0x58c   :  { %v6641_v4 = vsel %vm740_vm1, 0.0, %v6627_v17 }
 0x58d   :  { %v14476_v15 = vmul.f32 %v6641_v4, %v13501_v21 }
 0x58f   :  { %v6601_v25 = vpop.permute.xlu0 %6600  ;;  %v6629_v30 = vpop.permute.xlu1 %6628 }
 0x590   :  { %v6634_v44 = vsel %vm740_vm1, %v6627_v17, %v6629_v30  ;;  %v6635_v34 = vsel %vm740_vm1, %v6629_v30, %v6631_v11  ;;  %v6615_v33 = vsel %vm691_vm2, 0.0, %v6601_v25 }
 0x591   :  { %v14473_v52 = vmul.f32 %v6634_v44, %v13496_v19  ;;  %v14495_v42 = vmul.f32 %v6635_v34, %v13506_v26  ;;  %v6616_v31 = vmul.f32 %v6615_v33, %v13535_v41  ;;  %v15381_v41 = vld [vmem:[#allocation2_spill] sm:$0xff]  ;;  %v14573_v33 = vld [vmem:[%s15332_s8 + $0xc] sm:$0xf] }
 0x593   :  { %v6605_v61 = vpop.permute.xlu0 %6604  ;;  %12654 = vmatprep.subr.msk.mxu0 %vm6414_vm9, %v14473_v52  ;;  %v6633_v60 = vpop.permute.xlu1 %6632 }
 0x594   :  { %v6636_v35 = vsel %vm740_vm1, %v6631_v11, %v6633_v60  ;;  %12655 = vmatpush1.msk.msra.mxu0 %vm6414_vm9, %v14476_v15 }
 0x595   :  { %v14490_v3 = vmul.f32 %v6636_v35, %v13512_v29  ;;  %12656 = vmatmul.mubr.msk.f32.vlgmr.msra.gmra.mrb[16].mxu0 %vm6646_vm10, %v14481_v7 }
 0x596   :  { %6883 = vmatprep.mubr.f32.mxu0 %v15380_v37 }
 0x597   :  { %v6964_v48 = vpop.permute.xlu0 %6963  ;;  %12657 = vmatprep.subr.msk.mxu1 %vm6414_vm9, %v14490_v3  ;;  %v6603_v13 = vpop.permute.xlu1 %6602 }
 0x598   :  { %v6608_v57 = vsel %vm691_vm2, %v6601_v25, %v6603_v13  ;;  %12658 = vmatpush1.msk.msra.mxu1 %vm6414_vm9, %v14495_v42  ;;  %v6609_v46 = vsel %vm691_vm2, %v6603_v13, %v6605_v61  ;;  %v6978_v53 = vsel %vm740_vm1, 0.0, %v6964_v48 }
 0x599   :  { %v6617_v14 = vmul.f32 %v6608_v57, %v13541_v43  ;;  %12659 = vmatmul.mubr.msk.f32.vlgmr.msra.gmra.mrb[16].mxu1 %vm6646_vm10, %v14481_v7  ;;  %v6618_v5 = vmul.f32 %v6609_v46, %v15381_v41  ;;  %v15385_v46 = vld [vmem:[#allocation5_spill] sm:$0xff]  ;;  %v14611_v41 = vld [vmem:[%s15332_s8 + $0x10] sm:$0xf] }
 0x59a   :  { %6954 = vmatprep.mubr.f32.mxu1 %v15380_v37 }
 0x59b   :  { %12660 = vmatprep.subr.msk.mxu0 %vm6414_vm9, %v6617_v14  ;;  %v6607_v10 = vpop.permute.xlu1 %6606  ;;  %v6968_v43 = vpop.permute.xlu0 %6967  ;;  %v15384_v14 = vld [vmem:[#allocation6_spill] sm:$0xff] }
 0x59c   :  { %v6610_v50 = vsel %vm691_vm2, %v6605_v61, %v6607_v10  ;;  %12661 = vmatpush1.msk.msra.mxu0 %vm6414_vm9, %v6616_v31  ;;  %v15382_v61 = vld [vmem:[#allocation4_spill] sm:$0xff] }
 0x59d   :  { %v6619_v58 = vmul.f32 %v6610_v50, %v13556_v55  ;;  %12662 = vmatmul.mubr.msk.f32.vlgmr.msra.gmra.mrb[16].mxu0 %vm6646_vm10, %v14511_v6  ;;  %v14533_v55 = vmul.f32 %v6978_v53, %v13501_v21 }
 0x59e   :  { %7062 = vmatprep.mubr.f32.mxu0 %v15380_v37 }
 0x59f   :  { %12663 = vmatprep.subr.msk.mxu1 %vm6414_vm9, %v6619_v58  ;;  %v6966_v18 = vpop.permute.xlu1 %6965  ;;  %v7151_v17 = vpop.permute.xlu0 %7150 }
 0x5a0   :  { %v6971_v20 = vsel %vm740_vm1, %v6964_v48, %v6966_v18  ;;  %12664 = vmatpush1.msk.msra.mxu1 %vm6414_vm9, %v6618_v5  ;;  %v6972_v11 = vsel %vm740_vm1, %v6966_v18, %v6968_v43  ;;  %v7165_v30 = vsel %vm1251_vm3, 0.0, %v7151_v17 }
 0x5a1   :  { %v14528_v0 = vmul.f32 %v6971_v20, %v13496_v19  ;;  %12665 = vmatmul.mubr.msk.f32.vlgmr.msra.gmra.mrb[16].mxu1 %vm6646_vm10, %v14511_v6  ;;  %v14553_v25 = vmul.f32 %v6972_v11, %v13506_v26  ;;  %v15383_v26 = vld [vmem:[#allocation3_spill] sm:$0xff] }
 0x5a2   :  { %7133 = vmatprep.mubr.f32.mxu1 %v15380_v37  ;;  %v14568_v35 = vmul.f32 %v7165_v30, %v15383_v26 }
 0x5a3   :  { %12667 = vmatprep.subr.msk.mxu0 %vm6414_vm9, %v14528_v0  ;;  %v6970_v19 = vpop.permute.xlu1 %6969 }
 0x5a4   :  { %v6973_v4 = vsel %vm740_vm1, %v6968_v43, %v6970_v19  ;;  %12668 = vmatpush1.msk.msra.mxu0 %vm6414_vm9, %v14533_v55  ;;  %v14638_v19 = vld [vmem:[%s15332_s8 + $0x14] sm:$0xf] }
 0x5a5   :  { %v14548_v21 = vmul.f32 %v6973_v4, %v13512_v29  ;;  %12669 = vmatmul.mubr.msk.f32.vlgmr.msra.gmra.mrb[16].mxu0 %vm6646_vm10, %v14538_v9  ;;  %v7155_v29 = vpop.permute.xlu0 %7154 }
 0x5a6   :  { %7249 = vmatprep.mubr.f32.mxu0 %v15380_v37 }
 0x5a7   :  { %12670 = vmatprep.subr.msk.mxu1 %vm6414_vm9, %v14548_v21  ;;  %v7153_v44 = vpop.permute.xlu1 %7152 }
 0x5a8   :  { %v7158_v34 = vsel %vm1251_vm3, %v7151_v17, %v7153_v44  ;;  %12671 = vmatpush1.msk.msra.mxu1 %vm6414_vm9, %v14553_v25  ;;  %v7159_v48 = vsel %vm1251_vm3, %v7153_v44, %v7155_v29 }
 0x5a9   :  { %v14563_v60 = vmul.f32 %v7158_v34, %v15382_v61  ;;  %12672 = vmatmul.mubr.msk.f32.vlgmr.msra.gmra.mrb[16].mxu1 %vm6646_vm10, %v14538_v9  ;;  %v14590_v10 = vmul.f32 %v7159_v48, %v15385_v46  ;;  %v7656_v50 = vpop.permute.xlu0 %7655  ;;  %v14664_v34 = vld [vmem:[%s15332_s8 + $0x18] sm:$0xf] }
 0x5aa   :  { %7320 = vmatprep.mubr.f32.mxu1 %v15380_v37  ;;  %v7670_v11 = vsel %vm1251_vm3, 0.0, %v7656_v50 }
 0x5ab   :  { %v7157_v13 = vpop.permute.xlu1 %7156  ;;  %12674 = vmatprep.subr.msk.mxu0 %vm6414_vm9, %v14563_v60  ;;  %v14644_v4 = vmul.f32 %v7670_v11, %v15383_v26  ;;  %v14702_v26 = vld [vmem:[%s15332_s8 + $0x20] sm:$0xf]  ;;  %v15390_v11 = vld [vmem:[#allocation11_spill] sm:$0xff] }
 0x5ac   :  { %v7160_v57 = vsel %vm1251_vm3, %v7155_v29, %v7157_v13  ;;  %12675 = vmatpush1.msk.msra.mxu0 %vm6414_vm9, %v14568_v35  ;;  %v14683_v29 = vld [vmem:[%s15332_s8 + $0x1c] sm:$0xf] }
 0x5ad   :  { %v14583_v31 = vmul.f32 %v7160_v57, %v15384_v14  ;;  %12676 = vmatmul.mubr.msk.f32.vlgmr.msra.gmra.mrb[16].mxu0 %vm6646_vm10, %v14573_v33  ;;  %12681 = vmatprep.subr.msk.mxu0 %vm6414_vm9, %v14400_v63  ;;  %v7660_v53 = vpop.permute.xlu0 %7659 }
 0x5ae   :  { %12682 = vmatpush1.msk.msra.mxu0 %vm6414_vm9, %v14409_v12  ;;  %7412 = vmatprep.mubr.f32.mxu0 %v15380_v37 }
 0x5af   :  { %v7658_v43 = vpop.permute.xlu1 %7657  ;;  %12677 = vmatprep.subr.msk.mxu1 %vm6414_vm9, %v14583_v31  ;;  %12688 = vmatprep.subr.msk.mxu0 %vm6414_vm9, %v14374_v38 }
 0x5b0   :  { %12678 = vmatpush1.msk.msra.mxu1 %vm6414_vm9, %v14590_v10  ;;  %v7663_v58 = vsel %vm1251_vm3, %v7656_v50, %v7658_v43  ;;  %v7664_v30 = vsel %vm1251_vm3, %v7658_v43, %v7660_v53  ;;  %v15389_v43 = vld [vmem:[#allocation10_spill] sm:$0xff] }
 0x5b1   :  { %12679 = vmatmul.mubr.msk.f32.vlgmr.msra.gmra.mrb[16].mxu1 %vm6646_vm10, %v14573_v33  ;;  %12684 = vmatprep.subr.msk.mxu1 %vm6414_vm9, %v14425_v23  ;;  %v14617_v18 = vmul.f32 %v7663_v58, %v15382_v61  ;;  %v14655_v44 = vmul.f32 %v7664_v30, %v15385_v46  ;;  %v8448_v48 = vpop.permute.xlu0 %8447 }
 0x5b2   :  { %12685 = vmatpush1.msk.msra.mxu1 %vm6414_vm9, %v14418_v59  ;;  %7483 = vmatprep.mubr.f32.mxu1 %v15380_v37 }
 0x5b3   :  { %v7662_v5 = vpop.permute.xlu1 %7661  ;;  %12691 = vmatprep.subr.msk.mxu1 %vm6414_vm9, %v14381_v47 }
 0x5b4   :  { %v7665_v20 = vsel %vm1251_vm3, %v7660_v53, %v7662_v5 }
 0x5b5   :  { %12683 = vmatmul.mubr.msk.f32.vlgmr.msra.gmra.mrb[16].mxu0 %vm6646_vm10, %v14611_v41  ;;  %v14629_v17 = vmul.f32 %v7665_v20, %v15384_v14  ;;  %v8452_v57 = vpop.permute.xlu0 %8451  ;;  %v15386_v14 = vld [vmem:[#allocation7_spill] sm:$0xff] }
 0x5b6   :  { %12689 = vmatpush1.msk.msra.mxu0 %vm6414_vm9, %v14356_v45  ;;  %7571 = vmatprep.mubr.f32.mxu0 %v15380_v37 }
 0x5b7   :  { %12695 = vmatprep.subr.msk.mxu0 %vm6414_vm9, %v14617_v18  ;;  %v8450_v61 = vpop.permute.xlu1 %8449 }
 0x5b9   :  { %12686 = vmatmul.mubr.msk.f32.vlgmr.msra.gmra.mrb[16].mxu1 %vm6646_vm10, %v14611_v41  ;;  %v8920_v5 = vpop.permute.xlu0 %8919 }
 0x5ba   :  { %12692 = vmatpush1.msk.msra.mxu1 %vm6414_vm9, %v14365_v28  ;;  %7642 = vmatprep.mubr.f32.mxu1 %v15380_v37 }
 0x5bb   :  { %12698 = vmatprep.subr.msk.mxu1 %vm6414_vm9, %v14629_v17  ;;  %v8454_v13 = vpop.permute.xlu1 %8453 }
 0x5bd   :  { %12690 = vmatmul.mubr.msk.f32.vlgmr.msra.gmra.mrb[16].mxu0 %vm6646_vm10, %v14638_v19 }
 0x5be   :  { %12696 = vmatpush1.msk.msra.mxu0 %vm6414_vm9, %v14644_v4  ;;  %7754 = vmatprep.mubr.f32.mxu0 %v15380_v37 }
 0x5bf   :  { %12702 = vmatprep.subr.msk.mxu0 %vm6414_vm9, %v14317_v24  ;;  %v8922_v58 = vpop.permute.xlu1 %8921 }
 0x5c0   :  { %v8926_v53 = vsel %vm2998_vm5, %v8920_v5, %v8922_v58 }
 0x5c1   :  { %12693 = vmatmul.mubr.msk.f32.vlgmr.msra.gmra.mrb[16].mxu1 %vm6646_vm10, %v14638_v19  ;;  %v14769_v30 = vmul.f32 %v8926_v53, %v15390_v11 }
 0x5c2   :  { %12699 = vmatpush1.msk.msra.mxu1 %vm6414_vm9, %v14655_v44  ;;  %7825 = vmatprep.mubr.f32.mxu1 %v15380_v37 }
 0x5c3   :  { %12705 = vmatprep.subr.msk.mxu1 %vm6414_vm9, %v14329_v56  ;;  %v8924_v20 = vpop.permute.xlu1 %8923 }
 0x5c5   :  { %12697 = vmatmul.mubr.msk.f32.vlgmr.msra.gmra.mrb[16].mxu0 %vm6646_vm10, %v14664_v34 }
 0x5c6   :  { %12703 = vmatpush1.msk.msra.mxu0 %vm6414_vm9, %v14303_v1  ;;  %7913 = vmatprep.mubr.f32.mxu0 %v15380_v37 }
 0x5c7   :  { %12709 = vmatprep.subr.msk.mxu0 %vm6414_vm9, %v14338_v2 }
 0x5c9   :  { %12700 = vmatmul.mubr.msk.f32.vlgmr.msra.gmra.mrb[16].mxu1 %vm6646_vm10, %v14664_v34 }
 0x5ca   :  { %12706 = vmatpush1.msk.msra.mxu1 %vm6414_vm9, %v14301_v27  ;;  %7984 = vmatprep.mubr.f32.mxu1 %v15380_v37 }
 0x5cb   :  { %12712 = vmatprep.subr.msk.mxu1 %vm6414_vm9, %v14347_v16 }
 0x5cd   :  { %12704 = vmatmul.mubr.msk.f32.vlgmr.msra.gmra.mrb[16].mxu0 %vm6646_vm10, %v14683_v29 }
 0x5ce   :  { %12710 = vmatpush1.msk.msra.mxu0 %vm6414_vm9, %v14315_v39  ;;  %8072 = vmatprep.mubr.f32.mxu0 %v15380_v37 }
 0x5cf   :  { %12715 = vmatprep.subr.msk.mxu0 %vm6414_vm9, %v14528_v0  ;;  %v8455_v0 = vsel %vm2512_vm4, %v8448_v48, %v8450_v61 }
 0x5d0   :  { %v8464_v46 = vmul.f32 %v8455_v0, %v15386_v14  ;;  %v15392_v14 = vld [vmem:[#allocation13_spill] sm:$0xff] }
 0x5d1   :  { %12707 = vmatmul.mubr.msk.f32.vlgmr.msra.gmra.mrb[16].mxu1 %vm6646_vm10, %v14683_v29 }
 0x5d2   :  { %12713 = vmatpush1.msk.msra.mxu1 %vm6414_vm9, %v14327_v22  ;;  %8143 = vmatprep.mubr.f32.mxu1 %v15380_v37 }
 0x5d3   :  { %12718 = vmatprep.subr.msk.mxu1 %vm6414_vm9, %v14548_v21  ;;  %v8457_v21 = vsel %vm2512_vm4, %v8452_v57, %v8454_v13  ;;  %v15391_v13 = vld [vmem:[#allocation12_spill] sm:$0xff] }
 0x5d5   :  { %12711 = vmatmul.mubr.msk.f32.vlgmr.msra.gmra.mrb[16].mxu0 %vm6646_vm10, %v14702_v26 }
 0x5d6   :  { %12716 = vmatpush1.msk.msra.mxu0 %vm6414_vm9, %v14533_v55  ;;  %8227 = vmatprep.mubr.f32.mxu0 %v15380_v37  ;;  %v15387_v55 = vld [vmem:[#allocation8_spill] sm:$0xff] }
 0x5d7   :  { %12721 = vmatprep.subr.msk.mxu0 %vm6414_vm9, %v14473_v52  ;;  %v8462_v52 = vsel %vm2512_vm4, 0.0, %v8448_v48  ;;  %v8466_v50 = vmul.f32 %v8457_v21, %v15387_v55  ;;  %v8932_v48 = vsel %vm2998_vm5, %v8924_v20, 0.0  ;;  %v8927_v21 = vsel %vm2998_vm5, %v8922_v58, %v8924_v20 }
 0x5d9   :  { %12714 = vmatmul.mubr.msk.f32.vlgmr.msra.gmra.mrb[16].mxu1 %vm6646_vm10, %v14702_v26  ;;  %12717 = vmatmul.mubr.msk.f32.vlgmr.msra.gmra.mrb[18].mxu0 %vm6646_vm10, %v14481_v7 }
 0x5da   :  { %12719 = vmatpush1.msk.msra.mxu1 %vm6414_vm9, %v14553_v25  ;;  %12722 = vmatpush1.msk.msra.mxu0 %vm6414_vm9, %v14476_v15  ;;  %v15388_v15 = vld [vmem:[#allocation9_spill] sm:$0xff]  ;;  %v8456_v25 = vsel %vm2512_vm4, %v8450_v61, %v8452_v57  ;;  %v8918_v61 = vpop.permute.xlu0 %8917  ;;  %v14781_v57 = vmul.f32 %v8932_v48, %v15391_v13 }
 0x5db   :  { %12724 = vmatprep.subr.msk.mxu1 %vm6414_vm9, %v14490_v3  ;;  %12727 = vmatprep.subr.msk.mxu0 %vm6414_vm9, %v8464_v46  ;;  %v8463_v3 = vmul.f32 %v8462_v52, %v15388_v15  ;;  %v8925_v0 = vsel %vm2998_vm5, %v8918_v61, %v8920_v5  ;;  %v15393_v52 = vld [vmem:[#allocation14_spill] sm:$0xff] }
 0x5dc   :  { %8298 = vmatprep.mubr.f32.mxu1 %v15380_v37  ;;  %8369 = vmatprep.mubr.f32.mxu0 %v15380_v37  ;;  %v14791_v46 = vmul.f32 %v8925_v0, %v15392_v14  ;;  %v14802_v55 = vmul.f32 %v8927_v21, %v15393_v52  ;;  %v15395_v21 = vld [vmem:[#allocation16_spill] sm:$0xff] }
 0x5dd   :  { %12720 = vmatmul.mubr.msk.f32.vlgmr.msra.gmra.mrb[18].mxu1 %vm6646_vm10, %v14481_v7 }
 0x5de   :  { %12725 = vmatpush1.msk.msra.mxu1 %vm6414_vm9, %v14495_v42  ;;  %8440 = vmatprep.mubr.f32.mxu1 %v15380_v37  ;;  %v8465_v42 = vmul.f32 %v8456_v25, %v15389_v43  ;;  %v9390_v15 = vpop.permute.xlu0 %9389 }
 0x5df   :  { %12730 = vmatprep.subr.msk.mxu1 %vm6414_vm9, %v8466_v50  ;;  %v9392_v50 = vpop.permute.xlu1 %9391 }
 0x5e1   :  { %12723 = vmatmul.mubr.msk.f32.vlgmr.msra.gmra.mrb[18].mxu0 %vm6646_vm10, %v14511_v6 }
 0x5e2   :  { %12728 = vmatpush1.msk.msra.mxu0 %vm6414_vm9, %v8463_v3  ;;  %8543 = vmatprep.mubr.f32.mxu0 %v15380_v37  ;;  %v9396_v3 = vsel %vm2998_vm5, %v9390_v15, %v9392_v50 }
 0x5e3   :  { %12733 = vmatprep.subr.msk.mxu0 %vm6414_vm9, %v14400_v63  ;;  %v9394_v25 = vpop.permute.xlu1 %9393  ;;  %v14827_v43 = vmul.f32 %v9396_v3, %v15390_v11  ;;  %v15396_v3 = vld [vmem:[#allocation17_spill] sm:$0xff] }
 0x5e4   :  { %v9402_v58 = vsel %vm2998_vm5, %v9394_v25, 0.0  ;;  %v9397_v11 = vsel %vm2998_vm5, %v9392_v50, %v9394_v25 }
 0x5e5   :  { %12726 = vmatmul.mubr.msk.f32.vlgmr.msra.gmra.mrb[18].mxu1 %vm6646_vm10, %v14511_v6  ;;  %v14839_v53 = vmul.f32 %v9402_v58, %v15391_v13  ;;  %v14860_v61 = vmul.f32 %v9397_v11, %v15393_v52 }
 0x5e6   :  { %12731 = vmatpush1.msk.msra.mxu1 %vm6414_vm9, %v8465_v42  ;;  %8614 = vmatprep.mubr.f32.mxu1 %v15380_v37  ;;  %v9388_v42 = vpop.permute.xlu0 %9387 }
 0x5e7   :  { %12736 = vmatprep.subr.msk.mxu1 %vm6414_vm9, %v14425_v23  ;;  %v9395_v5 = vsel %vm2998_vm5, %v9388_v42, %v9390_v15 }
 0x5e8   :  { %v14849_v20 = vmul.f32 %v9395_v5, %v15392_v14 }
 0x5e9   :  { %12729 = vmatmul.mubr.msk.f32.vlgmr.msra.gmra.mrb[18].mxu0 %vm6646_vm10, %v14538_v9 }
 0x5ea   :  { %12734 = vmatpush1.msk.msra.mxu0 %vm6414_vm9, %v14409_v12  ;;  %8689 = vmatprep.mubr.f32.mxu0 %v15380_v37 }
 0x5eb   :  { %12739 = vmatprep.subr.msk.mxu0 %vm6414_vm9, %v14374_v38 }
 0x5ed   :  { %12732 = vmatmul.mubr.msk.f32.vlgmr.msra.gmra.mrb[18].mxu1 %vm6646_vm10, %v14538_v9 }
 0x5ee   :  { %12737 = vmatpush1.msk.msra.mxu1 %vm6414_vm9, %v14418_v59  ;;  %8760 = vmatprep.mubr.f32.mxu1 %v15380_v37 }
 0x5ef   :  { %12742 = vmatprep.subr.msk.mxu1 %vm6414_vm9, %v14381_v47 }
 0x5f1   :  { %12735 = vmatmul.mubr.msk.f32.vlgmr.msra.gmra.mrb[18].mxu0 %vm6646_vm10, %v14573_v33 }
 0x5f2   :  { %12740 = vmatpush1.msk.msra.mxu0 %vm6414_vm9, %v14356_v45  ;;  %8835 = vmatprep.mubr.f32.mxu0 %v15380_v37 }
 0x5f3   :  { %12745 = vmatprep.subr.msk.mxu0 %vm6414_vm9, %v14769_v30 }
 0x5f5   :  { %12738 = vmatmul.mubr.msk.f32.vlgmr.msra.gmra.mrb[18].mxu1 %vm6646_vm10, %v14573_v33 }
 0x5f6   :  { %12743 = vmatpush1.msk.msra.mxu1 %vm6414_vm9, %v14365_v28  ;;  %8906 = vmatprep.mubr.f32.mxu1 %v15380_v37 }
 0x5f7   :  { %12748 = vmatprep.subr.msk.mxu1 %vm6414_vm9, %v14781_v57 }
 0x5f9   :  { %12741 = vmatmul.mubr.msk.f32.vlgmr.msra.gmra.mrb[18].mxu0 %vm6646_vm10, %v14611_v41 }
 0x5fa   :  { %12746 = vmatpush1.msk.msra.mxu0 %vm6414_vm9, %v14791_v46  ;;  %9013 = vmatprep.mubr.f32.mxu0 %v15380_v37 }
 0x5fb   :  { %12751 = vmatprep.subr.msk.mxu0 %vm6414_vm9, %v14317_v24 }
 0x5fd   :  { %12744 = vmatmul.mubr.msk.f32.vlgmr.msra.gmra.mrb[18].mxu1 %vm6646_vm10, %v14611_v41 }
 0x5fe   :  { %12749 = vmatpush1.msk.msra.mxu1 %vm6414_vm9, %v14802_v55  ;;  %9084 = vmatprep.mubr.f32.mxu1 %v15380_v37 }
 0x5ff   :  { %12754 = vmatprep.subr.msk.mxu1 %vm6414_vm9, %v14329_v56 }
 0x601   :  { %12747 = vmatmul.mubr.msk.f32.vlgmr.msra.gmra.mrb[18].mxu0 %vm6646_vm10, %v14638_v19 }
 0x602   :  { %12752 = vmatpush1.msk.msra.mxu0 %vm6414_vm9, %v14303_v1  ;;  %9159 = vmatprep.mubr.f32.mxu0 %v15380_v37 }
 0x603   :  { %12757 = vmatprep.subr.msk.mxu0 %vm6414_vm9, %v14338_v2 }
 0x605   :  { %12750 = vmatmul.mubr.msk.f32.vlgmr.msra.gmra.mrb[18].mxu1 %vm6646_vm10, %v14638_v19 }
 0x606   :  { %12755 = vmatpush1.msk.msra.mxu1 %vm6414_vm9, %v14301_v27  ;;  %9230 = vmatprep.mubr.f32.mxu1 %v15380_v37 }
 0x607   :  { %12760 = vmatprep.subr.msk.mxu1 %vm6414_vm9, %v14347_v16 }
 0x609   :  { %12753 = vmatmul.mubr.msk.f32.vlgmr.msra.gmra.mrb[18].mxu0 %vm6646_vm10, %v14664_v34 }
 0x60a   :  { %12758 = vmatpush1.msk.msra.mxu0 %vm6414_vm9, %v14315_v39  ;;  %9305 = vmatprep.mubr.f32.mxu0 %v15380_v37 }
 0x60b   :  { %12763 = vmatprep.subr.msk.mxu0 %vm6414_vm9, %v14827_v43 }
 0x60d   :  { %12756 = vmatmul.mubr.msk.f32.vlgmr.msra.gmra.mrb[18].mxu1 %vm6646_vm10, %v14664_v34 }
 0x60e   :  { %12761 = vmatpush1.msk.msra.mxu1 %vm6414_vm9, %v14327_v22  ;;  %9376 = vmatprep.mubr.f32.mxu1 %v15380_v37 }
 0x60f   :  { %12766 = vmatprep.subr.msk.mxu1 %vm6414_vm9, %v14839_v53 }
 0x611   :  { %12759 = vmatmul.mubr.msk.f32.vlgmr.msra.gmra.mrb[18].mxu0 %vm6646_vm10, %v14683_v29 }
 0x612   :  { %12764 = vmatpush1.msk.msra.mxu0 %vm6414_vm9, %v14849_v20  ;;  %9483 = vmatprep.mubr.f32.mxu0 %v15380_v37 }
 0x613   :  { %12769 = vmatprep.subr.msk.mxu0 %vm6414_vm9, %v14400_v63 }
 0x615   :  { %12762 = vmatmul.mubr.msk.f32.vlgmr.msra.gmra.mrb[18].mxu1 %vm6646_vm10, %v14683_v29 }
 0x616   :  { %12767 = vmatpush1.msk.msra.mxu1 %vm6414_vm9, %v14860_v61  ;;  %9554 = vmatprep.mubr.f32.mxu1 %v15380_v37 }
 0x617   :  { %12772 = vmatprep.subr.msk.mxu1 %vm6414_vm9, %v14425_v23 }
 0x619   :  { %12765 = vmatmul.mubr.msk.f32.vlgmr.msra.gmra.mrb[18].mxu0 %vm6646_vm10, %v14702_v26 }
 0x61a   :  { %12770 = vmatpush1.msk.msra.mxu0 %vm6414_vm9, %v14409_v12  ;;  %9633 = vmatprep.mubr.f32.mxu0 %v15380_v37 }
 0x61b   :  { %12775 = vmatprep.subr.msk.mxu0 %vm6414_vm9, %v14563_v60  ;;  %v10442_v60 = vpop.permute.xlu1 %10441 }
 0x61d   :  { %12768 = vmatmul.mubr.msk.f32.vlgmr.msra.gmra.mrb[18].mxu1 %vm6646_vm10, %v14702_v26  ;;  %12771 = vmatmul.mubr.msk.f32.vlgmr.msra.gmra.mrb[20].mxu0 %vm6646_vm10, %v14481_v7 }
 0x61e   :  { %12773 = vmatpush1.msk.msra.mxu1 %vm6414_vm9, %v14418_v59  ;;  %12776 = vmatpush1.msk.msra.mxu0 %vm6414_vm9, %v14568_v35  ;;  %v10440_v35 = vpop.permute.xlu0 %10439 }
 0x61f   :  { %12778 = vmatprep.subr.msk.mxu1 %vm6414_vm9, %v14583_v31  ;;  %12781 = vmatprep.subr.msk.mxu0 %vm6414_vm9, %v14374_v38  ;;  %v10444_v31 = vpop.permute.xlu1 %10443 }
 0x620   :  { %9704 = vmatprep.mubr.f32.mxu1 %v15380_v37  ;;  %9775 = vmatprep.mubr.f32.mxu0 %v15380_v37  ;;  %v10452_v0 = vsel %vm4518_vm6, %v10444_v31, 0.0  ;;  %v10447_v42 = vsel %vm4518_vm6, %v10442_v60, %v10444_v31 }
 0x621   :  { %12774 = vmatmul.mubr.msk.f32.vlgmr.msra.gmra.mrb[20].mxu1 %vm6646_vm10, %v14481_v7  ;;  %v10456_v52 = vmul.f32 %v10452_v0, %v15395_v21 }
 0x622   :  { %12779 = vmatpush1.msk.msra.mxu1 %vm6414_vm9, %v14590_v10  ;;  %9846 = vmatprep.mubr.f32.mxu1 %v15380_v37  ;;  %v10438_v10 = vpop.permute.xlu0 %10437 }
 0x623   :  { %12784 = vmatprep.subr.msk.mxu1 %vm6414_vm9, %v14381_v47  ;;  %v10445_v14 = vsel %vm4518_vm6, %v10438_v10, %v10440_v35 }
 0x624   :  { %v10453_v25 = vmul.f32 %v10445_v14, %v15396_v3 }
 0x625   :  { %12777 = vmatmul.mubr.msk.f32.vlgmr.msra.gmra.mrb[20].mxu0 %vm6646_vm10, %v14511_v6 }
 0x626   :  { %12782 = vmatpush1.msk.msra.mxu0 %vm6414_vm9, %v14356_v45  ;;  %9917 = vmatprep.mubr.f32.mxu0 %v15380_v37 }
 0x627   :  { %12787 = vmatprep.subr.msk.mxu0 %vm6414_vm9, %v14617_v18  ;;  %v10620_v18 = vpop.permute.xlu1 %10619 }
 0x629   :  { %12780 = vmatmul.mubr.msk.f32.vlgmr.msra.gmra.mrb[20].mxu1 %vm6646_vm10, %v14511_v6 }
 0x62a   :  { %12785 = vmatpush1.msk.msra.mxu1 %vm6414_vm9, %v14365_v28  ;;  %9988 = vmatprep.mubr.f32.mxu1 %v15380_v37 }
 0x62b   :  { %12790 = vmatprep.subr.msk.mxu1 %vm6414_vm9, %v14629_v17  ;;  %v10446_v17 = vsel %vm4518_vm6, %v10440_v35, %v10442_v60  ;;  %v10622_v13 = vpop.permute.xlu1 %10621  ;;  %v15397_v35 = vld [vmem:[#allocation18_spill] sm:$0xff] }
 0x62c   :  { %v10630_v11 = vsel %vm4708_vm7, %v10622_v13, 0.0  ;;  %v10455_v10 = vmul.f32 %v10447_v42, %v15397_v35 }
 0x62d   :  { %12783 = vmatmul.mubr.msk.f32.vlgmr.msra.gmra.mrb[20].mxu0 %vm6646_vm10, %v14538_v9  ;;  %v14972_v31 = vmul.f32 %v10630_v11, %v13988_v54 }
 0x62e   :  { %12788 = vmatpush1.msk.msra.mxu0 %vm6414_vm9, %v14644_v4  ;;  %10063 = vmatprep.mubr.f32.mxu0 %v15380_v37  ;;  %v10618_v4 = vpop.permute.xlu0 %10617 }
 0x62f   :  { %12793 = vmatprep.subr.msk.mxu0 %vm6414_vm9, %v14317_v24  ;;  %v10624_v15 = vsel %vm4708_vm7, %v10618_v4, %v10620_v18  ;;  %v10798_v5 = vpop.permute.xlu1 %10797 }
 0x630   :  { %v14960_v58 = vmul.f32 %v10624_v15, %v13972_v32 }
 0x631   :  { %12786 = vmatmul.mubr.msk.f32.vlgmr.msra.gmra.mrb[20].mxu1 %vm6646_vm10, %v14538_v9 }
 0x632   :  { %12791 = vmatpush1.msk.msra.mxu1 %vm6414_vm9, %v14655_v44  ;;  %10134 = vmatprep.mubr.f32.mxu1 %v15380_v37  ;;  %v15394_v44 = vld [vmem:[#allocation15_spill] sm:$0xff]  ;;  %v10616_v50 = vpop.permute.xlu0 %10615 }
 0x633   :  { %12796 = vmatprep.subr.msk.mxu1 %vm6414_vm9, %v14329_v56  ;;  %v10454_v48 = vmul.f32 %v10446_v17, %v15394_v44  ;;  %v10623_v60 = vsel %vm4708_vm7, %v10616_v50, %v10618_v4  ;;  %v10625_v4 = vsel %vm4708_vm7, %v10620_v18, %v10622_v13 }
 0x634   :  { %v14982_v0 = vmul.f32 %v10623_v60, %v13997_v36  ;;  %v14997_v50 = vmul.f32 %v10625_v4, %v14009_v49 }
 0x635   :  { %12789 = vmatmul.mubr.msk.f32.vlgmr.msra.gmra.mrb[20].mxu0 %vm6646_vm10, %v14573_v33 }
 0x636   :  { %12794 = vmatpush1.msk.msra.mxu0 %vm6414_vm9, %v14303_v1  ;;  %10209 = vmatprep.mubr.f32.mxu0 %v15380_v37  ;;  %v10796_v17 = vpop.permute.xlu0 %10795 }
 0x637   :  { %12799 = vmatprep.subr.msk.mxu0 %vm6414_vm9, %v14338_v2  ;;  %v10802_v44 = vsel %vm4708_vm7, %v10796_v17, %v10798_v5 }
 0x638   :  { %v14986_v14 = vmul.f32 %v10802_v44, %v13972_v32 }
 0x639   :  { %12792 = vmatmul.mubr.msk.f32.vlgmr.msra.gmra.mrb[20].mxu1 %vm6646_vm10, %v14573_v33 }
 0x63a   :  { %12797 = vmatpush1.msk.msra.mxu1 %vm6414_vm9, %v14301_v27  ;;  %10280 = vmatprep.mubr.f32.mxu1 %v15380_v37  ;;  %v10794_v21 = vpop.permute.xlu0 %10793 }
 0x63b   :  { %12802 = vmatprep.subr.msk.mxu1 %vm6414_vm9, %v14347_v16  ;;  %v10801_v32 = vsel %vm4708_vm7, %v10794_v21, %v10796_v17 }
 0x63c   :  { %v15011_v13 = vmul.f32 %v10801_v32, %v13997_v36 }
 0x63d   :  { %12795 = vmatmul.mubr.msk.f32.vlgmr.msra.gmra.mrb[20].mxu0 %vm6646_vm10, %v14611_v41 }
 0x63e   :  { %12800 = vmatpush1.msk.msra.mxu0 %vm6414_vm9, %v14315_v39  ;;  %10355 = vmatprep.mubr.f32.mxu0 %v15380_v37 }
 0x63f   :  { %12805 = vmatprep.subr.msk.mxu0 %vm6414_vm9, %v10454_v48  ;;  %v10800_v48 = vpop.permute.xlu1 %10799 }
 0x640   :  { %v10803_v15 = vsel %vm4708_vm7, %v10798_v5, %v10800_v48 }
 0x641   :  { %12798 = vmatmul.mubr.msk.f32.vlgmr.msra.gmra.mrb[20].mxu1 %vm6646_vm10, %v14611_v41 }
 0x642   :  { %12803 = vmatpush1.msk.msra.mxu1 %vm6414_vm9, %v14327_v22  ;;  %10426 = vmatprep.mubr.f32.mxu1 %v15380_v37 }
 0x643   :  { %12808 = vmatprep.subr.msk.mxu1 %vm6414_vm9, %v10456_v52  ;;  %v10808_v52 = vsel %vm4708_vm7, %v10800_v48, 0.0  ;;  %v12140_v36 = vpop.permute.xlu1 %12139 }
 0x644   :  { %v15001_v18 = vmul.f32 %v10808_v52, %v13988_v54  ;;  %v15022_v54 = vmul.f32 %v10803_v15, %v14009_v49  ;;  %v12138_v49 = vpop.permute.xlu0 %12137 }
 0x645   :  { %12801 = vmatmul.mubr.msk.f32.vlgmr.msra.gmra.mrb[20].mxu0 %vm6646_vm10, %v14638_v19 }
 0x646   :  { %12806 = vmatpush1.msk.msra.mxu0 %vm6414_vm9, %v10453_v25  ;;  %10533 = vmatprep.mubr.f32.mxu0 %v15380_v37 }
 0x647   :  { %12811 = vmatprep.subr.msk.mxu0 %vm6414_vm9, %v14960_v58 }
 0x649   :  { %12804 = vmatmul.mubr.msk.f32.vlgmr.msra.gmra.mrb[20].mxu1 %vm6646_vm10, %v14638_v19 }
 0x64a   :  { %12809 = vmatpush1.msk.msra.mxu1 %vm6414_vm9, %v10455_v10  ;;  %10604 = vmatprep.mubr.f32.mxu1 %v15380_v37 }
 0x64b   :  { %12814 = vmatprep.subr.msk.mxu1 %vm6414_vm9, %v14972_v31 }
 0x64d   :  { %12807 = vmatmul.mubr.msk.f32.vlgmr.msra.gmra.mrb[20].mxu0 %vm6646_vm10, %v14664_v34 }
 0x64e   :  { %12812 = vmatpush1.msk.msra.mxu0 %vm6414_vm9, %v14982_v0  ;;  %10711 = vmatprep.mubr.f32.mxu0 %v15380_v37 }
 0x64f   :  { %12817 = vmatprep.subr.msk.mxu0 %vm6414_vm9, %v14986_v14 }
 0x651   :  { %12810 = vmatmul.mubr.msk.f32.vlgmr.msra.gmra.mrb[20].mxu1 %vm6646_vm10, %v14664_v34 }
 0x652   :  { %12815 = vmatpush1.msk.msra.mxu1 %vm6414_vm9, %v14997_v50  ;;  %10782 = vmatprep.mubr.f32.mxu1 %v15380_v37 }
 0x653   :  { %12820 = vmatprep.subr.msk.mxu1 %vm6414_vm9, %v15001_v18 }
 0x655   :  { %12813 = vmatmul.mubr.msk.f32.vlgmr.msra.gmra.mrb[20].mxu0 %vm6646_vm10, %v14683_v29 }
 0x656   :  { %12818 = vmatpush1.msk.msra.mxu0 %vm6414_vm9, %v15011_v13  ;;  %10889 = vmatprep.mubr.f32.mxu0 %v15380_v37 }
 0x657   :  { %12823 = vmatprep.subr.msk.mxu0 %vm6414_vm9, %v14374_v38 }
 0x659   :  { %12816 = vmatmul.mubr.msk.f32.vlgmr.msra.gmra.mrb[20].mxu1 %vm6646_vm10, %v14683_v29 }
 0x65a   :  { %12821 = vmatpush1.msk.msra.mxu1 %vm6414_vm9, %v15022_v54  ;;  %10960 = vmatprep.mubr.f32.mxu1 %v15380_v37 }
 0x65b   :  { %12826 = vmatprep.subr.msk.mxu1 %vm6414_vm9, %v14381_v47 }
 0x65d   :  { %12819 = vmatmul.mubr.msk.f32.vlgmr.msra.gmra.mrb[20].mxu0 %vm6646_vm10, %v14702_v26 }
 0x65e   :  { %12824 = vmatpush1.msk.msra.mxu0 %vm6414_vm9, %v14356_v45  ;;  %11039 = vmatprep.mubr.f32.mxu0 %v15380_v37 }
 0x65f   :  { %12829 = vmatprep.subr.msk.mxu0 %vm6414_vm9, %v14400_v63 }
 0x661   :  { %12822 = vmatmul.mubr.msk.f32.vlgmr.msra.gmra.mrb[20].mxu1 %vm6646_vm10, %v14702_v26  ;;  %12825 = vmatmul.mubr.msk.f32.vlgmr.msra.gmra.mrb[22].mxu0 %vm6646_vm10, %v14481_v7 }
 0x662   :  { %12827 = vmatpush1.msk.msra.mxu1 %vm6414_vm9, %v14365_v28  ;;  %12830 = vmatpush1.msk.msra.mxu0 %vm6414_vm9, %v14409_v12 }
 0x663   :  { %12832 = vmatprep.subr.msk.mxu1 %vm6414_vm9, %v14425_v23  ;;  %12835 = vmatprep.subr.msk.mxu0 %vm6414_vm9, %v14769_v30 }
 0x664   :  { %11110 = vmatprep.mubr.f32.mxu1 %v15380_v37  ;;  %11181 = vmatprep.mubr.f32.mxu0 %v15380_v37 }
 0x665   :  { %12828 = vmatmul.mubr.msk.f32.vlgmr.msra.gmra.mrb[22].mxu1 %vm6646_vm10, %v14481_v7 }
 0x666   :  { %12833 = vmatpush1.msk.msra.mxu1 %vm6414_vm9, %v14418_v59  ;;  %11252 = vmatprep.mubr.f32.mxu1 %v15380_v37 }
 0x667   :  { %12838 = vmatprep.subr.msk.mxu1 %vm6414_vm9, %v14781_v57 }
 0x669   :  { %12831 = vmatmul.mubr.msk.f32.vlgmr.msra.gmra.mrb[22].mxu0 %vm6646_vm10, %v14511_v6 }
 0x66a   :  { %12836 = vmatpush1.msk.msra.mxu0 %vm6414_vm9, %v14791_v46  ;;  %11323 = vmatprep.mubr.f32.mxu0 %v15380_v37 }
 0x66b   :  { %12841 = vmatprep.subr.msk.mxu0 %vm6414_vm9, %v14317_v24  ;;  %v12136_v24 = vpop.permute.xlu0 %12135 }
 0x66d   :  { %12834 = vmatmul.mubr.msk.f32.vlgmr.msra.gmra.mrb[22].mxu1 %vm6646_vm10, %v14511_v6 }
 0x66e   :  { %12839 = vmatpush1.msk.msra.mxu1 %vm6414_vm9, %v14802_v55  ;;  %11394 = vmatprep.mubr.f32.mxu1 %v15380_v37 }
 0x66f   :  { %12844 = vmatprep.subr.msk.mxu1 %vm6414_vm9, %v14329_v56  ;;  %v12143_v56 = vsel %vm6228_vm8, %v12136_v24, %v12138_v49 }
 0x671   :  { %12837 = vmatmul.mubr.msk.f32.vlgmr.msra.gmra.mrb[22].mxu0 %vm6646_vm10, %v14538_v9 }
 0x672   :  { %12842 = vmatpush1.msk.msra.mxu0 %vm6414_vm9, %v14303_v1  ;;  %11469 = vmatprep.mubr.f32.mxu0 %v15380_v37  ;;  %v12142_v1 = vpop.permute.xlu1 %12141 }
 0x673   :  { %12847 = vmatprep.subr.msk.mxu0 %vm6414_vm9, %v14338_v2 }
 0x675   :  { %12840 = vmatmul.mubr.msk.f32.vlgmr.msra.gmra.mrb[22].mxu1 %vm6646_vm10, %v14538_v9 }
 0x676   :  { %12845 = vmatpush1.msk.msra.mxu1 %vm6414_vm9, %v14301_v27  ;;  %11540 = vmatprep.mubr.f32.mxu1 %v15380_v37  ;;  %v12144_v27 = vsel %vm6228_vm8, %v12138_v49, %v12140_v36 }
 0x677   :  { %12850 = vmatprep.subr.msk.mxu1 %vm6414_vm9, %v14347_v16  ;;  %v12145_v16 = vsel %vm6228_vm8, %v12140_v36, %v12142_v1 }
 0x679   :  { %12843 = vmatmul.mubr.msk.f32.vlgmr.msra.gmra.mrb[22].mxu0 %vm6646_vm10, %v14573_v33 }
 0x67a   :  { %12848 = vmatpush1.msk.msra.mxu0 %vm6414_vm9, %v14315_v39  ;;  %11615 = vmatprep.mubr.f32.mxu0 %v15380_v37  ;;  %v12152_v39 = vmul.f32 %v12144_v27, %v14122_v40  ;;  %v12151_v40 = vmul.f32 %v12143_v56, %v14140_v62  ;;  %v8157_v62 = vpop.permute.xlu0 %8156 }
 0x67b   :  { %12853 = vmatprep.subr.msk.mxu0 %vm6414_vm9, %v14827_v43 }
 0x67d   :  { %12846 = vmatmul.mubr.msk.f32.vlgmr.msra.gmra.mrb[22].mxu1 %vm6646_vm10, %v14573_v33 }
 0x67e   :  { %12851 = vmatpush1.msk.msra.mxu1 %vm6414_vm9, %v14327_v22  ;;  %11686 = vmatprep.mubr.f32.mxu1 %v15380_v37  ;;  %v12150_v22 = vsel %vm6228_vm8, %v12142_v1, 0.0 }
 0x67f   :  { %12856 = vmatprep.subr.msk.mxu1 %vm6414_vm9, %v14839_v53  ;;  %v12154_v2 = vmul.f32 %v12150_v22, %v14132_v51  ;;  %v12153_v51 = vmul.f32 %v12145_v16, %v14149_v8 }
 0x681   :  { %12849 = vmatmul.mubr.msk.f32.vlgmr.msra.gmra.mrb[22].mxu0 %vm6646_vm10, %v14611_v41 }
 0x682   :  { %12854 = vmatpush1.msk.msra.mxu0 %vm6414_vm9, %v14849_v20  ;;  %11761 = vmatprep.mubr.f32.mxu0 %v15380_v37 }
 0x683   :  { %12859 = vmatprep.subr.msk.mxu0 %vm6414_vm9, %v14960_v58 }
 0x685   :  { %12852 = vmatmul.mubr.msk.f32.vlgmr.msra.gmra.mrb[22].mxu1 %vm6646_vm10, %v14611_v41 }
 0x686   :  { %12857 = vmatpush1.msk.msra.mxu1 %vm6414_vm9, %v14860_v61  ;;  %11832 = vmatprep.mubr.f32.mxu1 %v15380_v37 }
 0x687   :  { %12862 = vmatprep.subr.msk.mxu1 %vm6414_vm9, %v14972_v31 }
 0x689   :  { %12855 = vmatmul.mubr.msk.f32.vlgmr.msra.gmra.mrb[22].mxu0 %vm6646_vm10, %v14638_v19 }
 0x68a   :  { %12860 = vmatpush1.msk.msra.mxu0 %vm6414_vm9, %v14982_v0  ;;  %11907 = vmatprep.mubr.f32.mxu0 %v15380_v37 }
 0x68b   :  { %12865 = vmatprep.subr.msk.mxu0 %vm6414_vm9, %v14986_v14 }
 0x68d   :  { %12858 = vmatmul.mubr.msk.f32.vlgmr.msra.gmra.mrb[22].mxu1 %vm6646_vm10, %v14638_v19 }
 0x68e   :  { %12863 = vmatpush1.msk.msra.mxu1 %vm6414_vm9, %v14997_v50  ;;  %11978 = vmatprep.mubr.f32.mxu1 %v15380_v37 }
 0x68f   :  { %12868 = vmatprep.subr.msk.mxu1 %vm6414_vm9, %v15001_v18 }
 0x691   :  { %12861 = vmatmul.mubr.msk.f32.vlgmr.msra.gmra.mrb[22].mxu0 %vm6646_vm10, %v14664_v34 }
 0x692   :  { %12866 = vmatpush1.msk.msra.mxu0 %vm6414_vm9, %v15011_v13  ;;  %12053 = vmatprep.mubr.f32.mxu0 %v15380_v37 }
 0x693   :  { %12871 = vmatprep.subr.msk.mxu0 %vm6414_vm9, %v12152_v39 }
 0x695   :  { %12864 = vmatmul.mubr.msk.f32.vlgmr.msra.gmra.mrb[22].mxu1 %vm6646_vm10, %v14664_v34 }
 0x696   :  { %12869 = vmatpush1.msk.msra.mxu1 %vm6414_vm9, %v15022_v54  ;;  %12124 = vmatprep.mubr.f32.mxu1 %v15380_v37 }
 0x697   :  { %12874 = vmatprep.subr.msk.mxu1 %vm6414_vm9, %v12154_v2 }
 0x699   :  { %12867 = vmatmul.mubr.msk.f32.vlgmr.msra.gmra.mrb[22].mxu0 %vm6646_vm10, %v14683_v29 }
 0x69a   :  { %12872 = vmatpush1.msk.msra.mxu0 %vm6414_vm9, %v12151_v40  ;;  %12231 = vmatprep.mubr.f32.mxu0 %v15380_v37 }
 0x69d   :  { %12870 = vmatmul.mubr.msk.f32.vlgmr.msra.gmra.mrb[22].mxu1 %vm6646_vm10, %v14683_v29 }
 0x69e   :  { %12875 = vmatpush1.msk.msra.mxu1 %vm6414_vm9, %v12153_v51  ;;  %12302 = vmatprep.mubr.f32.mxu1 %v15380_v37 }
 0x6a1   :  { %12873 = vmatmul.mubr.msk.f32.vlgmr.msra.gmra.mrb[22].mxu0 %vm6646_vm10, %v14702_v26 }
 0x6a5   :  { %12876 = vmatmul.mubr.msk.f32.vlgmr.msra.gmra.mrb[22].mxu1 %vm6646_vm10, %v14702_v26 }
 0x6a8   :  { %v8074_v45 = vpop.f32.mrb[16].mxu0 }
 0x6a9   :  { %v15161_v28 = vadd.f32 %v8157_v62, %v8074_v45  ;;  %v8076_v38 = vpop.f32.mrb[17].mxu0 }
 0x6aa   :  { %v15163_v47 = vadd.f32 %v8157_v62, %v8076_v38 }
 0x6ab   :  { %v12317_v8 = vsel %vm6414_vm9, %v15161_v28, 0.0 }
 0x6ac   :  { %v12318_v63 = vsel %vm6414_vm9, %v15163_v47, 0.0  ;;  %v8145_v37 = vpop.f32.mrb[16].mxu1 }
 0x6ad   :  { %v12319_v12 = vadd.f32 %v12318_v63, %v12317_v8  ;;  %v15169_v59 = vadd.f32 %v8157_v62, %v8145_v37  ;;  %v8147_v23 = vpop.f32.mrb[17].mxu1 }
 0x6ae   :  { %v15171_v7 = vadd.f32 %v8157_v62, %v8147_v23 }
 0x6af   :  { %v12320_v6 = vsel %vm6414_vm9, %v15169_v59, 0.0 }
 0x6b0   :  { %v12321_v9 = vadd.f32 %v12320_v6, %v12319_v12  ;;  %v12322_v33 = vsel %vm6414_vm9, %v15171_v7, 0.0 }
 0x6b2   :  { %v12323_v41 = vadd.f32 %v12322_v33, %v12321_v9 }
 0x6b4   :  { %12324 = vadd.xlane.f32.xlu1 %v12323_v41 }
 0x6ec   :  { %v9485_v19 = vpop.f32.mrb[18].mxu0 }
 0x6ed   :  { %v15177_v34 = vadd.f32 %v9485_v19, %v8157_v62  ;;  %v9487_v29 = vpop.f32.mrb[19].mxu0 }
 0x6ee   :  { %v15179_v26 = vadd.f32 %v9487_v29, %v8157_v62 }
 0x6ef   :  { %v12327_v30 = vsel %vm6414_vm9, %v15177_v34, 0.0 }
 0x6f0   :  { %v12328_v57 = vsel %vm6414_vm9, %v15179_v26, 0.0  ;;  %v9556_v46 = vpop.f32.mrb[18].mxu1 }
 0x6f1   :  { %v12329_v55 = vadd.f32 %v12328_v57, %v12327_v30  ;;  %v15185_v43 = vadd.f32 %v9556_v46, %v8157_v62  ;;  %v9558_v53 = vpop.f32.mrb[19].mxu1 }
 0x6f2   :  { %v15187_v20 = vadd.f32 %v9558_v53, %v8157_v62 }
 0x6f3   :  { %v12330_v61 = vsel %vm6414_vm9, %v15185_v43, 0.0 }
 0x6f4   :  { %v12331_v3 = vadd.f32 %v12330_v61, %v12329_v55  ;;  %v12332_v25 = vsel %vm6414_vm9, %v15187_v20, 0.0 }
 0x6f6   :  { %v12333_v42 = vadd.f32 %v12332_v25, %v12331_v3 }
 0x6f8   :  { %12334 = vadd.xlane.f32.xlu0 %v12333_v42 }
 0x730   :  { %v10891_v58 = vpop.f32.mrb[20].mxu0 }
 0x731   :  { %v15193_v5 = vadd.f32 %v10891_v58, %v8157_v62  ;;  %v10893_v11 = vpop.f32.mrb[21].mxu0 }
 0x732   :  { %v15195_v35 = vadd.f32 %v10893_v11, %v8157_v62 }
 0x733   :  { %v12337_v10 = vsel %vm6414_vm9, %v15193_v5, 0.0 }
 0x734   :  { %v12338_v17 = vsel %vm6414_vm9, %v15195_v35, 0.0  ;;  %v10962_v60 = vpop.f32.mrb[20].mxu1 }
 0x735   :  { %v12339_v31 = vadd.f32 %v12338_v17, %v12337_v10  ;;  %v15201_v44 = vadd.f32 %v10962_v60, %v8157_v62  ;;  %v10964_v48 = vpop.f32.mrb[21].mxu1 }
 0x736   :  { %v15203_v0 = vadd.f32 %v10964_v48, %v8157_v62 }
 0x737   :  { %v12340_v4 = vsel %vm6414_vm9, %v15201_v44, 0.0 }
 0x738   :  { %v12341_v14 = vadd.f32 %v12340_v4, %v12339_v31  ;;  %v12342_v21 = vsel %vm6414_vm9, %v15203_v0, 0.0 }
 0x73a   :  { %v12343_v52 = vadd.f32 %v12342_v21, %v12341_v14 }
 0x73c   :  { %12344 = vadd.xlane.f32.xlu0 %v12343_v52 }
 0x741   :  { %v12325_v16 = vpop.xlane.xlu1 %12324 }
 0x774   :  { %v12233_v50 = vpop.f32.mrb[22].mxu0 }
 0x775   :  { %v15209_v32 = vadd.f32 %v12233_v50, %v8157_v62  ;;  %v12235_v18 = vpop.f32.mrb[23].mxu0 }
 0x776   :  { %v15211_v13 = vadd.f32 %v12235_v18, %v8157_v62 }
 0x777   :  { %v12347_v15 = vsel %vm6414_vm9, %v15209_v32, 0.0 }
 0x778   :  { %v12348_v54 = vsel %vm6414_vm9, %v15211_v13, 0.0  ;;  %v12304_v36 = vpop.f32.mrb[22].mxu1 }
 0x779   :  { %v12349_v49 = vadd.f32 %v12348_v54, %v12347_v15  ;;  %v15217_v27 = vadd.f32 %v12304_v36, %v8157_v62  ;;  %v12306_v1 = vpop.f32.mrb[23].mxu1 }
 0x77a   :  { %v15219_v39 = vadd.f32 %v12306_v1, %v8157_v62 }
 0x77b   :  { %v12350_v24 = vsel %vm6414_vm9, %v15217_v27, 0.0 }
 0x77c   :  { %v12351_v22 = vadd.f32 %v12350_v24, %v12349_v49  ;;  %v12352_v56 = vsel %vm6414_vm9, %v15219_v39, 0.0 }
 0x77e   :  { %v12353_v2 = vadd.f32 %v12352_v56, %v12351_v22 }
 0x780   :  { %12354 = vadd.xlane.f32.xlu1 %v12353_v2 }
 0x785   :  { %v12335_v40 = vpop.xlane.xlu0 %12334 }
 0x786   :  { %v12336_v45 = vadd.f32 %v12335_v40, %v12325_v16 }
 0x7c9   :  { %v12345_v51 = vpop.xlane.xlu0 %12344 }
 0x7ca   :  { %v12346_v38 = vadd.f32 %v12345_v51, %v12336_v45 }
 0x80d   :  { %v12355_v8 = vpop.xlane.xlu1 %12354 }
 0x80e   :  { %v12356_v63 = vadd.f32 %v12355_v8, %v12346_v38 }
 0x810   :  { %v15225_v37 = vmul.f32 0.00048828125, %v12356_v63 }
 0x812   :  { %v12376_v62 = vsub.f32 %v15177_v34, %v15225_v37  ;;  %v12377_v12 = vsub.f32 %v15179_v26, %v15225_v37  ;;  %v12378_v23 = vsub.f32 %v15185_v43, %v15225_v37  ;;  %v12379_v6 = vsub.f32 %v15187_v20, %v15225_v37 }
 0x813   :  { %v12358_v9 = vsub.f32 %v15161_v28, %v15225_v37  ;;  %v12359_v33 = vsub.f32 %v15163_v47, %v15225_v37  ;;  %v12360_v41 = vsub.f32 %v15169_v59, %v15225_v37  ;;  %v12361_v19 = vsub.f32 %v15171_v7, %v15225_v37 }
 0x814   :  { %v12380_v29 = vmul.f32 %v12376_v62, %v12376_v62  ;;  %v12381_v30 = vmul.f32 %v12377_v12, %v12377_v12  ;;  %v12382_v57 = vmul.f32 %v12378_v23, %v12378_v23  ;;  %v12383_v46 = vmul.f32 %v12379_v6, %v12379_v6 }
 0x815   :  { %v12362_v55 = vmul.f32 %v12358_v9, %v12358_v9  ;;  %v12363_v53 = vmul.f32 %v12359_v33, %v12359_v33  ;;  %v12364_v61 = vmul.f32 %v12360_v41, %v12360_v41  ;;  %v12365_v3 = vmul.f32 %v12361_v19, %v12361_v19 }
 0x816   :  { %v12384_v25 = vsel %vm6414_vm9, %v12380_v29, 0.0  ;;  %v12385_v42 = vsel %vm6414_vm9, %v12381_v30, 0.0  ;;  %v12387_v58 = vsel %vm6414_vm9, %v12382_v57, 0.0  ;;  %v12389_v11 = vsel %vm6414_vm9, %v12383_v46, 0.0 }
 0x817   :  { %v12386_v10 = vadd.f32 %v12385_v42, %v12384_v25  ;;  %v12366_v17 = vsel %vm6414_vm9, %v12362_v55, 0.0  ;;  %v12367_v60 = vsel %vm6414_vm9, %v12363_v53, 0.0  ;;  %v12369_v31 = vsel %vm6414_vm9, %v12364_v61, 0.0 }
 0x818   :  { %v12368_v48 = vadd.f32 %v12367_v60, %v12366_v17  ;;  %v12371_v4 = vsel %vm6414_vm9, %v12365_v3, 0.0  ;;  %v12412_v14 = vsub.f32 %v15209_v32, %v15225_v37  ;;  %v12413_v21 = vsub.f32 %v15211_v13, %v15225_v37  ;;  %v12430_v60 = vld [vmem:[%s15333_s10] sm:$0xf] }
 0x819   :  { %v12388_v52 = vadd.f32 %v12387_v58, %v12386_v10  ;;  %v12414_v50 = vsub.f32 %v15217_v27, %v15225_v37  ;;  %v12415_v18 = vsub.f32 %v15219_v39, %v15225_v37  ;;  %v12394_v15 = vsub.f32 %v15193_v5, %v15225_v37 }
 0x81a   :  { %v12370_v54 = vadd.f32 %v12369_v31, %v12368_v48  ;;  %v12416_v36 = vmul.f32 %v12412_v14, %v12412_v14  ;;  %v12417_v49 = vmul.f32 %v12413_v21, %v12413_v21  ;;  %v12395_v1 = vsub.f32 %v15195_v35, %v15225_v37 }
 0x81b   :  { %v12390_v24 = vadd.f32 %v12389_v11, %v12388_v52  ;;  %v12418_v22 = vmul.f32 %v12414_v50, %v12414_v50  ;;  %v12419_v56 = vmul.f32 %v12415_v18, %v12415_v18  ;;  %v12396_v2 = vsub.f32 %v15201_v44, %v15225_v37 }
 0x81c   :  { %v12372_v40 = vadd.f32 %v12371_v4, %v12370_v54  ;;  %v12420_v16 = vsel %vm6414_vm9, %v12416_v36, 0.0  ;;  %v12421_v51 = vsel %vm6414_vm9, %v12417_v49, 0.0  ;;  %v12397_v45 = vsub.f32 %v15203_v0, %v15225_v37  ;;  %v12435_v4 = vld [vmem:[%s15334_s11] sm:$0xf] }
 0x81d   :  { %12391 = vadd.xlane.f32.xlu1 %v12390_v24  ;;  %v12422_v38 = vadd.f32 %v12421_v51, %v12420_v16  ;;  %v12398_v8 = vmul.f32 %v12394_v15, %v12394_v15  ;;  %v12423_v63 = vsel %vm6414_vm9, %v12418_v22, 0.0  ;;  %v12399_v62 = vmul.f32 %v12395_v1, %v12395_v1 }
 0x81e   :  { %12373 = vadd.xlane.f32.xlu0 %v12372_v40  ;;  %v12400_v12 = vmul.f32 %v12396_v2, %v12396_v2  ;;  %v12425_v9 = vsel %vm6414_vm9, %v12419_v56, 0.0  ;;  %v12401_v33 = vmul.f32 %v12397_v45, %v12397_v45 }
 0x81f   :  { %v12424_v23 = vadd.f32 %v12423_v63, %v12422_v38  ;;  %v12402_v6 = vsel %vm6414_vm9, %v12398_v8, 0.0  ;;  %v12403_v41 = vsel %vm6414_vm9, %v12399_v62, 0.0 }
 0x820   :  { %v12404_v29 = vadd.f32 %v12403_v41, %v12402_v6  ;;  %v12405_v30 = vsel %vm6414_vm9, %v12400_v12, 0.0  ;;  %v12407_v46 = vsel %vm6414_vm9, %v12401_v33, 0.0 }
 0x821   :  { %v12426_v19 = vadd.f32 %v12425_v9, %v12424_v23 }
 0x822   :  { %v12406_v57 = vadd.f32 %v12405_v30, %v12404_v29 }
 0x823   :  { %12427 = vadd.xlane.f32.xlu1 %v12426_v19 }
 0x824   :  { %v12408_v55 = vadd.f32 %v12407_v46, %v12406_v57 }
 0x826   :  { %12409 = vadd.xlane.f32.xlu0 %v12408_v55 }
 0x8aa   :  { %v12392_v61 = vpop.xlane.xlu1 %12391 }
 0x8ab   :  { %v12374_v53 = vpop.xlane.xlu0 %12373 }
 0x8ac   :  { %v12393_v3 = vadd.f32 %v12392_v61, %v12374_v53 }
 0x8b0   :  { %v12428_v58 = vpop.xlane.xlu1 %12427 }
 0x8b3   :  { %v12410_v25 = vpop.xlane.xlu0 %12409 }
 0x8b4   :  { %v12411_v42 = vadd.f32 %v12410_v25, %v12393_v3 }
 0x8b6   :  { %v12429_v11 = vadd.f32 %v12428_v58, %v12411_v42 }
 0x8b8   :  { %v12431_v10 = vmul.f32 0.00048828125, %v12429_v11 }
 0x8ba   :  { %v12432_v17 = vadd.f32 1e-05, %v12431_v10 }
 0x8bc   :  { %13153 = vrsqrt.f32 %v12432_v17 }
 0x8c6   :  { %v13154_v31 = vpop.eup %13153 }
 0x8c7   :  { %v12434_v48 = vmul.f32 %v13154_v31, %v12430_v60 }
 0x8c9   :  { %12440 = vperm.xlu0 %13149, %v12434_v48   ;;  %v12436_v14 = vmul.f32 %v12434_v48, %v15225_v37 }
 0x8cb   :  { %v12437_v21 = vsub.f32 %v12435_v4, %v12436_v14 }
 0x8cd   :  { %12449 = vperm.xlu1 %13150, %v12437_v21  }
 0x948   :  { %v12441_v52 = vpop.permute.xlu0 %12440 }
 0x949   :  { %v12443_v50 = vmul.f32 %v12441_v52, %v15161_v28  ;;  %v12444_v18 = vmul.f32 %v12441_v52, %v15163_v47  ;;  %v12445_v15 = vmul.f32 %v12441_v52, %v15169_v59  ;;  %v12446_v54 = vmul.f32 %v12441_v52, %v15171_v7 }
 0x94a   :  { %v12460_v36 = vmul.f32 %v12441_v52, %v15177_v34  ;;  %v12461_v49 = vmul.f32 %v12441_v52, %v15179_v26  ;;  %v12462_v1 = vmul.f32 %v12441_v52, %v15185_v43  ;;  %v12463_v24 = vmul.f32 %v12441_v52, %v15187_v20 }
 0x94b   :  { %v12472_v37 = vmul.f32 %v12441_v52, %v15193_v5  ;;  %v12473_v22 = vmul.f32 %v12441_v52, %v15195_v35  ;;  %v12474_v28 = vmul.f32 %v12441_v52, %v15201_v44  ;;  %v12475_v47 = vmul.f32 %v12441_v52, %v15203_v0 }
 0x94c   :  { %v12484_v59 = vmul.f32 %v12441_v52, %v15209_v32  ;;  %v12485_v7 = vmul.f32 %v12441_v52, %v15211_v13  ;;  %v12486_v34 = vmul.f32 %v12441_v52, %v15217_v27  ;;  %v12487_v26 = vmul.f32 %v12441_v52, %v15219_v39  ;;  %v12450_v56 = vpop.permute.xlu1 %12449 }
 0x94d   :  { %v12452_v43 = vadd.f32 %v12450_v56, %v12443_v50  ;;  %v12453_v2 = vadd.f32 %v12450_v56, %v12444_v18  ;;  %v12454_v20 = vadd.f32 %v12450_v56, %v12445_v15  ;;  %v12455_v40 = vadd.f32 %v12450_v56, %v12446_v54 }
 0x94e   :  { %v12464_v5 = vadd.f32 %v12460_v36, %v12450_v56  ;;  %v12465_v16 = vadd.f32 %v12461_v49, %v12450_v56  ;;  %v12466_v35 = vadd.f32 %v12462_v1, %v12450_v56  ;;  %v12467_v51 = vadd.f32 %v12463_v24, %v12450_v56 }
 0x94f   :  { %v12456_v44 = vmax.f32 %v12452_v43, 0.0  ;;  %v12457_v45 = vmax.f32 %v12453_v2, 0.0  ;;  %v12458_v0 = vmax.f32 %v12454_v20, 0.0  ;;  %v12459_v38 = vmax.f32 %v12455_v40, 0.0 }
 0x950   :  { %v12468_v32 = vmax.f32 %v12464_v5, 0.0  ;;  %v12469_v8 = vmax.f32 %v12465_v16, 0.0  ;;  %v12470_v13 = vmax.f32 %v12466_v35, 0.0  ;;  %v12471_v63 = vmax.f32 %v12467_v51, 0.0 }
 0x951   :  { %v12476_v27 = vadd.f32 %v12472_v37, %v12450_v56  ;;  %v12477_v62 = vadd.f32 %v12473_v22, %v12450_v56  ;;  %v12478_v39 = vadd.f32 %v12474_v28, %v12450_v56  ;;  %v12479_v12 = vadd.f32 %v12475_v47, %v12450_v56 }
 0x952   :  { %v12488_v23 = vadd.f32 %v12484_v59, %v12450_v56  ;;  %v12489_v6 = vadd.f32 %v12485_v7, %v12450_v56  ;;  %v12490_v9 = vadd.f32 %v12486_v34, %v12450_v56  ;;  %v12491_v33 = vadd.f32 %v12487_v26, %v12450_v56 }
 0x953   :  { %v12480_v41 = vmax.f32 %v12476_v27, 0.0  ;;  %v12481_v19 = vmax.f32 %v12477_v62, 0.0  ;;  %v12482_v29 = vmax.f32 %v12478_v39, 0.0  ;;  %v12483_v30 = vmax.f32 %v12479_v12, 0.0 }
 0x954   :  { %v12492_v57 = vmax.f32 %v12488_v23, 0.0  ;;  %v12493_v46 = vmax.f32 %v12489_v6, 0.0  ;;  %v12494_v55 = vmax.f32 %v12490_v9, 0.0  ;;  %v12495_v53 = vmax.f32 %v12491_v33, 0.0 }
 0x955   :  { %v12500_v61 = vcombine.low %v12456_v44, %v12457_v45  ;;  %v12501_v3 = vcombine.low %v12458_v0, %v12459_v38  ;;  %v12510_v25 = vcombine.low %v12468_v32, %v12469_v8  ;;  %v12511_v42 = vcombine.low %v12470_v13, %v12471_v63 }
 0x956   :  { %v12521_v58 = vcombine.low %v12480_v41, %v12481_v19  ;;  %v12522_v11 = vcombine.low %v12482_v29, %v12483_v30  ;;  %v12532_v10 = vcombine.low %v12492_v57, %v12493_v46  ;;  %v12533_v17 = vcombine.low %v12494_v55, %v12495_v53 }
 0x957   :  { %12504 = vst [vmem:[%s15335_s13] sm:$0xff] %v12500_v61  ;;  %12505 = vst [vmem:[%s15335_s13 + $0x8] sm:$0xff] %v12501_v3 }
 0x958   :  { %12877 = vst [vmem:[%s15335_s13 + $0x10] sm:$0xff] %v12510_v25  ;;  %12878 = vst [vmem:[%s15335_s13 + $0x18] sm:$0xff] %v12511_v42 }
 0x959   :  { %12879 = vst [vmem:[%s15335_s13 + $0x20] sm:$0xff] %v12521_v58  ;;  %12880 = vst [vmem:[%s15335_s13 + $0x28] sm:$0xff] %v12522_v11 }
 0x95a   :  { %12881 = vst [vmem:[%s15335_s13 + $0x30] sm:$0xff] %v12532_v10  ;;  %12882 = vst [vmem:[%s15335_s13 + $0x38] sm:$0xff] %v12533_v17 }

</bundles_post_ra>
